<compile_context>
chip_gen: v5e
topology: v5e:2x2
jax: 0.10.0
libtpu: 0.0.40
codegen_flags: <defaults>
</compile_context>

<pallas_src>
import functools

import jax
import jax.numpy as jnp
from jax import lax
from jax.experimental import pallas as pl
from jax.experimental.pallas import tpu as pltpu

N_EMBD = 64
BLOCK_SIZE = 32
N_HEAD = 4
HEAD_SIZE = N_EMBD // N_HEAD
LN_EPS = 1e-5  # torch.nn.LayerNorm default


def _layernorm(h, g, b):
    mu = jnp.mean(h, axis=-1, keepdims=True)
    var = jnp.mean((h - mu) ** 2, axis=-1, keepdims=True)
    return (h - mu) * lax.rsqrt(var + LN_EPS) * g + b


def block_kernel(x_ref, ln_ref, wqkv_ref, b_ref, wp_ref, w1_ref, w2_ref, out_ref,
                 *, bt, seq_len):
    T = seq_len
    C = N_EMBD
    M = bt * T

    # (Bt, T, C) -> (Bt*T, C): fold batch into the matmul M dimension.
    x = x_ref[...].astype(jnp.float32).reshape(M, C)

    # Packed LayerNorm params: rows = [ln1_g, ln1_b, ln2_g, ln2_b]
    g1 = ln_ref[0:1, :]
    be1 = ln_ref[1:2, :]
    g2 = ln_ref[2:3, :]
    be2 = ln_ref[3:4, :]

    # Packed biases: [bq|bk|bv | bp | b1 | b2]  -> (1, 9C)
    bqkv = b_ref[:, 0:3 * C]
    bp = b_ref[:, 3 * C:4 * C]
    b1 = b_ref[:, 4 * C:8 * C]
    b2 = b_ref[:, 8 * C:9 * C]

    # ---- ln1 + fused QKV projection ----
    h = _layernorm(x, g1, be1)
    qkv = jnp.dot(h, wqkv_ref[...], preferred_element_type=jnp.float32) + bqkv
    q = qkv[:, 0:C]
    k = qkv[:, C:2 * C]
    v = qkv[:, 2 * C:3 * C]

    # Causal mask: built once per grid step (shared across heads).
    row = lax.broadcasted_iota(jnp.int32, (T, T), 0)
    col = lax.broadcasted_iota(jnp.int32, (T, T), 1)
    causal = (col <= row)[None, :, :]                      # (1, T, T)

    scale = jnp.float32(1.0) / jnp.sqrt(jnp.float32(C))    # C**-0.5, C = n_embd
    wp = wp_ref[...]

    # Per-head attention; accumulate straight into the output projection
    # (no head concatenation).
    attn = jnp.zeros((M, C), jnp.float32)
    for hh in range(N_HEAD):                               # static unroll, N_HEAD=4
        sl = slice(hh * HEAD_SIZE, (hh + 1) * HEAD_SIZE)
        qh = q[:, sl].reshape(bt, T, HEAD_SIZE)
        kh = k[:, sl].reshape(bt, T, HEAD_SIZE)
        vh = v[:, sl].reshape(bt, T, HEAD_SIZE)
        s = jnp.einsum('bqd,bkd->bqk', qh, kh,
                       preferred_element_type=jnp.float32) * scale
        s = jnp.where(causal, s, -jnp.inf)
        s = s - jnp.max(s, axis=-1, keepdims=True)
        p = jnp.exp(s)
        denom = jnp.sum(p, axis=-1, keepdims=True)
        p = p * pl.reciprocal(denom, approx=True)          # EUP slot
        oh = jnp.einsum('bqk,bkd->bqd', p, vh,
                        preferred_element_type=jnp.float32)
        attn = attn + jnp.dot(oh.reshape(M, HEAD_SIZE), wp[sl, :],
                              preferred_element_type=jnp.float32)
    attn = attn + bp

    x1 = x + attn

    # ---- ln2 + feed-forward (Linear -> ReLU -> Linear) ----
    h2 = _layernorm(x1, g2, be2)
    f = jnp.dot(h2, w1_ref[...], preferred_element_type=jnp.float32) + b1
    f = jnp.maximum(f, 0.0)
    f = jnp.dot(f, w2_ref[...], preferred_element_type=jnp.float32) + b2

    out_ref[...] = (x1 + f).reshape(bt, T, C).astype(out_ref.dtype)


def _pick_batch_tile(B, cap=64):
    """Largest divisor of B that is <= cap and keeps >= 2 grid steps when B >= 2
    (so both v7x TensorCores get work via the 'parallel' grid axis)."""
    best = 1
    for d in range(1, min(B, cap) + 1):
        if B % d == 0 and (B // d >= 2 or B == 1):
            best = d
    return best


def transformer_block(x, params, batch_tile=None):
    B, T, C = x.shape
    assert C == N_EMBD and T <= BLOCK_SIZE

    bt = batch_tile or _pick_batch_tile(B)
    assert B % bt == 0
    grid = (B // bt,)

    # Fuse QKV weights/biases; pack small 1-D params into 2-D slabs.
    wqkv = jnp.concatenate([params["wq"], params["wk"], params["wv"]], axis=1)  # (C, 3C)
    ln_slab = jnp.stack([params["ln1_g"], params["ln1_b"],
                         params["ln2_g"], params["ln2_b"]], axis=0)             # (4, C)
    b_slab = jnp.concatenate([params["bq"], params["bk"], params["bv"],
                              params["bp"], params["b1"], params["b2"]])[None, :]  # (1, 9C)

    weights = [ln_slab, wqkv, b_slab, params["wp"], params["w1"], params["w2"]]

    def rep_spec(arr):
        nd = arr.ndim
        return pl.BlockSpec(arr.shape, lambda i, _nd=nd: (0,) * _nd)

    in_specs = [pl.BlockSpec((bt, T, C), lambda i: (i, 0, 0))]
    in_specs += [rep_spec(w) for w in weights]

    kernel = functools.partial(block_kernel, bt=bt, seq_len=T)

    return pl.pallas_call(
        kernel,
        out_shape=jax.ShapeDtypeStruct((B, T, C), x.dtype),
        grid=grid,
        in_specs=in_specs,
        out_specs=pl.BlockSpec((bt, T, C), lambda i: (i, 0, 0)),
        compiler_params=pltpu.CompilerParams(
            dimension_semantics=("parallel",)),
    )(x, *weights)


def make_params(key):
    """Deterministic synthetic parameters (shapes follow the PyTorch module).
    Linear weights stored as (in_features, out_features): y = x @ W + b."""
    ks = jax.random.split(key, 8)
    scale = 0.02
    return {
        "ln1_g": jnp.ones((N_EMBD,), jnp.float32),
        "ln1_b": jnp.zeros((N_EMBD,), jnp.float32),
        "wq": scale * jax.random.normal(ks[0], (N_EMBD, N_EMBD), jnp.float32),
        "bq": jnp.zeros((N_EMBD,), jnp.float32),
        "wk": scale * jax.random.normal(ks[1], (N_EMBD, N_EMBD), jnp.float32),
        "bk": jnp.zeros((N_EMBD,), jnp.float32),
        "wv": scale * jax.random.normal(ks[2], (N_EMBD, N_EMBD), jnp.float32),
        "bv": jnp.zeros((N_EMBD,), jnp.float32),
        "wp": scale * jax.random.normal(ks[3], (N_EMBD, N_EMBD), jnp.float32),
        "bp": 0.01 * jax.random.normal(ks[4], (N_EMBD,), jnp.float32),
        "ln2_g": jnp.ones((N_EMBD,), jnp.float32),
        "ln2_b": jnp.zeros((N_EMBD,), jnp.float32),
        "w1": scale * jax.random.normal(ks[5], (N_EMBD, 4 * N_EMBD), jnp.float32),
        "b1": jnp.zeros((4 * N_EMBD,), jnp.float32),
        "w2": scale * jax.random.normal(ks[6], (4 * N_EMBD, N_EMBD), jnp.float32),
        "b2": 0.01 * jax.random.normal(ks[7], (N_EMBD,), jnp.float32),
    }


def reference_block(x, p):
    """Pure-JAX reference reproducing the PyTorch Block forward."""
    B, T, C = x.shape

    def ln(h, g, b):
        mu = jnp.mean(h, axis=-1, keepdims=True)
        var = jnp.mean((h - mu) ** 2, axis=-1, keepdims=True)
        return (h - mu) / jnp.sqrt(var + LN_EPS) * g + b

    h = ln(x, p["ln1_g"], p["ln1_b"])
    q = h @ p["wq"] + p["bq"]
    k = h @ p["wk"] + p["bk"]
    v = h @ p["wv"] + p["bv"]
    tril = jnp.tril(jnp.ones((T, T), bool))
    outs = []
    for hh in range(N_HEAD):
        sl = slice(hh * HEAD_SIZE, (hh + 1) * HEAD_SIZE)
        wei = (q[..., sl] @ jnp.swapaxes(k[..., sl], -2, -1)) * (C ** -0.5)
        wei = jnp.where(tril, wei, -jnp.inf)
        wei = jax.nn.softmax(wei, axis=-1)
        outs.append(wei @ v[..., sl])
    attn = jnp.concatenate(outs, axis=-1) @ p["wp"] + p["bp"]
    x = x + attn
    h2 = ln(x, p["ln2_g"], p["ln2_b"])
    f = jnp.maximum(h2 @ p["w1"] + p["b1"], 0.0) @ p["w2"] + p["b2"]
    return x + f


if __name__ == "__main__":
    key = jax.random.PRNGKey(0)
    k_x, k_p = jax.random.split(key)

    B, T, C = 8, BLOCK_SIZE, N_EMBD          # (8, 32, 64) -> Bt=4, grid=(2,)
    x = jax.random.normal(k_x, (B, T, C), jnp.float32)
    params = make_params(k_p)

    out = jax.block_until_ready(transformer_block(x, params))
    ref = reference_block(x, params)

    assert out.shape == (B, T, C)
    err = float(jnp.max(jnp.abs(out - ref)))
    assert err < 1e-3, err                    # approx reciprocal adds ~1e-5 abs error
    print("KERNEL_OK")
</pallas_src>

<mosaic_0001>
module attributes {stable_mosaic.version = 11 : i64} {
  func.func @block_kernel(%arg0: i32, %arg1: memref<4x32x64xf32, #tpu.memory_space<vmem>>, %arg2: memref<4x64xf32, #tpu.memory_space<vmem>>, %arg3: memref<64x192xf32, #tpu.memory_space<vmem>>, %arg4: memref<1x576xf32, #tpu.memory_space<vmem>>, %arg5: memref<64x64xf32, #tpu.memory_space<vmem>>, %arg6: memref<64x256xf32, #tpu.memory_space<vmem>>, %arg7: memref<256x64xf32, #tpu.memory_space<vmem>>, %arg8: memref<4x32x64xf32, #tpu.memory_space<vmem>>) attributes {dimension_semantics = [#tpu.dimension_semantics<parallel>], iteration_bounds = array<i64: 2>, scalar_prefetch = 0 : i64, scratch_operands = 0 : i64, tpu.core_type = #tpu.core_type<tc>, window_params = [{transform_indices = @transform_0, window_bounds = array<i64: 4, 32, 64>}, {pipeline_mode = #tpu.pipeline_mode<synchronous>, transform_indices = @transform_1, window_bounds = array<i64: 4, 64>}, {pipeline_mode = #tpu.pipeline_mode<synchronous>, transform_indices = @transform_2, window_bounds = array<i64: 64, 192>}, {pipeline_mode = #tpu.pipeline_mode<synchronous>, transform_indices = @transform_3, window_bounds = array<i64: 1, 576>}, {pipeline_mode = #tpu.pipeline_mode<synchronous>, transform_indices = @transform_4, window_bounds = array<i64: 64, 64>}, {pipeline_mode = #tpu.pipeline_mode<synchronous>, transform_indices = @transform_5, window_bounds = array<i64: 64, 256>}, {pipeline_mode = #tpu.pipeline_mode<synchronous>, transform_indices = @transform_6, window_bounds = array<i64: 256, 64>}, {transform_indices = @transform_7, window_bounds = array<i64: 4, 32, 64>}]} {
    %c0 = arith.constant 0 : index
    %c0_0 = arith.constant 0 : index
    %c0_1 = arith.constant 0 : index
    %0 = vector.load %arg1[%c0, %c0_0, %c0_1] : memref<4x32x64xf32, #tpu.memory_space<vmem>>, vector<4x32x64xf32>
    %1 = vector.shape_cast %0 : vector<4x32x64xf32> to vector<128x64xf32>
    %c0_2 = arith.constant 0 : index
    %c0_3 = arith.constant 0 : index
    %2 = vector.load %arg2[%c0_2, %c0_3] : memref<4x64xf32, #tpu.memory_space<vmem>>, vector<1x64xf32>
    %c1 = arith.constant 1 : index
    %c0_4 = arith.constant 0 : index
    %3 = vector.load %arg2[%c1, %c0_4] : memref<4x64xf32, #tpu.memory_space<vmem>>, vector<1x64xf32>
    %c2 = arith.constant 2 : index
    %c0_5 = arith.constant 0 : index
    %4 = vector.load %arg2[%c2, %c0_5] : memref<4x64xf32, #tpu.memory_space<vmem>>, vector<1x64xf32>
    %c3 = arith.constant 3 : index
    %c0_6 = arith.constant 0 : index
    %5 = vector.load %arg2[%c3, %c0_6] : memref<4x64xf32, #tpu.memory_space<vmem>>, vector<1x64xf32>
    %c0_7 = arith.constant 0 : index
    %c0_8 = arith.constant 0 : index
    %6 = vector.load %arg4[%c0_7, %c0_8] : memref<1x576xf32, #tpu.memory_space<vmem>>, vector<1x192xf32>
    %c0_9 = arith.constant 0 : index
    %c192 = arith.constant 192 : index
    %7 = vector.load %arg4[%c0_9, %c192] : memref<1x576xf32, #tpu.memory_space<vmem>>, vector<1x64xf32>
    %c0_10 = arith.constant 0 : index
    %c256 = arith.constant 256 : index
    %8 = vector.load %arg4[%c0_10, %c256] : memref<1x576xf32, #tpu.memory_space<vmem>>, vector<1x256xf32>
    %c0_11 = arith.constant 0 : index
    %c512 = arith.constant 512 : index
    %9 = vector.load %arg4[%c0_11, %c512] : memref<1x576xf32, #tpu.memory_space<vmem>>, vector<1x64xf32>
    %cst = arith.constant dense<0.000000e+00> : vector<128xf32>
    %10 = vector.multi_reduction <add>, %1, %cst [1] : vector<128x64xf32> to vector<128xf32>
    %11 = vector.shape_cast %10 : vector<128xf32> to vector<128x1xf32>
    %cst_12 = arith.constant 6.400000e+01 : f32
    %12 = vector.broadcast %cst_12 : f32 to vector<128x1xf32>
    %13 = arith.divf %11, %12 : vector<128x1xf32>
    %14 = vector.broadcast %13 : vector<128x1xf32> to vector<128x64xf32>
    %15 = arith.subf %1, %14 : vector<128x64xf32>
    %16 = arith.mulf %15, %15 : vector<128x64xf32>
    %cst_13 = arith.constant dense<0.000000e+00> : vector<128xf32>
    %17 = vector.multi_reduction <add>, %16, %cst_13 [1] : vector<128x64xf32> to vector<128xf32>
    %18 = vector.shape_cast %17 : vector<128xf32> to vector<128x1xf32>
    %cst_14 = arith.constant 6.400000e+01 : f32
    %19 = vector.broadcast %cst_14 : f32 to vector<128x1xf32>
    %20 = arith.divf %18, %19 : vector<128x1xf32>
    %21 = vector.broadcast %13 : vector<128x1xf32> to vector<128x64xf32>
    %22 = arith.subf %1, %21 : vector<128x64xf32>
    %cst_15 = arith.constant 9.99999974E-6 : f32
    %23 = vector.broadcast %cst_15 : f32 to vector<128x1xf32>
    %24 = arith.addf %20, %23 : vector<128x1xf32>
    %25 = math.rsqrt %24 : vector<128x1xf32>
    %26 = vector.broadcast %25 : vector<128x1xf32> to vector<128x64xf32>
    %27 = arith.mulf %22, %26 : vector<128x64xf32>
    %28 = vector.broadcast %2 : vector<1x64xf32> to vector<128x64xf32>
    %29 = arith.mulf %27, %28 : vector<128x64xf32>
    %30 = vector.broadcast %3 : vector<1x64xf32> to vector<128x64xf32>
    %31 = arith.addf %29, %30 : vector<128x64xf32>
    %c0_16 = arith.constant 0 : index
    %c0_17 = arith.constant 0 : index
    %32 = vector.load %arg3[%c0_16, %c0_17] : memref<64x192xf32, #tpu.memory_space<vmem>>, vector<64x192xf32>
    %cst_18 = arith.constant dense<0.000000e+00> : vector<128x192xf32>
    %33 = tpu.matmul %31, %32, %cst_18 {dimension_numbers = #tpu.dot_dimension_numbers<[1], [0], [0], [1], [0, 0, 1, 1], [], []>} : vector<128x64xf32>, vector<64x192xf32>, vector<128x192xf32> -> vector<128x192xf32>
    %34 = vector.broadcast %6 : vector<1x192xf32> to vector<128x192xf32>
    %35 = arith.addf %33, %34 : vector<128x192xf32>
    %36 = vector.extract_strided_slice %35 {offsets = [0, 0], sizes = [128, 64], strides = [1, 1]} : vector<128x192xf32> to vector<128x64xf32>
    %37 = vector.extract_strided_slice %35 {offsets = [0, 64], sizes = [128, 64], strides = [1, 1]} : vector<128x192xf32> to vector<128x64xf32>
    %38 = vector.extract_strided_slice %35 {offsets = [0, 128], sizes = [128, 64], strides = [1, 1]} : vector<128x192xf32> to vector<128x64xf32>
    %39 = tpu.iota {dimensions = array<i32: 0>} : vector<32x32xi32>
    %40 = tpu.iota {dimensions = array<i32: 1>} : vector<32x32xi32>
    %41 = arith.cmpi sle, %40, %39 : vector<32x32xi32>
    %42 = vector.shape_cast %41 : vector<32x32xi1> to vector<1x32x32xi1>
    %cst_19 = arith.constant 6.400000e+01 : f32
    %43 = math.sqrt %cst_19 : f32
    %cst_20 = arith.constant 1.000000e+00 : f32
    %44 = arith.divf %cst_20, %43 : f32
    %c0_21 = arith.constant 0 : index
    %c0_22 = arith.constant 0 : index
    %45 = vector.load %arg5[%c0_21, %c0_22] : memref<64x64xf32, #tpu.memory_space<vmem>>, vector<64x64xf32>
    %cst_23 = arith.constant 0.000000e+00 : f32
    %46 = vector.broadcast %cst_23 : f32 to vector<128x64xf32>
    %47 = vector.extract_strided_slice %36 {offsets = [0, 0], sizes = [128, 16], strides = [1, 1]} : vector<128x64xf32> to vector<128x16xf32>
    %48 = vector.shape_cast %47 : vector<128x16xf32> to vector<4x32x16xf32>
    %49 = vector.extract_strided_slice %37 {offsets = [0, 0], sizes = [128, 16], strides = [1, 1]} : vector<128x64xf32> to vector<128x16xf32>
    %50 = vector.shape_cast %49 : vector<128x16xf32> to vector<4x32x16xf32>
    %51 = vector.extract_strided_slice %38 {offsets = [0, 0], sizes = [128, 16], strides = [1, 1]} : vector<128x64xf32> to vector<128x16xf32>
    %52 = vector.shape_cast %51 : vector<128x16xf32> to vector<4x32x16xf32>
    "tpu.trace_start"() <{level = 10 : i32, message = "bqd,bkd->bqk"}> : () -> ()
    %cst_24 = arith.constant dense<0.000000e+00> : vector<4x32x32xf32>
    %53 = tpu.matmul %48, %50, %cst_24 {dimension_numbers = #tpu.dot_dimension_numbers<[2], [2], [1], [1], [0, 0, 0, 1, 1, 1], [0], [0]>} : vector<4x32x16xf32>, vector<4x32x16xf32>, vector<4x32x32xf32> -> vector<4x32x32xf32>
    "tpu.trace_stop"() : () -> ()
    %54 = vector.broadcast %44 : f32 to vector<4x32x32xf32>
    %55 = arith.mulf %53, %54 : vector<4x32x32xf32>
    %cst_25 = arith.constant 0xFF800000 : f32
    %56 = vector.shape_cast %42 : vector<1x32x32xi1> to vector<1x32x32xi1>
    %57 = vector.broadcast %56 : vector<1x32x32xi1> to vector<4x32x32xi1>
    %58 = vector.broadcast %cst_25 : f32 to vector<4x32x32xf32>
    %59 = arith.select %57, %55, %58 : vector<4x32x32xi1>, vector<4x32x32xf32>
    %cst_26 = arith.constant dense<0xFF800000> : vector<4x32xf32>
    %60 = vector.multi_reduction <maximumf>, %59, %cst_26 [2] : vector<4x32x32xf32> to vector<4x32xf32>
    %61 = vector.shape_cast %60 : vector<4x32xf32> to vector<4x32x1xf32>
    %62 = vector.broadcast %61 : vector<4x32x1xf32> to vector<4x32x32xf32>
    %63 = arith.subf %59, %62 : vector<4x32x32xf32>
    %64 = math.exp %63 : vector<4x32x32xf32>
    %cst_27 = arith.constant dense<0.000000e+00> : vector<4x32xf32>
    %65 = vector.multi_reduction <add>, %64, %cst_27 [2] : vector<4x32x32xf32> to vector<4x32xf32>
    %66 = vector.shape_cast %65 : vector<4x32xf32> to vector<4x32x1xf32>
    %67 = tpu.reciprocal %66 {approx = true} : vector<4x32x1xf32> -> vector<4x32x1xf32>
    %68 = vector.broadcast %67 : vector<4x32x1xf32> to vector<4x32x32xf32>
    %69 = arith.mulf %64, %68 : vector<4x32x32xf32>
    "tpu.trace_start"() <{level = 10 : i32, message = "bqk,bkd->bqd"}> : () -> ()
    %cst_28 = arith.constant dense<0.000000e+00> : vector<4x32x16xf32>
    %70 = tpu.matmul %69, %52, %cst_28 {dimension_numbers = #tpu.dot_dimension_numbers<[2], [1], [1], [2], [0, 0, 0, 1, 1, 2], [0], [0]>} : vector<4x32x32xf32>, vector<4x32x16xf32>, vector<4x32x16xf32> -> vector<4x32x16xf32>
    "tpu.trace_stop"() : () -> ()
    %71 = vector.shape_cast %70 : vector<4x32x16xf32> to vector<128x16xf32>
    %72 = vector.extract_strided_slice %45 {offsets = [0, 0], sizes = [16, 64], strides = [1, 1]} : vector<64x64xf32> to vector<16x64xf32>
    %cst_29 = arith.constant dense<0.000000e+00> : vector<128x64xf32>
    %73 = tpu.matmul %71, %72, %cst_29 {dimension_numbers = #tpu.dot_dimension_numbers<[1], [0], [0], [1], [0, 0, 1, 1], [], []>} : vector<128x16xf32>, vector<16x64xf32>, vector<128x64xf32> -> vector<128x64xf32>
    %74 = arith.addf %46, %73 : vector<128x64xf32>
    %75 = vector.extract_strided_slice %36 {offsets = [0, 16], sizes = [128, 16], strides = [1, 1]} : vector<128x64xf32> to vector<128x16xf32>
    %76 = vector.shape_cast %75 : vector<128x16xf32> to vector<4x32x16xf32>
    %77 = vector.extract_strided_slice %37 {offsets = [0, 16], sizes = [128, 16], strides = [1, 1]} : vector<128x64xf32> to vector<128x16xf32>
    %78 = vector.shape_cast %77 : vector<128x16xf32> to vector<4x32x16xf32>
    %79 = vector.extract_strided_slice %38 {offsets = [0, 16], sizes = [128, 16], strides = [1, 1]} : vector<128x64xf32> to vector<128x16xf32>
    %80 = vector.shape_cast %79 : vector<128x16xf32> to vector<4x32x16xf32>
    "tpu.trace_start"() <{level = 10 : i32, message = "bqd,bkd->bqk"}> : () -> ()
    %cst_30 = arith.constant dense<0.000000e+00> : vector<4x32x32xf32>
    %81 = tpu.matmul %76, %78, %cst_30 {dimension_numbers = #tpu.dot_dimension_numbers<[2], [2], [1], [1], [0, 0, 0, 1, 1, 1], [0], [0]>} : vector<4x32x16xf32>, vector<4x32x16xf32>, vector<4x32x32xf32> -> vector<4x32x32xf32>
    "tpu.trace_stop"() : () -> ()
    %82 = vector.broadcast %44 : f32 to vector<4x32x32xf32>
    %83 = arith.mulf %81, %82 : vector<4x32x32xf32>
    %cst_31 = arith.constant 0xFF800000 : f32
    %84 = vector.shape_cast %42 : vector<1x32x32xi1> to vector<1x32x32xi1>
    %85 = vector.broadcast %84 : vector<1x32x32xi1> to vector<4x32x32xi1>
    %86 = vector.broadcast %cst_31 : f32 to vector<4x32x32xf32>
    %87 = arith.select %85, %83, %86 : vector<4x32x32xi1>, vector<4x32x32xf32>
    %cst_32 = arith.constant dense<0xFF800000> : vector<4x32xf32>
    %88 = vector.multi_reduction <maximumf>, %87, %cst_32 [2] : vector<4x32x32xf32> to vector<4x32xf32>
    %89 = vector.shape_cast %88 : vector<4x32xf32> to vector<4x32x1xf32>
    %90 = vector.broadcast %89 : vector<4x32x1xf32> to vector<4x32x32xf32>
    %91 = arith.subf %87, %90 : vector<4x32x32xf32>
    %92 = math.exp %91 : vector<4x32x32xf32>
    %cst_33 = arith.constant dense<0.000000e+00> : vector<4x32xf32>
    %93 = vector.multi_reduction <add>, %92, %cst_33 [2] : vector<4x32x32xf32> to vector<4x32xf32>
    %94 = vector.shape_cast %93 : vector<4x32xf32> to vector<4x32x1xf32>
    %95 = tpu.reciprocal %94 {approx = true} : vector<4x32x1xf32> -> vector<4x32x1xf32>
    %96 = vector.broadcast %95 : vector<4x32x1xf32> to vector<4x32x32xf32>
    %97 = arith.mulf %92, %96 : vector<4x32x32xf32>
    "tpu.trace_start"() <{level = 10 : i32, message = "bqk,bkd->bqd"}> : () -> ()
    %cst_34 = arith.constant dense<0.000000e+00> : vector<4x32x16xf32>
    %98 = tpu.matmul %97, %80, %cst_34 {dimension_numbers = #tpu.dot_dimension_numbers<[2], [1], [1], [2], [0, 0, 0, 1, 1, 2], [0], [0]>} : vector<4x32x32xf32>, vector<4x32x16xf32>, vector<4x32x16xf32> -> vector<4x32x16xf32>
    "tpu.trace_stop"() : () -> ()
    %99 = vector.shape_cast %98 : vector<4x32x16xf32> to vector<128x16xf32>
    %100 = vector.extract_strided_slice %45 {offsets = [16, 0], sizes = [16, 64], strides = [1, 1]} : vector<64x64xf32> to vector<16x64xf32>
    %cst_35 = arith.constant dense<0.000000e+00> : vector<128x64xf32>
    %101 = tpu.matmul %99, %100, %cst_35 {dimension_numbers = #tpu.dot_dimension_numbers<[1], [0], [0], [1], [0, 0, 1, 1], [], []>} : vector<128x16xf32>, vector<16x64xf32>, vector<128x64xf32> -> vector<128x64xf32>
    %102 = arith.addf %74, %101 : vector<128x64xf32>
    %103 = vector.extract_strided_slice %36 {offsets = [0, 32], sizes = [128, 16], strides = [1, 1]} : vector<128x64xf32> to vector<128x16xf32>
    %104 = vector.shape_cast %103 : vector<128x16xf32> to vector<4x32x16xf32>
    %105 = vector.extract_strided_slice %37 {offsets = [0, 32], sizes = [128, 16], strides = [1, 1]} : vector<128x64xf32> to vector<128x16xf32>
    %106 = vector.shape_cast %105 : vector<128x16xf32> to vector<4x32x16xf32>
    %107 = vector.extract_strided_slice %38 {offsets = [0, 32], sizes = [128, 16], strides = [1, 1]} : vector<128x64xf32> to vector<128x16xf32>
    %108 = vector.shape_cast %107 : vector<128x16xf32> to vector<4x32x16xf32>
    "tpu.trace_start"() <{level = 10 : i32, message = "bqd,bkd->bqk"}> : () -> ()
    %cst_36 = arith.constant dense<0.000000e+00> : vector<4x32x32xf32>
    %109 = tpu.matmul %104, %106, %cst_36 {dimension_numbers = #tpu.dot_dimension_numbers<[2], [2], [1], [1], [0, 0, 0, 1, 1, 1], [0], [0]>} : vector<4x32x16xf32>, vector<4x32x16xf32>, vector<4x32x32xf32> -> vector<4x32x32xf32>
    "tpu.trace_stop"() : () -> ()
    %110 = vector.broadcast %44 : f32 to vector<4x32x32xf32>
    %111 = arith.mulf %109, %110 : vector<4x32x32xf32>
    %cst_37 = arith.constant 0xFF800000 : f32
    %112 = vector.shape_cast %42 : vector<1x32x32xi1> to vector<1x32x32xi1>
    %113 = vector.broadcast %112 : vector<1x32x32xi1> to vector<4x32x32xi1>
    %114 = vector.broadcast %cst_37 : f32 to vector<4x32x32xf32>
    %115 = arith.select %113, %111, %114 : vector<4x32x32xi1>, vector<4x32x32xf32>
    %cst_38 = arith.constant dense<0xFF800000> : vector<4x32xf32>
    %116 = vector.multi_reduction <maximumf>, %115, %cst_38 [2] : vector<4x32x32xf32> to vector<4x32xf32>
    %117 = vector.shape_cast %116 : vector<4x32xf32> to vector<4x32x1xf32>
    %118 = vector.broadcast %117 : vector<4x32x1xf32> to vector<4x32x32xf32>
    %119 = arith.subf %115, %118 : vector<4x32x32xf32>
    %120 = math.exp %119 : vector<4x32x32xf32>
    %cst_39 = arith.constant dense<0.000000e+00> : vector<4x32xf32>
    %121 = vector.multi_reduction <add>, %120, %cst_39 [2] : vector<4x32x32xf32> to vector<4x32xf32>
    %122 = vector.shape_cast %121 : vector<4x32xf32> to vector<4x32x1xf32>
    %123 = tpu.reciprocal %122 {approx = true} : vector<4x32x1xf32> -> vector<4x32x1xf32>
    %124 = vector.broadcast %123 : vector<4x32x1xf32> to vector<4x32x32xf32>
    %125 = arith.mulf %120, %124 : vector<4x32x32xf32>
    "tpu.trace_start"() <{level = 10 : i32, message = "bqk,bkd->bqd"}> : () -> ()
    %cst_40 = arith.constant dense<0.000000e+00> : vector<4x32x16xf32>
    %126 = tpu.matmul %125, %108, %cst_40 {dimension_numbers = #tpu.dot_dimension_numbers<[2], [1], [1], [2], [0, 0, 0, 1, 1, 2], [0], [0]>} : vector<4x32x32xf32>, vector<4x32x16xf32>, vector<4x32x16xf32> -> vector<4x32x16xf32>
    "tpu.trace_stop"() : () -> ()
    %127 = vector.shape_cast %126 : vector<4x32x16xf32> to vector<128x16xf32>
    %128 = vector.extract_strided_slice %45 {offsets = [32, 0], sizes = [16, 64], strides = [1, 1]} : vector<64x64xf32> to vector<16x64xf32>
    %cst_41 = arith.constant dense<0.000000e+00> : vector<128x64xf32>
    %129 = tpu.matmul %127, %128, %cst_41 {dimension_numbers = #tpu.dot_dimension_numbers<[1], [0], [0], [1], [0, 0, 1, 1], [], []>} : vector<128x16xf32>, vector<16x64xf32>, vector<128x64xf32> -> vector<128x64xf32>
    %130 = arith.addf %102, %129 : vector<128x64xf32>
    %131 = vector.extract_strided_slice %36 {offsets = [0, 48], sizes = [128, 16], strides = [1, 1]} : vector<128x64xf32> to vector<128x16xf32>
    %132 = vector.shape_cast %131 : vector<128x16xf32> to vector<4x32x16xf32>
    %133 = vector.extract_strided_slice %37 {offsets = [0, 48], sizes = [128, 16], strides = [1, 1]} : vector<128x64xf32> to vector<128x16xf32>
    %134 = vector.shape_cast %133 : vector<128x16xf32> to vector<4x32x16xf32>
    %135 = vector.extract_strided_slice %38 {offsets = [0, 48], sizes = [128, 16], strides = [1, 1]} : vector<128x64xf32> to vector<128x16xf32>
    %136 = vector.shape_cast %135 : vector<128x16xf32> to vector<4x32x16xf32>
    "tpu.trace_start"() <{level = 10 : i32, message = "bqd,bkd->bqk"}> : () -> ()
    %cst_42 = arith.constant dense<0.000000e+00> : vector<4x32x32xf32>
    %137 = tpu.matmul %132, %134, %cst_42 {dimension_numbers = #tpu.dot_dimension_numbers<[2], [2], [1], [1], [0, 0, 0, 1, 1, 1], [0], [0]>} : vector<4x32x16xf32>, vector<4x32x16xf32>, vector<4x32x32xf32> -> vector<4x32x32xf32>
    "tpu.trace_stop"() : () -> ()
    %138 = vector.broadcast %44 : f32 to vector<4x32x32xf32>
    %139 = arith.mulf %137, %138 : vector<4x32x32xf32>
    %cst_43 = arith.constant 0xFF800000 : f32
    %140 = vector.shape_cast %42 : vector<1x32x32xi1> to vector<1x32x32xi1>
    %141 = vector.broadcast %140 : vector<1x32x32xi1> to vector<4x32x32xi1>
    %142 = vector.broadcast %cst_43 : f32 to vector<4x32x32xf32>
    %143 = arith.select %141, %139, %142 : vector<4x32x32xi1>, vector<4x32x32xf32>
    %cst_44 = arith.constant dense<0xFF800000> : vector<4x32xf32>
    %144 = vector.multi_reduction <maximumf>, %143, %cst_44 [2] : vector<4x32x32xf32> to vector<4x32xf32>
    %145 = vector.shape_cast %144 : vector<4x32xf32> to vector<4x32x1xf32>
    %146 = vector.broadcast %145 : vector<4x32x1xf32> to vector<4x32x32xf32>
    %147 = arith.subf %143, %146 : vector<4x32x32xf32>
    %148 = math.exp %147 : vector<4x32x32xf32>
    %cst_45 = arith.constant dense<0.000000e+00> : vector<4x32xf32>
    %149 = vector.multi_reduction <add>, %148, %cst_45 [2] : vector<4x32x32xf32> to vector<4x32xf32>
    %150 = vector.shape_cast %149 : vector<4x32xf32> to vector<4x32x1xf32>
    %151 = tpu.reciprocal %150 {approx = true} : vector<4x32x1xf32> -> vector<4x32x1xf32>
    %152 = vector.broadcast %151 : vector<4x32x1xf32> to vector<4x32x32xf32>
    %153 = arith.mulf %148, %152 : vector<4x32x32xf32>
    "tpu.trace_start"() <{level = 10 : i32, message = "bqk,bkd->bqd"}> : () -> ()
    %cst_46 = arith.constant dense<0.000000e+00> : vector<4x32x16xf32>
    %154 = tpu.matmul %153, %136, %cst_46 {dimension_numbers = #tpu.dot_dimension_numbers<[2], [1], [1], [2], [0, 0, 0, 1, 1, 2], [0], [0]>} : vector<4x32x32xf32>, vector<4x32x16xf32>, vector<4x32x16xf32> -> vector<4x32x16xf32>
    "tpu.trace_stop"() : () -> ()
    %155 = vector.shape_cast %154 : vector<4x32x16xf32> to vector<128x16xf32>
    %156 = vector.extract_strided_slice %45 {offsets = [48, 0], sizes = [16, 64], strides = [1, 1]} : vector<64x64xf32> to vector<16x64xf32>
    %cst_47 = arith.constant dense<0.000000e+00> : vector<128x64xf32>
    %157 = tpu.matmul %155, %156, %cst_47 {dimension_numbers = #tpu.dot_dimension_numbers<[1], [0], [0], [1], [0, 0, 1, 1], [], []>} : vector<128x16xf32>, vector<16x64xf32>, vector<128x64xf32> -> vector<128x64xf32>
    %158 = arith.addf %130, %157 : vector<128x64xf32>
    %159 = vector.broadcast %7 : vector<1x64xf32> to vector<128x64xf32>
    %160 = arith.addf %158, %159 : vector<128x64xf32>
    %161 = arith.addf %1, %160 : vector<128x64xf32>
    %cst_48 = arith.constant dense<0.000000e+00> : vector<128xf32>
    %162 = vector.multi_reduction <add>, %161, %cst_48 [1] : vector<128x64xf32> to vector<128xf32>
    %163 = vector.shape_cast %162 : vector<128xf32> to vector<128x1xf32>
    %cst_49 = arith.constant 6.400000e+01 : f32
    %164 = vector.broadcast %cst_49 : f32 to vector<128x1xf32>
    %165 = arith.divf %163, %164 : vector<128x1xf32>
    %166 = vector.broadcast %165 : vector<128x1xf32> to vector<128x64xf32>
    %167 = arith.subf %161, %166 : vector<128x64xf32>
    %168 = arith.mulf %167, %167 : vector<128x64xf32>
    %cst_50 = arith.constant dense<0.000000e+00> : vector<128xf32>
    %169 = vector.multi_reduction <add>, %168, %cst_50 [1] : vector<128x64xf32> to vector<128xf32>
    %170 = vector.shape_cast %169 : vector<128xf32> to vector<128x1xf32>
    %cst_51 = arith.constant 6.400000e+01 : f32
    %171 = vector.broadcast %cst_51 : f32 to vector<128x1xf32>
    %172 = arith.divf %170, %171 : vector<128x1xf32>
    %173 = vector.broadcast %165 : vector<128x1xf32> to vector<128x64xf32>
    %174 = arith.subf %161, %173 : vector<128x64xf32>
    %cst_52 = arith.constant 9.99999974E-6 : f32
    %175 = vector.broadcast %cst_52 : f32 to vector<128x1xf32>
    %176 = arith.addf %172, %175 : vector<128x1xf32>
    %177 = math.rsqrt %176 : vector<128x1xf32>
    %178 = vector.broadcast %177 : vector<128x1xf32> to vector<128x64xf32>
    %179 = arith.mulf %174, %178 : vector<128x64xf32>
    %180 = vector.broadcast %4 : vector<1x64xf32> to vector<128x64xf32>
    %181 = arith.mulf %179, %180 : vector<128x64xf32>
    %182 = vector.broadcast %5 : vector<1x64xf32> to vector<128x64xf32>
    %183 = arith.addf %181, %182 : vector<128x64xf32>
    %c0_53 = arith.constant 0 : index
    %c0_54 = arith.constant 0 : index
    %184 = vector.load %arg6[%c0_53, %c0_54] : memref<64x256xf32, #tpu.memory_space<vmem>>, vector<64x256xf32>
    %cst_55 = arith.constant dense<0.000000e+00> : vector<128x256xf32>
    %185 = tpu.matmul %183, %184, %cst_55 {dimension_numbers = #tpu.dot_dimension_numbers<[1], [0], [0], [1], [0, 0, 1, 1], [], []>} : vector<128x64xf32>, vector<64x256xf32>, vector<128x256xf32> -> vector<128x256xf32>
    %186 = vector.broadcast %8 : vector<1x256xf32> to vector<128x256xf32>
    %187 = arith.addf %185, %186 : vector<128x256xf32>
    %cst_56 = arith.constant 0.000000e+00 : f32
    %188 = vector.broadcast %cst_56 : f32 to vector<128x256xf32>
    %189 = arith.maximumf %187, %188 : vector<128x256xf32>
    %c0_57 = arith.constant 0 : index
    %c0_58 = arith.constant 0 : index
    %190 = vector.load %arg7[%c0_57, %c0_58] : memref<256x64xf32, #tpu.memory_space<vmem>>, vector<256x64xf32>
    %cst_59 = arith.constant dense<0.000000e+00> : vector<128x64xf32>
    %191 = tpu.matmul %189, %190, %cst_59 {dimension_numbers = #tpu.dot_dimension_numbers<[1], [0], [0], [1], [0, 0, 1, 1], [], []>} : vector<128x256xf32>, vector<256x64xf32>, vector<128x64xf32> -> vector<128x64xf32>
    %192 = vector.broadcast %9 : vector<1x64xf32> to vector<128x64xf32>
    %193 = arith.addf %191, %192 : vector<128x64xf32>
    %194 = arith.addf %161, %193 : vector<128x64xf32>
    %195 = vector.shape_cast %194 : vector<128x64xf32> to vector<4x32x64xf32>
    %c0_60 = arith.constant 0 : index
    %c0_61 = arith.constant 0 : index
    %c0_62 = arith.constant 0 : index
    %196 = vector.load %arg8[%c0_60, %c0_61, %c0_62] : memref<4x32x64xf32, #tpu.memory_space<vmem>>, vector<4x32x64xf32>
    tpu.vector_store %arg8[%c0_60, %c0_61, %c0_62], %195 {strides = array<i32>} : memref<4x32x64xf32, #tpu.memory_space<vmem>>, vector<4x32x64xf32>,
    return
  }
  func.func @transform_0(%arg0: i32) -> (i32, i32, i32) {
    %c0_i32 = arith.constant 0 : i32
    %c0_i32_0 = arith.constant 0 : i32
    %c0_i32_1 = arith.constant 0 : i32
    return %arg0, %c0_i32, %c0_i32_0 : i32, i32, i32
  }
  func.func @transform_1(%arg0: i32) -> (i32, i32) {
    %c0_i32 = arith.constant 0 : i32
    %c0_i32_0 = arith.constant 0 : i32
    %c0_i32_1 = arith.constant 0 : i32
    return %c0_i32, %c0_i32_0 : i32, i32
  }
  func.func @transform_2(%arg0: i32) -> (i32, i32) {
    %c0_i32 = arith.constant 0 : i32
    %c0_i32_0 = arith.constant 0 : i32
    %c0_i32_1 = arith.constant 0 : i32
    return %c0_i32, %c0_i32_0 : i32, i32
  }
  func.func @transform_3(%arg0: i32) -> (i32, i32) {
    %c0_i32 = arith.constant 0 : i32
    %c0_i32_0 = arith.constant 0 : i32
    %c0_i32_1 = arith.constant 0 : i32
    return %c0_i32, %c0_i32_0 : i32, i32
  }
  func.func @transform_4(%arg0: i32) -> (i32, i32) {
    %c0_i32 = arith.constant 0 : i32
    %c0_i32_0 = arith.constant 0 : i32
    %c0_i32_1 = arith.constant 0 : i32
    return %c0_i32, %c0_i32_0 : i32, i32
  }
  func.func @transform_5(%arg0: i32) -> (i32, i32) {
    %c0_i32 = arith.constant 0 : i32
    %c0_i32_0 = arith.constant 0 : i32
    %c0_i32_1 = arith.constant 0 : i32
    return %c0_i32, %c0_i32_0 : i32, i32
  }
  func.func @transform_6(%arg0: i32) -> (i32, i32) {
    %c0_i32 = arith.constant 0 : i32
    %c0_i32_0 = arith.constant 0 : i32
    %c0_i32_1 = arith.constant 0 : i32
    return %c0_i32, %c0_i32_0 : i32, i32
  }
  func.func @transform_7(%arg0: i32) -> (i32, i32, i32) {
    %c0_i32 = arith.constant 0 : i32
    %c0_i32_0 = arith.constant 0 : i32
    %c0_i32_1 = arith.constant 0 : i32
    return %arg0, %c0_i32, %c0_i32_0 : i32, i32, i32
  }
}

</mosaic_0001>

<bundles_post_ra>
// kernel: tpu_custom_call.1
= control target key start
LH: loop header
LB: loop body
LE: loop exit
PB: predicated region body
PF: predicated region fallthrough
CT: control target
= control target key end

     0   :  { %s9200_s0 = inlined_call_operand.vmem [shape: f32[8,32,64], index: 0, kind: input, shape index: {}]   ;;  %s9201_s1 = inlined_call_operand.hbm [shape: f32[4,64], index: 1, kind: input, shape index: {}]   ;;  %s9202_s2 = inlined_call_operand.vmem [shape: f32[64,192], index: 2, kind: input, shape index: {}]   ;;  %s9203_s3 = inlined_call_operand.hbm [shape: f32[1,576], index: 3, kind: input, shape index: {}]   ;;  %s9204_s4 = inlined_call_operand.hbm [shape: f32[64,64], index: 4, kind: input, shape index: {}]   ;;  %s9205_s5 = inlined_call_operand.hbm [shape: f32[64,256], index: 5, kind: input, shape index: {}]   ;;  %s9206_s6 = inlined_call_operand.vmem [shape: f32[256,64], index: 6, kind: input, shape index: {}]   ;;  %s9207_s7 = inlined_call_operand.hbm [shape: f32[8,32,64], index: 7, kind: output, shape index: {}]  }
   0x1   :  { %9243 = sst [smem:[#allocation62_spill]] %s9201_s1 }
   0x2   :  { %9244 = sst [smem:[#allocation63_spill]] %s9203_s3 }
   0x3   :  { %12 = vsyncpa [#allocation3], 0 }
   0x4   :  { %13 = vsyncpa [#allocation6], 0 }
   0x5   :  { %14 = vsyncpa [#allocation9], 0 }
   0x6   :  { %15 = vsyncpa [#allocation4], 0 }
   0x7   :  { %17 = vsyncpa [#allocation4 + $0x1], 0  ;;  %s6212_s24 = smov 0   ;;  %s6214_s25 = smov 0  }
   0x8   :  { %s6216_s26 = smov 0   ;;  %s6218_s27 = smov 0  }
   0x9 LB: > { %s6233_s28 = sadd.s32 4294967295, %s6152_s27   ;;  %s5055_s29 = sadd.s32 4294967294, %s6152_s27   ;;  %s6152_s27 = sphi %s6218_s27, %s9401_s27   ;;  %s6148_s26 = sphi %s6216_s26, %s9400_s26   ;;  %s6144_s25 = sphi %s6214_s25, %s9399_s25   ;;  %s6140_s24 = sphi %s6212_s24, %s9398_s24  }
   0xa   : > { %s6237_s30 = sadd.s32 1, %s6152_s27   ;;  %s182_s8 = sadd.s32 1, %s6148_s26 }
   0xb   : > { %s179_s9 = ssub.s32 %s6152_s27, %s6237_s30  ;;  %p192_p0 = scmp.ne.s32.totalorder %s6148_s26, %s6144_s25 }
   0xc   : > { %p180_p1 = scmp.eq.s32.totalorder %s179_s9, 0  ;;  %p193_p2 = scmp.eq.s32.totalorder %s6233_s28, 1 }
   0xd   : > { %p198_p3 = scmp.ne.s32.totalorder %s6144_s25, %s6140_s24  ;;  %p199_p4 = scmp.eq.s32.totalorder %s5055_s29, 1 }
   0xe   : > { %s6248_s10 = scalar_select %p180_p1, %s6148_s26, %s182_s8  }
   0xf   : > { %p6250_p5 = por %p193_p2, %p192_p0  ;;  %p6254_p6 = por %p199_p4, %p198_p3 }
  0x10   : > { %9245 = sst [smem:[#allocation15_spill]] %s6248_s10  ;;  %p5056_p7 = scmp.ge.s32.totalorder %s6152_s27, 1 }
  0x11   : > { %p206_p8 = scmp.lt.s32.totalorder %s6152_s27, 3  ;;  %p5435_p9 = scmp.eq.s32.totalorder %s6233_s28, 0 }
  0x12   : > { %s9249_s3 = sld [smem:[#allocation63_spill]]  ;;  %s6154_s17 = smov [#allocation5]  }
  0x13   : > { %p6261_p10 = pnand %p5056_p7, %p206_p8  ;;  %s235_s18 = sshll.u32 %s6154_s17, 4  ;;  %s236_s18 = int_to_ptr.vmem [resolvable:$true] %s235_s18 }
  0x14   : > { %s9250_s1 = sld [smem:[#allocation62_spill]]  ;;  %s244_s8 = sshll.u32 %s9204_s4, 4  ;;  %s245_s8 = int_to_ptr.hbm [resolvable:$true] %s244_s8 }
  0x15   : > { %p5418_p11 = pneg %p6261_p10  ;;  %s6155_s9 = smov [#allocation2]  }
  0x16   : > { %s220_s14 = sshll.u32 %s6155_s9, 4  ;;  %s6156_s15 = smov [#allocation7]   ;;  %s221_s14 = int_to_ptr.vmem [resolvable:$true] %s220_s14 }
  0x17   : > { %p6275_p12 = pnand %p5435_p9, %p5418_p11  ;;  %s246_s17 = sshll.u32 %s6156_s15, 4  ;;  %s247_s17 = int_to_ptr.vmem [resolvable:$true] %s246_s17 }
  0x18   : > { %s233_s16 = sshll.u32 %s9249_s3, 4  ;;  %s6157_s3 = smov 128   ;;  %s234_s16 = int_to_ptr.hbm [resolvable:$true] %s233_s16 }
  0x19   : > { %5424 = dma.hbm_to_vmem [thread:$0]  (!%p6275_p12), %s234_s16, 80, %s236_s18, [#allocation6]  }
  0x1a   : > { %s218_s21 = sshll.u32 %s9250_s1, 4  ;;  %s258_s1 = sshll.u32 %s9205_s5, 4  ;;  %s219_s21 = int_to_ptr.hbm [resolvable:$true] %s218_s21  ;;  %s259_s1 = int_to_ptr.hbm [resolvable:$true] %s258_s1 }
  0x1b   : > { %5421 = dma.hbm_to_vmem [thread:$0]  (!%p6275_p12), %s219_s21, 64, %s221_s14, [#allocation3]  }
  0x1c   : > { %s6158_s10 = smov 8   ;;  %s6159_s23 = smov [#allocation8]  }
  0x1d   : > { %5427 = dma.hbm_to_vmem [thread:$0]  (!%p6275_p12), %s245_s8, 1024, %s247_s17, [#allocation6], %s6157_s3, %s6157_s3, %s6158_s10  }
  0x1e   : > { %s260_s29 = sshll.u32 %s6159_s23, 4  ;;  %s6160_s16 = smov 256   ;;  %s261_s29 = int_to_ptr.vmem [resolvable:$true] %s260_s29 }
  0x1f   : > { %s6161_s18 = smov 16   ;;  %289 = sbr.rel (%p6261_p10) target bundleno = 3825 (0xef1), region = 48 }
  0x20   : > { %5430 = dma.hbm_to_vmem [thread:$0]  (!%p6275_p12), %s259_s1, 2048, %s261_s29, [#allocation9], %s6160_s16, %s6160_s16, %s6161_s18  }
  0x24   : > { %6123 = dma.done.wait (%p5435_p9), [#allocation3], 64  }
  0x25   : > { %6125 = vsyncadd (%p5435_p9), [#allocation3], 4294967232 }
  0x26   : > { %6127 = dma.done.wait (%p5435_p9), [#allocation6], 1104  }
  0x27   : > { %6129 = vsyncadd (%p5435_p9), [#allocation6], 4294966192 }
  0x28   : > { %6131 = dma.done.wait (%p5435_p9), [#allocation9], 2048  }
  0x29   : > { %6133 = vsyncadd (%p5435_p9), [#allocation9], 4294965248  ;;  %s5068_s1 = sshll.u32 %s6233_s28, 2  ;;  %vm370_vm0 = vcmask 523264   ;;  %v6162_v14 = vmov 64.0   ;;  %s6163_s22 = smov 64  }
  0x2a   : > { %p339_p13 = scmp.lt.s32.totalorder %s5068_s1, 7  ;;  %5620 = vrcp.f32 %v6162_v14  ;;  %v770_v14 = vld [vmem:[%s9202_s2 + $0x30] sm:$0xff]  ;;  %s6164_s8 = smov 48  }
  0x2b   : > { %s6165_s9 = smov 112   ;;  %s6166_s14 = smov 32  }
  0x2c   : > { %s9403_s1 = smov (!%p339_p13, %s5068_s1), 7  ;;  %s6167_s15 = smov 96  }
  0x2d   : > { %s5397_s3 = sshll.u32 %s9403_s1, 5  ;;  %s6168_s17 = smov 16  }
  0x2e   : > { %s6311_s21 = scalar_lea.vmem %s9200_s0, %s5397_s3  ;;  %s6169_s19 = smov 80  }
  0x2f   : > { %v348_v0 = vld [vmem:[%s6311_s21 + $0x10] sm:$0xff]  ;;  %v346_v1 = vld [vmem:[%s6311_s21] sm:$0xff]  ;;  %v347_v6 = vld [vmem:[%s6311_s21 + $0x8] sm:$0xff]  ;;  %s6098_s13 = scalar_lea.hbm %s9207_s7, 256 }
  0x30   : > { %v6316_v2 = vld [vmem:[%s6311_s21 + $0x20] sm:$0xff]  ;;  %v377_v3 = vsel %vm370_vm0, %v348_v0, 0.0  ;;  %v371_v4 = vsel %vm370_vm0, %v346_v1, 0.0  ;;  %v349_v7 = vld [vmem:[%s6311_s21 + $0x18] sm:$0xff]  ;;  %v351_v8 = vld [vmem:[%s6311_s21 + $0x28] sm:$0xff]  ;;  %v374_v9 = vsel %vm370_vm0, %v347_v6, 0.0  ;;  %v5621_v15 = vpop.eup %5620 }
  0x31   : > { %v383_v5 = vsel %vm370_vm0, %v6316_v2, 0.0  ;;  %378 = vadd.xlane.f32.xlu1 %v377_v3  ;;  %372 = vadd.xlane.f32.xlu0 %v371_v4  ;;  %v380_v10 = vsel %vm370_vm0, %v349_v7, 0.0  ;;  %v386_v11 = vsel %vm370_vm0, %v351_v8, 0.0  ;;  %v352_v12 = vld [vmem:[%s6311_s21 + $0x30] sm:$0xff]  ;;  %v420_v16 = vmul.f32 64.0, %v5621_v15  ;;  %v6346_v36 = vld [vmem:[%s6311_s21 + $0x48] sm:$0xff] }
  0x32   : > { %384 = vadd.xlane.f32.xlu2 %v383_v5  ;;  %v389_v13 = vsel %vm370_vm0, %v352_v12, 0.0  ;;  %vm424_vm1 = vweird.f32 %v5621_v15  ;;  %v6351_v39 = vld [vmem:[%s6311_s21 + $0x38] sm:$0xff]  ;;  %v398_v41 = vsel %vm370_vm0, %v6346_v36, 0.0  ;;  %v6372_v50 = vld [vmem:[%s6311_s21 + $0x40] sm:$0xff]  ;;  %v6383_v57 = vld [vmem:[%s6311_s21 + $0x50] sm:$0xff] }
  0x33   : > { %v421_v17 = vsub.f32 1.0, %v420_v16  ;;  %v392_v44 = vsel %vm370_vm0, %v6351_v39, 0.0  ;;  %v395_v54 = vsel %vm370_vm0, %v6372_v50, 0.0  ;;  %v6388_v59 = vld [vmem:[%s6311_s21 + $0x60] sm:$0xff]  ;;  %v401_v61 = vsel %vm370_vm0, %v6383_v57, 0.0  ;;  %v6406_v4 = vld [vmem:[%s6311_s21 + $0x68] sm:$0xff] }
  0x34   : > { %v407_v62 = vsel %vm370_vm0, %v6388_v59, 0.0  ;;  %v410_v5 = vsel %vm370_vm0, %v6406_v4, 0.0  ;;  %v768_v16 = vld [vmem:[%s9202_s2 + $0x20] sm:$0xff] }
  0x35   : > { %v422_v18 = vmul.f32 %v5621_v15, %v421_v17  ;;  %v769_v17 = vld [vmem:[%s9202_s2 + $0x28] sm:$0xff] }
  0x37   : > { %v423_v19 = vadd.f32 %v5621_v15, %v422_v18  ;;  %v766_v18 = vld [vmem:[%s9202_s2 + $0x10] sm:$0xff] }
  0x39   : > { %375 = vadd.xlane.f32.xlu0 %v374_v9  ;;  %381 = vadd.xlane.f32.xlu1 %v380_v10  ;;  %v6330_v20 = vsel %vm424_vm1, %v5621_v15, %v423_v19  ;;  %v777_v9 = vld [vmem:[%s9202_s2 + $0x68] sm:$0xff]  ;;  %v774_v10 = vld [vmem:[%s9202_s2 + $0x50] sm:$0xff]  ;;  %v771_v15 = vld [vmem:[%s9202_s2 + $0x38] sm:$0xff] }
  0x3a   : > { %387 = vadd.xlane.f32.xlu2 %v386_v11  ;;  %9252 = vst [vmem:[#allocation16_spill] sm:$0xff] %v6330_v20  ;;  %v775_v11 = vld [vmem:[%s9202_s2 + $0x58] sm:$0xff] }
  0x3b   : > { %v767_v19 = vld [vmem:[%s9202_s2 + $0x18] sm:$0xff] }
  0x41   : > { %390 = vadd.xlane.f32.xlu1 %v389_v13  ;;  %v773_v13 = vld [vmem:[%s9202_s2 + $0x48] sm:$0xff] }
  0xa4   : > { %v379_v21 = vpop.xlane.xlu1 %378  ;;  %v373_v22 = vpop.xlane.xlu0 %372 }
  0xa5   : > { %v428_v23 = vmul.f32 %v6330_v20, %v379_v21  ;;  %v426_v24 = vmul.f32 %v6330_v20, %v373_v22  ;;  %v385_v25 = vpop.xlane.xlu2 %384  ;;  %v764_v21 = vld [vmem:[%s9202_s2] sm:$0xff]  ;;  %v765_v22 = vld [vmem:[%s9202_s2 + $0x8] sm:$0xff] }
  0xa6   : > { %v430_v49 = vmul.f32 %v6330_v20, %v385_v25 }
  0xa7   : > { %v6334_v26 = vsub.f32 %v348_v0, %v428_v23  ;;  %v6336_v27 = vsub.f32 %v346_v1, %v426_v24  ;;  %v6400_v1 = vld [vmem:[%s6311_s21 + $0x58] sm:$0xff] }
  0xa8   : > { %v6377_v53 = vsub.f32 %v6316_v2, %v430_v49  ;;  %v404_v3 = vsel %vm370_vm0, %v6400_v1, 0.0 }
  0xa9   : > { %v460_v28 = vmul.f32 %v6334_v26, %v6334_v26  ;;  %v458_v29 = vmul.f32 %v6336_v27, %v6336_v27 }
  0xaa   : > { %v462_v58 = vmul.f32 %v6377_v53, %v6377_v53 }
  0xab   : > { %v480_v30 = vsel %vm370_vm0, %v460_v28, 0.0  ;;  %v474_v31 = vsel %vm370_vm0, %v458_v29, 0.0 }
  0xac   : > { %481 = vadd.xlane.f32.xlu1 %v480_v30  ;;  %475 = vadd.xlane.f32.xlu0 %v474_v31  ;;  %v376_v32 = vpop.xlane.xlu0 %375  ;;  %v382_v33 = vpop.xlane.xlu1 %381  ;;  %v486_v63 = vsel %vm370_vm0, %v462_v58, 0.0 }
  0xad   : > { %v427_v34 = vmul.f32 %v6330_v20, %v376_v32  ;;  %v388_v35 = vpop.xlane.xlu2 %387  ;;  %v429_v37 = vmul.f32 %v6330_v20, %v382_v33 }
  0xae   : > { %v431_v38 = vmul.f32 %v6330_v20, %v388_v35 }
  0xaf   : > { %v6353_v40 = vsub.f32 %v347_v6, %v427_v34  ;;  %v6359_v43 = vsub.f32 %v349_v7, %v429_v37  ;;  %v778_v6 = vld [vmem:[%s9202_s2 + $0x70] sm:$0xff]  ;;  %v779_v7 = vld [vmem:[%s9202_s2 + $0x78] sm:$0xff] }
  0xb0   : > { %v6357_v42 = vsub.f32 %v351_v8, %v431_v38  ;;  %841 = vmatpush.msra.mxu0 %v778_v6  ;;  %906 = vmatpush.msra.mxu1 %v779_v7  ;;  %v776_v8 = vld [vmem:[%s9202_s2 + $0x60] sm:$0xff] }
  0xb1   : > { %v459_v45 = vmul.f32 %v6353_v40, %v6353_v40  ;;  %v461_v48 = vmul.f32 %v6359_v43, %v6359_v43 }
  0xb2   : > { %v463_v47 = vmul.f32 %v6357_v42, %v6357_v42  ;;  %842 = vmatpush.msra.mxu0 %v776_v8  ;;  %907 = vmatpush.msra.mxu1 %v777_v9 }
  0xb3   : > { %v477_v46 = vsel %vm370_vm0, %v459_v45, 0.0  ;;  %v483_v52 = vsel %vm370_vm0, %v461_v48, 0.0 }
  0xb4   : > { %399 = vadd.xlane.f32.xlu1 %v398_v41  ;;  %393 = vadd.xlane.f32.xlu0 %v392_v44  ;;  %v489_v51 = vsel %vm370_vm0, %v463_v47, 0.0  ;;  %v391_v55 = vpop.xlane.xlu1 %390 }
  0xb5   : > { %478 = vadd.xlane.f32.xlu2 %v477_v46  ;;  %v432_v56 = vmul.f32 %v6330_v20, %v391_v55  ;;  %843 = vmatpush.msra.mxu0 %v774_v10 }
  0xb6   : > { %908 = vmatpush.msra.mxu1 %v775_v11 }
  0xb7   : > { %v6390_v60 = vsub.f32 %v352_v12, %v432_v56  ;;  %v772_v12 = vld [vmem:[%s9202_s2 + $0x40] sm:$0xff] }
  0xb8   : > { %844 = vmatpush.msra.mxu0 %v772_v12  ;;  %909 = vmatpush.msra.mxu1 %v773_v13  ;;  %v6503_v13 = vld [vmem:[#allocation2] ss:$0 sm:$0xff] }
  0xb9   : > { %v464_v0 = vmul.f32 %v6390_v60, %v6390_v60 }
  0xba   : > { %845 = vmatpush.msra.mxu0 %v770_v14  ;;  %910 = vmatpush.msra.mxu1 %v771_v15 }
  0xbb   : > { %v492_v2 = vsel %vm370_vm0, %v464_v0, 0.0 }
  0xbc   : > { %490 = vadd.xlane.f32.xlu1 %v489_v51  ;;  %484 = vadd.xlane.f32.xlu0 %v483_v52 }
  0xbd   : > { %396 = vadd.xlane.f32.xlu2 %v395_v54  ;;  %846 = vmatpush.msra.mxu0 %v768_v16 }
  0xbe   : > { %911 = vmatpush.msra.mxu1 %v769_v17 }
  0xbf   : > { %847 = vmatpush.msra.mxu0 %v766_v18 }
  0xc0   : > { %912 = vmatpush.msra.mxu1 %v767_v19  ;;  %v6509_v19 = vld [vmem:[#allocation2 + $0x1] ss:$0 sm:$0xff] }
  0xc1   : > { %848 = vmatpush.msra.mxu0 %v764_v21 }
  0xc2   : > { %913 = vmatpush.msra.mxu1 %v765_v22 }
  0xc4   : > { %402 = vadd.xlane.f32.xlu0 %v401_v61  ;;  %408 = vadd.xlane.f32.xlu1 %v407_v62 }
  0xc5   : > { %487 = vadd.xlane.f32.xlu2 %v486_v63  ;;  %v6488_v63 = vld [vmem:[%s6311_s21 + $0x70] sm:$0xff] }
  0xc6   : > { %v413_v8 = vsel %vm370_vm0, %v6488_v63, 0.0 }
  0xcc   : > { %493 = vadd.xlane.f32.xlu0 %v492_v2 }
  0xcd   : > { %405 = vadd.xlane.f32.xlu2 %v404_v3 }
  0xd4   : > { %411 = vadd.xlane.f32.xlu0 %v410_v5 }
 0x11f   : > { %v482_v23 = vpop.xlane.xlu1 %481  ;;  %v476_v24 = vpop.xlane.xlu0 %475 }
 0x120   : > { %v524_v25 = vmul.f32 %v482_v23, %v6330_v20  ;;  %v522_v28 = vmul.f32 %v476_v24, %v6330_v20 }
 0x122   : > { %v6460_v29 = vadd.f32 1e-05, %v524_v25  ;;  %v538_v30 = vadd.f32 1e-05, %v522_v28 }
 0x124   : > { %5622 = vrsqrt.f32 %v6460_v29  ;;  %vm560_vm3 = vweird.f32 %v538_v30  ;;  %vm580_vm5 = vweird.f32 %v6460_v29 }
 0x125   : > { %5624 = vrsqrt.f32 %v538_v30 }
 0x127   : > { %v400_v31 = vpop.xlane.xlu1 %399  ;;  %v394_v32 = vpop.xlane.xlu0 %393 }
 0x128   : > { %v435_v33 = vmul.f32 %v6330_v20, %v400_v31  ;;  %v479_v34 = vpop.xlane.xlu2 %478  ;;  %v433_v35 = vmul.f32 %v6330_v20, %v394_v32 }
 0x129   : > { %v523_v37 = vmul.f32 %v479_v34, %v6330_v20 }
 0x12a   : > { %v6466_v38 = vpop.eup %5622  ;;  %v6469_v41 = vsub.f32 %v6346_v36, %v435_v33  ;;  %v6472_v44 = vsub.f32 %v6351_v39, %v433_v35  ;;  %v6522_v33 = vld [vmem:[%s6311_s21 + $0x78] sm:$0xff] }
 0x12b   : > { %v5625_v45 = vpop.eup %5624  ;;  %v6474_v46 = vadd.f32 1e-05, %v523_v37  ;;  %v575_v47 = vmul.f32 %v6466_v38, %v6460_v29  ;;  %vm581_vm6 = vweird.f32 %v6466_v38 }
 0x12c   : > { %v555_v48 = vmul.f32 %v5625_v45, %v538_v30  ;;  %v467_v49 = vmul.f32 %v6469_v41, %v6469_v41  ;;  %v465_v51 = vmul.f32 %v6472_v44, %v6472_v44  ;;  %vm561_vm2 = vweird.f32 %v5625_v45  ;;  %vm6533_vm9 = vmor %vm580_vm5, %vm581_vm6 }
 0x12d   : > { %5626 = vrsqrt.f32 %v6474_v46  ;;  %v576_v56 = vmul.f32 %v6466_v38, %v575_v47  ;;  %vm562_vm4 = vmor %vm560_vm3, %vm561_vm2  ;;  %vm570_vm8 = vweird.f32 %v6474_v46 }
 0x12e   : > { %v556_v36 = vmul.f32 %v5625_v45, %v555_v48  ;;  %v501_v39 = vsel %vm370_vm0, %v467_v49, 0.0  ;;  %v495_v52 = vsel %vm370_vm0, %v465_v51, 0.0 }
 0x12f   : > { %v491_v54 = vpop.xlane.xlu1 %490  ;;  %502 = vadd.xlane.f32.xlu0 %v501_v39  ;;  %496 = vadd.xlane.f32.xlu2 %v495_v52  ;;  %v485_v55 = vpop.xlane.xlu0 %484  ;;  %v577_v9 = vmul.f32 0.5, %v576_v56 }
 0x130   : > { %v557_v58 = vmul.f32 0.5, %v556_v36  ;;  %v397_v61 = vpop.xlane.xlu2 %396  ;;  %v525_v62 = vmul.f32 %v485_v55, %v6330_v20  ;;  %v527_v3 = vmul.f32 %v491_v54, %v6330_v20 }
 0x131   : > { %v434_v0 = vmul.f32 %v6330_v20, %v397_v61  ;;  %v578_v22 = vsub.f32 1.5, %v577_v9 }
 0x132   : > { %v558_v2 = vsub.f32 1.5, %v557_v58  ;;  %v6492_v5 = vadd.f32 1e-05, %v525_v62  ;;  %v6505_v15 = vadd.f32 1e-05, %v527_v3 }
 0x133   : > { %v5627_v6 = vpop.eup %5626  ;;  %v6495_v7 = vsub.f32 %v6372_v50, %v434_v0 }
 0x134   : > { %v559_v10 = vmul.f32 %v5625_v45, %v558_v2  ;;  %v565_v11 = vmul.f32 %v5627_v6, %v6474_v46  ;;  %5628 = vrsqrt.f32 %v6492_v5  ;;  %vm571_vm7 = vweird.f32 %v5627_v6 }
 0x135   : > { %v466_v12 = vmul.f32 %v6495_v7, %v6495_v7  ;;  %5630 = vrsqrt.f32 %v6505_v15  ;;  %vm572_vm10 = vmor %vm570_vm8, %vm571_vm7  ;;  %v416_v46 = vsel %vm370_vm0, %v6522_v33, 0.0  ;;  %vm590_vm11 = vweird.f32 %v6492_v5 }
 0x136   : > { %v566_v14 = vmul.f32 %v5627_v6, %v565_v11  ;;  %v563_v50 = vsel %vm562_vm4, %v5625_v45, %v559_v10  ;;  %v579_v45 = vmul.f32 %v6466_v38, %v578_v22  ;;  %vm610_vm2 = vweird.f32 %v6505_v15 }
 0x137   : > { %v498_v16 = vsel %vm370_vm0, %v466_v12, 0.0  ;;  %414 = vadd.xlane.f32.xlu2 %v413_v8  ;;  %v403_v17 = vpop.xlane.xlu0 %402  ;;  %v714_v18 = vmul.f32 %v563_v50, %v6336_v27  ;;  %v409_v21 = vpop.xlane.xlu1 %408 }
 0x138   : > { %v567_v23 = vmul.f32 0.5, %v566_v14  ;;  %499 = vadd.xlane.f32.xlu1 %v498_v16  ;;  %v488_v24 = vpop.xlane.xlu2 %487  ;;  %v436_v25 = vmul.f32 %v6330_v20, %v403_v17  ;;  %v438_v27 = vmul.f32 %v6330_v20, %v409_v21  ;;  %v583_v61 = vsel %vm6533_vm9, %v6466_v38, %v579_v45 }
 0x139   : > { %v526_v28 = vmul.f32 %v488_v24, %v6330_v20  ;;  %v731_v30 = vmul.f32 %v6503_v13, %v714_v18  ;;  %v716_v10 = vmul.f32 %v583_v61, %v6334_v26 }
 0x13a   : > { %v568_v31 = vsub.f32 1.5, %v567_v23  ;;  %v6519_v32 = vsub.f32 %v6383_v57, %v436_v25  ;;  %v6524_v34 = vpop.eup %5628  ;;  %v6545_v29 = vsub.f32 %v6388_v59, %v438_v27 }
 0x13b   : > { %v6527_v35 = vadd.f32 1e-05, %v526_v28  ;;  %v748_v37 = vadd.f32 %v6509_v19, %v731_v30  ;;  %v585_v48 = vmul.f32 %v6524_v34, %v6492_v5  ;;  %v6552_v55 = vpop.eup %5630  ;;  %vm591_vm12 = vweird.f32 %v6524_v34 }
 0x13c   : > { %v569_v57 = vmul.f32 %v5627_v6, %v568_v31  ;;  %v468_v49 = vmul.f32 %v6519_v32, %v6519_v32  ;;  %v470_v2 = vmul.f32 %v6545_v29, %v6545_v29  ;;  %v605_v8 = vmul.f32 %v6552_v55, %v6505_v15  ;;  %vm6580_vm13 = vmor %vm590_vm11, %vm591_vm12 }
 0x13d   : > { %5632 = vrsqrt.f32 %v6527_v35  ;;  %5071 = vmatmul.msk.f32.vlgmr.msra.gmra.mxu0 %vm370_vm0, %v748_v37  ;;  %5087 = vmatmul.msk.f32.vlgmr.msra.gmra.mxu1 %vm370_vm0, %v748_v37  ;;  %v586_v51 = vmul.f32 %v6524_v34, %v585_v48  ;;  %v733_v18 = vmul.f32 %v6503_v13, %v716_v10  ;;  %vm600_vm14 = vweird.f32 %v6527_v35 }
 0x13e   : > { %v504_v36 = vsel %vm370_vm0, %v468_v49, 0.0  ;;  %v573_v39 = vsel %vm572_vm10, %v5627_v6, %v569_v57  ;;  %v510_v14 = vsel %vm370_vm0, %v470_v2, 0.0  ;;  %v606_v21 = vmul.f32 %v6552_v55, %v605_v8 }
 0x13f   : > { %505 = vadd.xlane.f32.xlu2 %v504_v36  ;;  %v494_v52 = vpop.xlane.xlu0 %493  ;;  %v715_v54 = vmul.f32 %v573_v39, %v6353_v40  ;;  %v587_v56 = vmul.f32 0.5, %v586_v51  ;;  %v750_v30 = vadd.f32 %v6509_v19, %v733_v18  ;;  %vm611_vm3 = vweird.f32 %v6552_v55 }
 0x140   : > { %417 = vadd.xlane.f32.xlu1 %v416_v46  ;;  %v406_v58 = vpop.xlane.xlu2 %405  ;;  %v528_v59 = vmul.f32 %v494_v52, %v6330_v20  ;;  %v607_v31 = vmul.f32 0.5, %v606_v21  ;;  %vm612_vm4 = vmor %vm610_vm2, %vm611_vm3 }
 0x141   : > { %v437_v62 = vmul.f32 %v6330_v20, %v406_v58  ;;  %v732_v0 = vmul.f32 %v6503_v13, %v715_v54  ;;  %v588_v3 = vsub.f32 1.5, %v587_v56 }
 0x142   : > { %v544_v40 = vadd.f32 1e-05, %v528_v59 }
 0x143   : > { %v5633_v6 = vpop.eup %5632  ;;  %v6566_v9 = vsub.f32 %v6400_v1, %v437_v62  ;;  %v749_v38 = vadd.f32 %v6509_v19, %v732_v0  ;;  %v589_v11 = vmul.f32 %v6524_v34, %v588_v3 }
 0x144   : > { %v595_v12 = vmul.f32 %v5633_v6, %v6527_v35  ;;  %5634 = vrsqrt.f32 %v544_v40  ;;  %vm601_vm15 = vweird.f32 %v5633_v6  ;;  %v608_v35 = vsub.f32 1.5, %v607_v31 }
 0x145   : > { %5072 = vmatmul.msk.f32.gmra.mxu0 %vm370_vm0, %v749_v38  ;;  %5088 = vmatmul.msk.f32.gmra.mxu1 %vm370_vm0, %v749_v38  ;;  %v469_v1 = vmul.f32 %v6566_v9, %v6566_v9  ;;  %v593_v5 = vsel %vm6580_vm13, %v6524_v34, %v589_v11  ;;  %vm602_vm1 = vmor %vm600_vm14, %vm601_vm15  ;;  %vm620_vm5 = vweird.f32 %v544_v40 }
 0x146   : > { %v596_v50 = vmul.f32 %v5633_v6, %v595_v12  ;;  %v717_v27 = vmul.f32 %v593_v5, %v6359_v43  ;;  %v609_v46 = vmul.f32 %v6552_v55, %v608_v35 }
 0x147   : > { %v507_v16 = vsel %vm370_vm0, %v469_v1, 0.0  ;;  %v412_v17 = vpop.xlane.xlu0 %411 }
 0x148   : > { %v597_v22 = vmul.f32 0.5, %v596_v50  ;;  %511 = vadd.xlane.f32.xlu1 %v510_v14  ;;  %508 = vadd.xlane.f32.xlu0 %v507_v16  ;;  %v439_v23 = vmul.f32 %v6330_v20, %v412_v17  ;;  %v613_v52 = vsel %vm612_vm4, %v6552_v55, %v609_v46 }
 0x149   : > { %v719_v54 = vmul.f32 %v613_v52, %v6357_v42 }
 0x14a   : > { %v5635_v24 = vpop.eup %5634  ;;  %v598_v25 = vsub.f32 1.5, %v597_v22  ;;  %v6593_v28 = vsub.f32 %v6406_v4, %v439_v23  ;;  %v734_v4 = vmul.f32 %v6503_v13, %v717_v27 }
 0x14b   : > { %v615_v45 = vmul.f32 %v5635_v24, %v544_v40  ;;  %vm621_vm6 = vweird.f32 %v5635_v24  ;;  %v736_v56 = vmul.f32 %v6503_v13, %v719_v54 }
 0x14c   : > { %v599_v37 = vmul.f32 %v5633_v6, %v598_v25  ;;  %v471_v47 = vmul.f32 %v6593_v28, %v6593_v28  ;;  %v751_v43 = vadd.f32 %v6509_v19, %v734_v4  ;;  %vm622_vm7 = vmor %vm620_vm5, %vm621_vm6 }
 0x14d   : > { %5073 = vmatmul.msk.f32.gmra.mxu0 %vm370_vm0, %v750_v30  ;;  %5089 = vmatmul.msk.f32.gmra.mxu1 %vm370_vm0, %v750_v30  ;;  %v616_v57 = vmul.f32 %v5635_v24, %v615_v45  ;;  %v753_v59 = vadd.f32 %v6509_v19, %v736_v56  ;;  %v6645_v30 = vld [vmem:[#allocation5] sm:$0x3] }
 0x14e   : > { %v513_v34 = vsel %vm370_vm0, %v471_v47, 0.0  ;;  %v603_v48 = vsel %vm602_vm1, %v5633_v6, %v599_v37  ;;  %v6654_v4 = vperm.slane %v6645_v30, 0 }
 0x14f   : > { %514 = vadd.xlane.f32.xlu2 %v513_v34  ;;  %v718_v49 = vmul.f32 %v603_v48, %v6377_v53  ;;  %v617_v51 = vmul.f32 0.5, %v616_v57 }
 0x151   : > { %v735_v36 = vmul.f32 %v6503_v13, %v718_v49  ;;  %v618_v39 = vsub.f32 1.5, %v617_v51 }
 0x153   : > { %v752_v15 = vadd.f32 %v6509_v19, %v735_v36  ;;  %v619_v53 = vmul.f32 %v5635_v24, %v618_v39 }
 0x155   : > { %5074 = vmatmul.msk.f32.gmra.mxu0 %vm370_vm0, %v751_v43  ;;  %5090 = vmatmul.msk.f32.gmra.mxu1 %vm370_vm0, %v751_v43  ;;  %v623_v58 = vsel %vm622_vm7, %v5635_v24, %v619_v53 }
 0x156   : > { %v720_v61 = vmul.f32 %v623_v58, %v6390_v60 }
 0x158   : > { %v737_v55 = vmul.f32 %v6503_v13, %v720_v61 }
 0x15a   : > { %v754_v42 = vadd.f32 %v6509_v19, %v737_v55 }
 0x15d   : > { %5075 = vmatmul.msk.f32.gmra.mxu0 %vm370_vm0, %v752_v15  ;;  %5091 = vmatmul.msk.f32.gmra.mxu1 %vm370_vm0, %v752_v15 }
 0x165   : > { %5076 = vmatmul.msk.f32.gmra.mxu0 %vm370_vm0, %v753_v59  ;;  %5092 = vmatmul.msk.f32.gmra.mxu1 %vm370_vm0, %v753_v59 }
 0x16d   : > { %5077 = vmatmul.msk.f32.gmra.mxu0 %vm370_vm0, %v754_v42  ;;  %5093 = vmatmul.msk.f32.gmra.mxu1 %vm370_vm0, %v754_v42 }
 0x1a2   : > { %v497_v62 = vpop.xlane.xlu2 %496  ;;  %v503_v0 = vpop.xlane.xlu0 %502 }
 0x1a3   : > { %v529_v2 = vmul.f32 %v497_v62, %v6330_v20  ;;  %v531_v3 = vmul.f32 %v503_v0, %v6330_v20 }
 0x1a5   : > { %v545_v40 = vadd.f32 1e-05, %v529_v2  ;;  %v6627_v60 = vadd.f32 1e-05, %v531_v3 }
 0x1a7   : > { %5636 = vrsqrt.f32 %v545_v40  ;;  %vm630_vm9 = vweird.f32 %v545_v40  ;;  %vm650_vm11 = vweird.f32 %v6627_v60 }
 0x1a8   : > { %5638 = vrsqrt.f32 %v6627_v60 }
 0x1aa   : > { %v415_v6 = vpop.xlane.xlu2 %414 }
 0x1ab   : > { %v500_v8 = vpop.xlane.xlu1 %499  ;;  %v440_v38 = vmul.f32 %v6330_v20, %v415_v6 }
 0x1ac   : > { %v530_v10 = vmul.f32 %v500_v8, %v6330_v20 }
 0x1ad   : > { %v5637_v11 = vpop.eup %5636  ;;  %v6633_v12 = vsub.f32 %v6488_v63, %v440_v38 }
 0x1ae   : > { %v6635_v14 = vpop.eup %5638  ;;  %v625_v1 = vmul.f32 %v5637_v11, %v545_v40  ;;  %v546_v50 = vadd.f32 1e-05, %v530_v10  ;;  %vm631_vm8 = vweird.f32 %v5637_v11 }
 0x1af   : > { %v645_v26 = vmul.f32 %v6635_v14, %v6627_v60  ;;  %v472_v16 = vmul.f32 %v6633_v12, %v6633_v12  ;;  %vm632_vm10 = vmor %vm630_vm9, %vm631_vm8  ;;  %vm651_vm12 = vweird.f32 %v6635_v14 }
 0x1b0   : > { %v626_v17 = vmul.f32 %v5637_v11, %v625_v1  ;;  %5640 = vrsqrt.f32 %v546_v50  ;;  %vm6675_vm14 = vmor %vm650_vm11, %vm651_vm12  ;;  %vm640_vm15 = vweird.f32 %v546_v50 }
 0x1b1   : > { %v516_v18 = vsel %vm370_vm0, %v472_v16, 0.0  ;;  %v646_v63 = vmul.f32 %v6635_v14, %v645_v26 }
 0x1b2   : > { %v627_v21 = vmul.f32 0.5, %v626_v17  ;;  %517 = vadd.xlane.f32.xlu0 %v516_v18  ;;  %v506_v22 = vpop.xlane.xlu2 %505 }
 0x1b3   : > { %v418_v23 = vpop.xlane.xlu1 %417  ;;  %v532_v5 = vmul.f32 %v506_v22, %v6330_v20  ;;  %v647_v47 = vmul.f32 0.5, %v646_v63 }
 0x1b4   : > { %v628_v24 = vsub.f32 1.5, %v627_v21  ;;  %v441_v25 = vmul.f32 %v6330_v20, %v418_v23 }
 0x1b5   : > { %v6647_v27 = vadd.f32 1e-05, %v532_v5 }
 0x1b6   : > { %v5641_v31 = vpop.eup %5640  ;;  %v629_v37 = vmul.f32 %v5637_v11, %v628_v24  ;;  %v6650_v45 = vsub.f32 %v6522_v33, %v441_v25  ;;  %v648_v33 = vsub.f32 1.5, %v647_v47 }
 0x1b7   : > { %v635_v34 = vmul.f32 %v5641_v31, %v546_v50  ;;  %5642 = vrsqrt.f32 %v6647_v27  ;;  %vm641_vm13 = vweird.f32 %v5641_v31  ;;  %vm660_vm2 = vweird.f32 %v6647_v27 }
 0x1b8   : > { %v473_v35 = vmul.f32 %v6650_v45, %v6650_v45  ;;  %v633_v57 = vsel %vm632_vm10, %v5637_v11, %v629_v37  ;;  %v649_v42 = vmul.f32 %v6635_v14, %v648_v33  ;;  %vm642_vm1 = vmor %vm640_vm15, %vm641_vm13 }
 0x1b9   : > { %v636_v48 = vmul.f32 %v5641_v31, %v635_v34  ;;  %v721_v43 = vmul.f32 %v633_v57, %v6472_v44 }
 0x1ba   : > { %v850_v49 = vpop.f32.mrf.mxu0  ;;  %v519_v46 = vsel %vm370_vm0, %v473_v35, 0.0  ;;  %v653_v38 = vsel %vm6675_vm14, %v6635_v14, %v649_v42  ;;  %vm994_vm14 = vcmask 130048  }
 0x1bb   : > { %v637_v51 = vmul.f32 0.5, %v636_v48  ;;  %v6661_v36 = vadd.f32 %v850_v49, %v6654_v4  ;;  %520 = vadd.xlane.f32.xlu1 %v519_v46  ;;  %v512_v39 = vpop.xlane.xlu1 %511  ;;  %v509_v52 = vpop.xlane.xlu0 %508  ;;  %v738_v15 = vmul.f32 %v6503_v13, %v721_v43  ;;  %v723_v17 = vmul.f32 %v653_v38, %v6469_v41 }
 0x1bc   : > { %v534_v54 = vmul.f32 %v512_v39, %v6330_v20  ;;  %v533_v44 = vmul.f32 %v509_v52, %v6330_v20 }
 0x1bd   : > { %9257 = vst [vmem:[#allocation17_spill] sm:$0xff] %v6661_v36  ;;  %v5643_v53 = vpop.eup %5642  ;;  %v638_v56 = vsub.f32 1.5, %v637_v51  ;;  %986 = vrot.lane.b32.xlu2 %v6661_v36, %s6163_s22  ;;  %v755_v58 = vadd.f32 %v6509_v19, %v738_v15  ;;  %v740_v23 = vmul.f32 %v6503_v13, %v723_v17 }
 0x1be   : > { %v655_v59 = vmul.f32 %v5643_v53, %v6647_v27  ;;  %v6672_v61 = vadd.f32 1e-05, %v534_v54  ;;  %v549_v55 = vadd.f32 1e-05, %v533_v44  ;;  %vm661_vm3 = vweird.f32 %v5643_v53 }
 0x1bf   : > { %v639_v0 = vmul.f32 %v5641_v31, %v638_v56  ;;  %5078 = vmatmul.msk.f32.gmra.mxu0 %vm370_vm0, %v755_v58  ;;  %5094 = vmatmul.msk.f32.gmra.mxu1 %vm370_vm0, %v755_v58  ;;  %vm662_vm4 = vmor %vm660_vm2, %vm661_vm3  ;;  %v757_v37 = vadd.f32 %v6509_v19, %v740_v23 }
 0x1c0   : > { %v656_v2 = vmul.f32 %v5643_v53, %v655_v59  ;;  %5644 = vrsqrt.f32 %v6672_v61  ;;  %vm670_vm5 = vweird.f32 %v549_v55  ;;  %vm680_vm8 = vweird.f32 %v6672_v61 }
 0x1c1   : > { %5646 = vrsqrt.f32 %v549_v55  ;;  %v643_v3 = vsel %vm642_vm1, %v5641_v31, %v639_v0 }
 0x1c2   : > { %v657_v40 = vmul.f32 0.5, %v656_v2  ;;  %v853_v60 = vpop.f32.mrf.mxu0  ;;  %v722_v6 = vmul.f32 %v643_v3, %v6495_v7  ;;  %v515_v8 = vpop.xlane.xlu2 %514 }
 0x1c3   : > { %v535_v11 = vmul.f32 %v515_v8, %v6330_v20  ;;  %v6705_v48 = vadd.f32 %v853_v60, %v6654_v4 }
 0x1c4   : > { %v658_v10 = vsub.f32 1.5, %v657_v40  ;;  %v739_v1 = vmul.f32 %v6503_v13, %v722_v6 }
 0x1c5   : > { %v551_v26 = vadd.f32 1e-05, %v535_v11  ;;  %9260 = vst [vmem:[#allocation18_spill] sm:$0xff] %v6705_v48 }
 0x1c6   : > { %v5645_v50 = vpop.eup %5644  ;;  %v756_v16 = vadd.f32 %v6509_v19, %v739_v1  ;;  %v659_v21 = vmul.f32 %v5643_v53, %v658_v10 }
 0x1c7   : > { %v5647_v18 = vpop.eup %5646  ;;  %v675_v7 = vmul.f32 %v5645_v50, %v6672_v61  ;;  %5648 = vrsqrt.f32 %v551_v26  ;;  %vm681_vm9 = vweird.f32 %v5645_v50  ;;  %vm690_vm11 = vweird.f32 %v551_v26 }
 0x1c8   : > { %v665_v22 = vmul.f32 %v5647_v18, %v549_v55  ;;  %5079 = vmatmul.msk.f32.gmra.mxu0 %vm370_vm0, %v756_v16  ;;  %5095 = vmatmul.msk.f32.gmra.mxu1 %vm370_vm0, %v756_v16  ;;  %v663_v24 = vsel %vm662_vm4, %v5643_v53, %v659_v21  ;;  %vm671_vm6 = vweird.f32 %v5647_v18  ;;  %vm682_vm10 = vmor %vm680_vm8, %vm681_vm9  ;;  %vm1251_vm9 = vcmask 261120  }
 0x1c9   : > { %v676_v5 = vmul.f32 %v5645_v50, %v675_v7  ;;  %v724_v47 = vmul.f32 %v663_v24, %v6519_v32  ;;  %vm672_vm7 = vmor %vm670_vm5, %vm671_vm6 }
 0x1ca   : > { %v666_v14 = vmul.f32 %v5647_v18, %v665_v22  ;;  %v856_v63 = vpop.f32.mrf.mxu0 }
 0x1cb   : > { %v6696_v41 = vadd.f32 %v856_v63, %v6654_v4  ;;  %v677_v34 = vmul.f32 0.5, %v676_v5  ;;  %v741_v49 = vmul.f32 %v6503_v13, %v724_v47 }
 0x1cc   : > { %v667_v25 = vmul.f32 0.5, %v666_v14 }
 0x1cd   : > { %990 = vrot.lane.b32.xlu0 %v6696_v41, %s6163_s22  ;;  %v5649_v27 = vpop.eup %5648  ;;  %v678_v46 = vsub.f32 1.5, %v677_v34  ;;  %v758_v39 = vadd.f32 %v6509_v19, %v741_v49  ;;  %v6763_v34 = vperm.slane %v6645_v30, 1 }
 0x1ce   : > { %v668_v31 = vsub.f32 1.5, %v667_v25  ;;  %v685_v35 = vmul.f32 %v5649_v27, %v551_v26  ;;  %vm691_vm12 = vweird.f32 %v5649_v27 }
 0x1cf   : > { %v679_v15 = vmul.f32 %v5645_v50, %v678_v46  ;;  %vm692_vm13 = vmor %vm690_vm11, %vm691_vm12 }
 0x1d0   : > { %v669_v57 = vmul.f32 %v5647_v18, %v668_v31  ;;  %5080 = vmatmul.msk.f32.gmra.mxu0 %vm370_vm0, %v757_v37  ;;  %5096 = vmatmul.msk.f32.gmra.mxu1 %vm370_vm0, %v757_v37  ;;  %v686_v33 = vmul.f32 %v5649_v27, %v685_v35 }
 0x1d1   : > { %v683_v59 = vsel %vm682_vm10, %v5645_v50, %v679_v15 }
 0x1d2   : > { %v859_v43 = vpop.f32.mrf.mxu0  ;;  %v673_v32 = vsel %vm672_vm7, %v5647_v18, %v669_v57  ;;  %v687_v54 = vmul.f32 0.5, %v686_v33  ;;  %v726_v61 = vmul.f32 %v683_v59, %v6545_v29 }
 0x1d3   : > { %v6709_v51 = vadd.f32 %v859_v43, %v6654_v4  ;;  %v725_v52 = vmul.f32 %v673_v32, %v6566_v9 }
 0x1d4   : > { %988 = vrot.lane.b32.xlu1 %v6705_v48, %s6163_s22  ;;  %v688_v56 = vsub.f32 1.5, %v687_v54  ;;  %v743_v62 = vmul.f32 %v6503_v13, %v726_v61 }
 0x1d5   : > { %9261 = vst [vmem:[#allocation19_spill] sm:$0xff] %v6709_v51  ;;  %992 = vrot.lane.b32.xlu2 %v6709_v51, %s6163_s22  ;;  %v742_v53 = vmul.f32 %v6503_v13, %v725_v52 }
 0x1d6   : > { %v689_v55 = vmul.f32 %v5649_v27, %v688_v56  ;;  %v760_v3 = vadd.f32 %v6509_v19, %v743_v62 }
 0x1d7   : > { %v759_v9 = vadd.f32 %v6509_v19, %v742_v53 }
 0x1d8   : > { %5081 = vmatmul.msk.f32.gmra.mxu0 %vm370_vm0, %v758_v39  ;;  %5097 = vmatmul.msk.f32.gmra.mxu1 %vm370_vm0, %v758_v39  ;;  %v693_v2 = vsel %vm692_vm13, %v5649_v27, %v689_v55 }
 0x1d9   : > { %v727_v29 = vmul.f32 %v693_v2, %v6593_v28  ;;  %v6749_v28 = vpop.f32.mrf.mxu1 }
 0x1da   : > { %v862_v44 = vpop.f32.mrf.mxu0 }
 0x1db   : > { %v6722_v58 = vadd.f32 %v862_v44, %v6654_v4  ;;  %v744_v60 = vmul.f32 %v6503_v13, %v727_v29 }
 0x1dd   : > { %9262 = vst [vmem:[#allocation20_spill] sm:$0xff] %v6722_v58  ;;  %1044 = vrot.lane.b32.xlu2 %v6722_v58, %s6163_s22  ;;  %v761_v8 = vadd.f32 %v6509_v19, %v744_v60 }
 0x1e0   : > { %5082 = vmatmul.msk.f32.gmra.mxu0 %vm370_vm0, %v759_v9  ;;  %5098 = vmatmul.msk.f32.gmra.mxu1 %vm370_vm0, %v759_v9 }
 0x1e1   : > { %v6751_v38 = vpop.f32.mrf.mxu1 }
 0x1e2   : > { %v865_v42 = vpop.f32.mrf.mxu0 }
 0x1e3   : > { %v6732_v0 = vadd.f32 %v865_v42, %v6654_v4 }
 0x1e5   : > { %9263 = vst [vmem:[#allocation21_spill] sm:$0xff] %v6732_v0  ;;  %1046 = vrot.lane.b32.xlu0 %v6732_v0, %s6163_s22 }
 0x1e8   : > { %5083 = vmatmul.msk.f32.gmra.mxu0 %vm370_vm0, %v760_v3  ;;  %5099 = vmatmul.msk.f32.gmra.mxu1 %vm370_vm0, %v760_v3 }
 0x1e9   : > { %v6753_v10 = vpop.f32.mrf.mxu1 }
 0x1ea   : > { %v868_v40 = vpop.f32.mrf.mxu0 }
 0x1eb   : > { %v6742_v6 = vadd.f32 %v868_v40, %v6654_v4 }
 0x1ed   : > { %1048 = vrot.lane.b32.xlu1 %v6742_v6, %s6163_s22 }
 0x1f0   : > { %5084 = vmatmul.msk.f32.gmra.mxu0 %vm370_vm0, %v761_v8  ;;  %5100 = vmatmul.msk.f32.gmra.mxu1 %vm370_vm0, %v761_v8 }
 0x1f1   : > { %v6755_v11 = vpop.f32.mrf.mxu1 }
 0x1f9   : > { %v927_v1 = vpop.f32.mrf.mxu1 }
 0x1fa   : > { %v6792_v59 = vadd.f32 %v927_v1, %v6763_v34 }
 0x201   : > { %v930_v18 = vpop.f32.mrf.mxu1 }
 0x202   : > { %v6786_v53 = vadd.f32 %v930_v18, %v6763_v34 }
 0x209   : > { %v933_v24 = vpop.f32.mrf.mxu1 }
 0x20a   : > { %v6767_v33 = vadd.f32 %v933_v24, %v6763_v34 }
 0x20c   : > { %9264 = vst [vmem:[#allocation22_spill] sm:$0xff] %v6767_v33 }
 0x217   : > { %v6758_v16 = vpop.permute.xlu2 %986 }
 0x225   : > { %v518_v50 = vpop.xlane.xlu0 %517 }
 0x226   : > { %v536_v26 = vmul.f32 %v518_v50, %v6330_v20 }
 0x228   : > { %v552_v17 = vadd.f32 1e-05, %v536_v26 }
 0x22a   : > { %5650 = vrsqrt.f32 %v552_v17  ;;  %vm700_vm1 = vweird.f32 %v552_v17 }
 0x22e   : > { %v521_v21 = vpop.xlane.xlu1 %520 }
 0x22f   : > { %v537_v7 = vmul.f32 %v521_v21, %v6330_v20  ;;  %v993_v22 = vpop.permute.xlu2 %992 }
 0x230   : > { %v5651_v14 = vpop.eup %5650  ;;  %5103 = vmatpush.xpose.msk.msra.mxu2 %vm994_vm14, %v993_v22 }
 0x231   : > { %v695_v63 = vmul.f32 %v5651_v14, %v552_v17  ;;  %v553_v23 = vadd.f32 1e-05, %v537_v7  ;;  %vm701_vm15 = vweird.f32 %v5651_v14 }
 0x232   : > { %vm702_vm2 = vmor %vm700_vm1, %vm701_vm15 }
 0x233   : > { %v696_v5 = vmul.f32 %v5651_v14, %v695_v63  ;;  %5652 = vrsqrt.f32 %v553_v23  ;;  %vm710_vm4 = vweird.f32 %v553_v23 }
 0x235   : > { %v697_v25 = vmul.f32 0.5, %v696_v5 }
 0x237   : > { %v698_v27 = vsub.f32 1.5, %v697_v25 }
 0x239   : > { %v5653_v31 = vpop.eup %5652  ;;  %v699_v37 = vmul.f32 %v5651_v14, %v698_v27  ;;  %v1045_v27 = vpop.permute.xlu2 %1044 }
 0x23a   : > { %v705_v47 = vmul.f32 %v5653_v31, %v553_v23  ;;  %vm711_vm3 = vweird.f32 %v5653_v31 }
 0x23b   : > { %v703_v35 = vsel %vm702_vm2, %v5651_v14, %v699_v37  ;;  %vm712_vm5 = vmor %vm710_vm4, %vm711_vm3 }
 0x23c   : > { %v706_v57 = vmul.f32 %v5653_v31, %v705_v47  ;;  %v871_v43 = vpop.f32.mrf.mxu0  ;;  %v936_v49 = vpop.f32.mrf.mxu1  ;;  %v728_v46 = vmul.f32 %v703_v35, %v6633_v12 }
 0x23d   : > { %v6770_v32 = vadd.f32 %v871_v43, %v6654_v4  ;;  %v6773_v39 = vadd.f32 %v936_v49, %v6763_v34 }
 0x23e   : > { %v707_v52 = vmul.f32 0.5, %v706_v57  ;;  %v745_v15 = vmul.f32 %v6503_v13, %v728_v46  ;;  %v963_v57 = vlaneseq }
 0x23f   : > { %9265 = vst [vmem:[#allocation23_spill] sm:$0xff] %v6773_v39  ;;  %v991_v30 = vpop.permute.xlu0 %990  ;;  %1493 = vmatpush.msra.mxu3 %v6773_v39  ;;  %1050 = vrot.lane.b32.xlu0 %v6770_v32, %s6163_s22  ;;  %v6781_v12 = vpack.i.bf16 %v6767_v33, %v6773_v39 }
 0x240   : > { %v708_v54 = vsub.f32 1.5, %v707_v52  ;;  %5104 = vmatpush.xpose.msk.msra.mxu2 %vm994_vm14, %v991_v30  ;;  %v762_v44 = vadd.f32 %v6509_v19, %v745_v15  ;;  %v6917_v43 = vshrl.u32 %v963_v57, 7  ;;  %v6919_v49 = vand.u32 127, %v963_v57 }
 0x241   : > { %9266 = vst [vmem:[#allocation24_spill] sm:$0xff] %v6781_v12  ;;  %1494 = vmatpush.msra.mxu3 %v6767_v33 }
 0x242   : > { %v709_v56 = vmul.f32 %v5653_v31, %v708_v54  ;;  %5085 = vmatmul.msk.f32.gmra.mxu0 %vm370_vm0, %v762_v44  ;;  %5101 = vmatmul.msk.f32.gmra.mxu1 %vm370_vm0, %v762_v44  ;;  %vm6924_vm6 = vcmp.le.s32.totalorder %v6919_v49, %v6917_v43 }
 0x243   : > { %1495 = vmatpush.msra.mxu3 %v6786_v53 }
 0x244   : > { %v713_v9 = vsel %vm712_vm5, %v5653_v31, %v709_v56 }
 0x245   : > { %v874_v61 = vpop.f32.mrf.mxu0  ;;  %1496 = vmatpush.msra.mxu3 %v6792_v59  ;;  %v729_v55 = vmul.f32 %v713_v9, %v6650_v45  ;;  %v939_v1 = vpop.f32.mrf.mxu1 }
 0x246   : > { %v6798_v42 = vadd.f32 %v874_v61, %v6654_v4  ;;  %v989_v62 = vpop.permute.xlu1 %988  ;;  %v6888_v22 = vadd.f32 %v939_v1, %v6763_v34 }
 0x247   : > { %5105 = vmatpush.xpose.msk.msra.mxu2 %vm994_vm14, %v989_v62  ;;  %v746_v2 = vmul.f32 %v6503_v13, %v729_v55 }
 0x248   : > { %9267 = vst [vmem:[#allocation25_spill] sm:$0xff] %v6798_v42  ;;  %1722 = vrot.lane.b32.xlu1 %v6798_v42, %s6164_s8  ;;  %1101 = vrot.lane.b32.xlu2 %v6798_v42, %s6163_s22 }
 0x249   : > { %v763_v3 = vadd.f32 %v6509_v19, %v746_v2  ;;  %9271 = vst [vmem:[#allocation29_spill] sm:$0xff] %v6888_v22 }
 0x24b   : > { %5086 = vmatmul.msk.f32.gmra.mxu0 %vm370_vm0, %v763_v3  ;;  %5102 = vmatmul.msk.f32.gmra.mxu1 %vm370_vm0, %v763_v3 }
 0x24c   : > { %5106 = vmatpush.xpose.msk.msra.mxu2 %vm994_vm14, %v6758_v16 }
 0x24d   : > { %v877_v45 = vpop.f32.mrf.mxu0  ;;  %v942_v17 = vpop.f32.mrf.mxu1 }
 0x24e   : > { %v6812_v29 = vadd.f32 %v877_v45, %v6654_v4  ;;  %v6885_v7 = vadd.f32 %v942_v17, %v6763_v34 }
 0x24f   : > { %5107 = vmatmul.msk.f32.vlgmr.msra.gmra.mxu2 %vm994_vm14, %v6661_v36 }
 0x250   : > { %9268 = vst [vmem:[#allocation26_spill] sm:$0xff] %v6812_v29  ;;  %1714 = vrot.lane.b32.xlu2 %v6798_v42, %s6165_s9  ;;  %1103 = vrot.lane.b32.xlu1 %v6812_v29, %s6163_s22  ;;  %v6892_v63 = vpack.i.bf16 %v6888_v22, %v6885_v7 }
 0x251   : > { %9270 = vst [vmem:[#allocation28_spill] sm:$0xff] %v6885_v7 }
 0x252   : > { %9272 = vst [vmem:[#allocation30_spill] sm:$0xff] %v6892_v63 }
 0x255   : > { %v880_v13 = vpop.f32.mrf.mxu0  ;;  %v6870_v18 = vpop.f32.mrf.mxu1 }
 0x256   : > { %v6821_v19 = vadd.f32 %v880_v13, %v6654_v4 }
 0x257   : > { %5108 = vmatmul.msk.f32.gmra.mxu2 %vm994_vm14, %v6705_v48  ;;  %v1047_v31 = vpop.permute.xlu0 %1046 }
 0x258   : > { %9269 = vst [vmem:[#allocation27_spill] sm:$0xff] %v6821_v19  ;;  %1724 = vrot.lane.b32.xlu2 %v6812_v29, %s6164_s8  ;;  %1726 = vrot.lane.b32.xlu1 %v6821_v19, %s6164_s8 }
 0x25d   : > { %v883_v40 = vpop.f32.mrf.mxu0  ;;  %v6878_v21 = vpop.f32.mrf.mxu1 }
 0x25e   : > { %v6830_v60 = vadd.f32 %v883_v40, %v6654_v4  ;;  %v967_v40 = vadd.s32 24, %v6917_v43  ;;  %v6985_v17 = vadd.f32 %v6878_v21, %v6763_v34 }
 0x25f   : > { %5109 = vmatmul.msk.f32.gmra.mxu2 %vm994_vm14, %v6696_v41  ;;  %v1049_v35 = vpop.permute.xlu1 %1048 }
 0x260   : > { %1716 = vrot.lane.b32.xlu2 %v6812_v29, %s6165_s9  ;;  %1667 = vrot.lane.b32.xlu1 %v6770_v32, %s6164_s8  ;;  %vm6972_vm7 = vcmp.le.s32.totalorder %v6919_v49, %v967_v40 }
 0x261   : > { %1107 = vrot.lane.b32.xlu0 %v6830_v60, %s6163_s22 }
 0x265   : > { %v886_v8 = vpop.f32.mrf.mxu0  ;;  %v951_v14 = vpop.f32.mrf.mxu1 }
 0x266   : > { %v6849_v26 = vadd.f32 %v886_v8, %v6654_v4  ;;  %v952_v24 = vadd.f32 %v951_v14, %v6763_v34  ;;  %v6990_v14 = vadd.f32 %v6870_v18, %v6763_v34 }
 0x267   : > { %5110 = vmatmul.msk.f32.gmra.mxu2 %vm994_vm14, %v6709_v51 }
 0x268   : > { %1105 = vrot.lane.b32.xlu2 %v6821_v19, %s6163_s22  ;;  %1720 = vrot.lane.b32.xlu1 %v6830_v60, %s6165_s9 }
 0x269   : > { %1718 = vrot.lane.b32.xlu0 %v6821_v19, %s6165_s9 }
 0x26d   : > { %v889_v50 = vpop.f32.mrf.mxu0  ;;  %v954_v23 = vpop.f32.mrf.mxu1 }
 0x26e   : > { %v6852_v16 = vadd.f32 %v889_v50, %v6654_v4  ;;  %v955_v5 = vadd.f32 %v954_v23, %v6763_v34 }
 0x270   : > { %1160 = vrot.lane.b32.xlu2 %v6852_v16, %s6163_s22  ;;  %1158 = vrot.lane.b32.xlu1 %v6849_v26, %s6163_s22  ;;  %v6904_v25 = vpack.i.bf16 %v952_v24, %v955_v5 }
 0x271   : > { %1728 = vrot.lane.b32.xlu0 %v6830_v60, %s6164_s8 }
 0x272   : > { %9273 = vst [vmem:[#allocation31_spill] sm:$0xff] %v6904_v25 }
 0x278   : > { %1785 = vrot.lane.b32.xlu2 %v6852_v16, %s6164_s8  ;;  %1777 = vrot.lane.b32.xlu1 %v6852_v16, %s6165_s9 }
 0x279   : > { %1783 = vrot.lane.b32.xlu0 %v6849_v26, %s6164_s8 }
 0x280   : > { %1663 = vrot.lane.b32.xlu2 %v6732_v0, %s6164_s8  ;;  %1661 = vrot.lane.b32.xlu1 %v6722_v58, %s6164_s8 }
 0x281   : > { %1775 = vrot.lane.b32.xlu0 %v6849_v26, %s6165_s9 }
 0x288   : > { %1655 = vrot.lane.b32.xlu2 %v6732_v0, %s6165_s9  ;;  %1657 = vrot.lane.b32.xlu1 %v6742_v6, %s6165_s9 }
 0x290   : > { %1659 = vrot.lane.b32.xlu2 %v6770_v32, %s6165_s9  ;;  %2510 = vrot.lane.b32.xlu1 %v6696_v41, %s6166_s14 }
 0x298   : > { %5500 = vrot.lane.b32.xlu2 %v6892_v63, %s6165_s9  ;;  %2506 = vrot.lane.b32.xlu1 %v6661_v36, %s6166_s14 }
 0x2a0   : > { %2512 = vrot.lane.b32.xlu2 %v6709_v51, %s6166_s14  ;;  %2498 = vrot.lane.b32.xlu1 %v6661_v36, %s6167_s15 }
 0x2a2   : > { %v6910_v37 = vpop.permute.xlu2 %1101 }
 0x2a8   : > { %2508 = vrot.lane.b32.xlu2 %v6705_v48, %s6166_s14  ;;  %5505 = vrot.lane.b32.xlu1 %v6904_v25, %s6165_s9 }
 0x2aa   : > { %v6932_v52 = vpop.permute.xlu2 %1714 }
 0x2b0   : > { %2634 = vrot.lane.b32.xlu2 %v6830_v60, %s6166_s14  ;;  %2573 = vrot.lane.b32.xlu1 %v6770_v32, %s6166_s14 }
 0x2b1   : > { %v1051_v47 = vpop.permute.xlu0 %1050 }
 0x2b2   : > { %5111 = vmatpush.xpose.msk.msrb.mxu1 %vm994_vm14, %v1051_v47  ;;  %v6949_v9 = vpop.permute.xlu2 %1724 }
 0x2b6   : > { %5112 = vmatpush.xpose.msk.msrb.mxu1 %vm994_vm14, %v1049_v35 }
 0x2b8   : > { %2632 = vrot.lane.b32.xlu2 %v6821_v19, %s6166_s14  ;;  %2620 = vrot.lane.b32.xlu1 %v6798_v42, %s6167_s15 }
 0x2ba   : > { %v6934_v15 = vpop.permute.xlu1 %1722  ;;  %5113 = vmatpush.xpose.msk.msrb.mxu1 %vm994_vm14, %v1047_v31 }
 0x2be   : > { %5114 = vmatpush.xpose.msk.msrb.mxu1 %vm994_vm14, %v1045_v27 }
 0x2bf   : > { %v892_v30 = vpop.f32.mrf.mxu0  ;;  %v957_v54 = vpop.f32.mrf.mxu1 }
 0x2c0   : > { %2504 = vrot.lane.b32.xlu2 %v6709_v51, %s6167_s15  ;;  %2559 = vrot.lane.b32.xlu1 %v6722_v58, %s6167_s15  ;;  %v6943_v44 = vadd.f32 %v892_v30, %v6654_v4  ;;  %v958_v62 = vadd.f32 %v957_v54, %v6763_v34 }
 0x2c1   : > { %5115 = vmatmul.msk.f32.vlgmr.msrb.gmra.mxu1 %vm994_vm14, %v6722_v58 }
 0x2c2   : > { %v1104_v56 = vpop.permute.xlu1 %1103  ;;  %1162 = vrot.lane.b32.xlu0 %v6943_v44, %s6163_s22 }
 0x2c8   : > { %2630 = vrot.lane.b32.xlu2 %v6812_v29, %s6166_s14  ;;  %v895_v61 = vpop.f32.mrf.mxu0  ;;  %v960_v55 = vpop.f32.mrf.mxu1 }
 0x2c9   : > { %v6955_v2 = vadd.f32 %v895_v61, %v6654_v4  ;;  %v961_v3 = vadd.f32 %v960_v55, %v6763_v34  ;;  %5116 = vmatmul.msk.f32.gmra.mxu1 %vm994_vm14, %v6732_v0  ;;  %v6969_v4 = vpop.permute.xlu2 %1716 }
 0x2ca   : > { %v6960_v45 = vpop.permute.xlu1 %1726  ;;  %1665 = vrot.lane.b32.xlu0 %v6742_v6, %s6164_s8  ;;  %9277 = vst [vmem:[#allocation33_spill] sm:$0xff] %v6969_v4 }
 0x2cb   : > { %1575 = vmatpush.msrb.mxu3 %v961_v3  ;;  %1164 = vrot.lane.b32.xlu1 %v6955_v2, %s6163_s22  ;;  %v6966_v13 = vpack.i.bf16 %v958_v62, %v961_v3 }
 0x2cd   : > { %9276 = vst [vmem:[#allocation32_spill] sm:$0xff] %v6966_v13  ;;  %1576 = vmatpush.msrb.mxu3 %v958_v62  ;;  %v965_v62 = vadd.s32 8, %v6917_v43 }
 0x2cf   : > { %1577 = vmatpush.msrb.mxu3 %v955_v5  ;;  %vm7056_vm10 = vcmp.le.s32.totalorder %v6919_v49, %v965_v62 }
 0x2d0   : > { %2571 = vrot.lane.b32.xlu2 %v6742_v6, %s6166_s14 }
 0x2d1   : > { %1578 = vmatpush.msrb.mxu3 %v952_v24  ;;  %5117 = vmatmul.msk.f32.gmra.mxu1 %vm994_vm14, %v6742_v6  ;;  %v1106_v5 = vpop.permute.xlu2 %1105  ;;  %v6997_v24 = vpack.i.bf16 %v6990_v14, %v6985_v17 }
 0x2d2   : > { %v1668_v1 = vpop.permute.xlu1 %1667  ;;  %1653 = vrot.lane.b32.xlu0 %v6722_v58, %s6165_s9  ;;  %v1028_v23 = vpop.f32.mrf.mxu2 }
 0x2d3   : > { %v1108_v50 = vpop.permute.xlu0 %1107  ;;  %5159 = vmatpush.xpose.msk.msra.mxu1 %vm994_vm14, %v1668_v1  ;;  %9280 = vst [vmem:[#allocation34_spill] sm:$0xff] %v6997_v24  ;;  %v1211_v20 = vmul.f32 0.125, %v1028_v23 }
 0x2d4   : > { %5119 = vmatpush.xpose.msk.msrb.mxu2 %vm994_vm14, %v1108_v50 }
 0x2d8   : > { %5120 = vmatpush.xpose.msk.msrb.mxu2 %vm994_vm14, %v1106_v5  ;;  %2569 = vrot.lane.b32.xlu2 %v6732_v0, %s6166_s14 }
 0x2d9   : > { %5118 = vmatmul.msk.f32.gmra.mxu1 %vm994_vm14, %v6770_v32  ;;  %v1161_v62 = vpop.permute.xlu2 %1160 }
 0x2da   : > { %v7001_v21 = vpop.permute.xlu1 %1720  ;;  %5495 = vrot.lane.b32.xlu0 %v6997_v24, %s6165_s9  ;;  %v1031_v18 = vpop.f32.mrf.mxu2 }
 0x2db   : > { %9281 = vst [vmem:[#allocation35_spill] sm:$0xff] %v7001_v21  ;;  %v1212_v3 = vmul.f32 0.125, %v1031_v18  ;;  %v7064_v5 = vpop.permute.xlu0 %1718 }
 0x2dc   : > { %5121 = vmatpush.xpose.msk.msrb.mxu2 %vm994_vm14, %v1104_v56  ;;  %9288 = vst [vmem:[#allocation38_spill] sm:$0xff] %v7064_v5 }
 0x2dd   : > { %v7062_v50 = vsel %vm7056_vm10, %v1212_v3, -inf }
 0x2e0   : > { %5122 = vmatpush.xpose.msk.msrb.mxu2 %vm994_vm14, %v6910_v37  ;;  %2567 = vrot.lane.b32.xlu2 %v6722_v58, %s6166_s14  ;;  %v966_v37 = vadd.s32 16, %v6917_v43  ;;  %v1255_v43 = vsel %vm1251_vm9, %v7062_v50, -inf }
 0x2e1   : > { %v7086_v25 = vpop.permute.xlu2 %1785 }
 0x2e2   : > { %v7010_v27 = vpop.permute.xlu1 %1158  ;;  %2500 = vrot.lane.b32.xlu0 %v6705_v48, %s6167_s15  ;;  %v1034_v31 = vpop.f32.mrf.mxu2  ;;  %vm7026_vm8 = vcmp.le.s32.totalorder %v6919_v49, %v966_v37 }
 0x2e3   : > { %5123 = vmatmul.msk.f32.vlgmr.msrb.gmra.mxu2 %vm994_vm14, %v6798_v42  ;;  %v1213_v35 = vmul.f32 0.125, %v1034_v31  ;;  %v7072_v31 = vpop.permute.xlu0 %1728 }
 0x2e5   : > { %v7032_v30 = vsel %vm7026_vm8, %v1213_v35, -inf }
 0x2e6   : > { %v1258_v56 = vsel %vm1251_vm9, %v7032_v30, -inf }
 0x2e8   : > { %1781 = vrot.lane.b32.xlu2 %v6955_v2, %s6165_s9 }
 0x2e9   : > { %v1664_v39 = vpop.permute.xlu2 %1663 }
 0x2ea   : > { %v7018_v47 = vpop.permute.xlu1 %1777  ;;  %2502 = vrot.lane.b32.xlu0 %v6696_v41, %s6167_s15 }
 0x2eb   : > { %9282 = vst [vmem:[#allocation36_spill] sm:$0xff] %v7018_v47  ;;  %5124 = vmatmul.msk.f32.gmra.mxu2 %vm994_vm14, %v6812_v29  ;;  %v7076_v37 = vpop.permute.xlu0 %1783 }
 0x2f2   : > { %v1662_v54 = vpop.permute.xlu1 %1661  ;;  %2628 = vrot.lane.b32.xlu0 %v6798_v42, %s6166_s14  ;;  %v1037_v42 = vpop.f32.mrf.mxu2 }
 0x2f3   : > { %5125 = vmatmul.msk.f32.gmra.mxu2 %vm994_vm14, %v6821_v19  ;;  %v7082_v3 = vpop.permute.xlu0 %1775 }
 0x2f4   : > { %9292 = vst [vmem:[#allocation42_spill] sm:$0xff] %v7082_v3 }
 0x2f5   : > { %1259 = vmax.xlane.f32.xlu1 %v1258_v56 }
 0x2fa   : > { %v7040_v61 = vpop.permute.xlu1 %1657  ;;  %1787 = vrot.lane.b32.xlu0 %v6943_v44, %s6164_s8 }
 0x2fb   : > { %5126 = vmatmul.msk.f32.gmra.mxu2 %vm994_vm14, %v6830_v60 }
 0x302   : > { %v7046_v55 = vpop.permute.xlu1 %2510  ;;  %1779 = vrot.lane.b32.xlu0 %v6943_v44, %s6165_s9 }
 0x30a   : > { %v7051_v40 = vpop.permute.xlu1 %2506  ;;  %1789 = vrot.lane.b32.xlu0 %v6955_v2, %s6164_s8 }
 0x30b   : > { %9285 = vst [vmem:[#allocation37_spill] sm:$0xff] %v7051_v40 }
 0x311   : > { %1256 = vmax.xlane.f32.xlu2 %v1255_v43 }
 0x312   : > { %v7068_v18 = vpop.permute.xlu1 %2498  ;;  %5510 = vrot.lane.b32.xlu0 %v6966_v13, %s6165_s9  ;;  %v7090_v13 = vsel %vm6924_vm6, %v1211_v20, -inf }
 0x313   : > { %9289 = vst [vmem:[#allocation39_spill] sm:$0xff] %v7068_v18  ;;  %v1252_v58 = vsel %vm1251_vm9, %v7090_v13, -inf  ;;  %v1214_v18 = vmul.f32 0.125, %v1037_v42 }
 0x315   : > { %v7098_v24 = vsel %vm6972_vm7, %v1214_v18, -inf }
 0x31a   : > { %v7074_v49 = vpop.permute.xlu1 %5505 }
 0x322   : > { %v7078_v35 = vpop.permute.xlu1 %2573 }
 0x323   : > { %9290 = vst [vmem:[#allocation40_spill] sm:$0xff] %v7078_v35 }
 0x32a   : > { %v7080_v56 = vpop.permute.xlu1 %2620 }
 0x32b   : > { %9291 = vst [vmem:[#allocation41_spill] sm:$0xff] %v7080_v56 }
 0x332   : > { %v7084_v63 = vpop.permute.xlu1 %2559 }
 0x333   : > { %9293 = vst [vmem:[#allocation43_spill] sm:$0xff] %v7084_v63 }
 0x334   : > { %v1163_v43 = vpop.permute.xlu0 %1162 }
 0x33c   : > { %1253 = vmax.xlane.f32.xlu0 %v1252_v58  ;;  %v1666_v56 = vpop.permute.xlu0 %1665 }
 0x33d   : > { %v1165_v33 = vpop.permute.xlu1 %1164  ;;  %5160 = vmatpush.xpose.msk.msra.mxu1 %vm994_vm14, %v1666_v56 }
 0x33e   : > { %5127 = vmatpush.xpose.msk.msra.mxu2 %vm994_vm14, %v1165_v33  ;;  %v1085_v23 = vpop.f32.mrf.mxu1  ;;  %v1261_v33 = vsel %vm1251_vm9, %v7098_v24, -inf }
 0x33f   : > { %v1215_v63 = vmul.f32 0.125, %v1085_v23 }
 0x341   : > { %5161 = vmatpush.xpose.msk.msra.mxu1 %vm994_vm14, %v1664_v39  ;;  %v7103_v20 = vsel %vm6924_vm6, %v1215_v63, -inf  ;;  %v7115_v63 = vadd.f32 %v6755_v11, %v6763_v34  ;;  %v7134_v11 = vadd.f32 %v6751_v38, %v6763_v34 }
 0x342   : > { %5128 = vmatpush.xpose.msk.msra.mxu2 %vm994_vm14, %v1163_v43  ;;  %v1264_v58 = vsel %vm1251_vm9, %v7103_v20, -inf  ;;  %v1656_v43 = vpop.permute.xlu2 %1655 }
 0x343   : > { %1265 = vmax.xlane.f32.xlu1 %v1264_v58  ;;  %9294 = vst [vmem:[#allocation44_spill] sm:$0xff] %v7115_v63  ;;  %v7139_v58 = vadd.f32 %v6749_v28, %v6763_v34 }
 0x344   : > { %1262 = vmax.xlane.f32.xlu0 %v1261_v33  ;;  %v1654_v39 = vpop.permute.xlu0 %1653  ;;  %9296 = vst [vmem:[#allocation46_spill] sm:$0xff] %v7134_v11 }
 0x345   : > { %5162 = vmatpush.xpose.msk.msra.mxu1 %vm994_vm14, %v1662_v54  ;;  %9297 = vst [vmem:[#allocation47_spill] sm:$0xff] %v7139_v58 }
 0x346   : > { %5129 = vmatpush.xpose.msk.msra.mxu2 %vm994_vm14, %v1161_v62  ;;  %v1088_v42 = vpop.f32.mrf.mxu1  ;;  %v7128_v62 = vadd.f32 %v6753_v10, %v6763_v34 }
 0x347   : > { %v1216_v18 = vmul.f32 0.125, %v1088_v42 }
 0x348   : > { %5163 = vmatmul.msk.f32.vlgmr.msra.gmra.mxu1 %vm994_vm14, %v1654_v39  ;;  %9295 = vst [vmem:[#allocation45_spill] sm:$0xff] %v7128_v62 }
 0x349   : > { %v7119_v56 = vsel %vm7056_vm10, %v1216_v18, -inf }
 0x34a   : > { %5130 = vmatpush.xpose.msk.msra.mxu2 %vm994_vm14, %v7010_v27  ;;  %v1267_v54 = vsel %vm1251_vm9, %v7119_v56, -inf }
 0x34b   : > { %1268 = vmax.xlane.f32.xlu2 %v1267_v54 }
 0x34d   : > { %5131 = vmatmul.msk.f32.vlgmr.msra.gmra.mxu2 %vm994_vm14, %v6849_v26 }
 0x34e   : > { %1452 = vmatpush.msrb.mxu2 %v7115_v63  ;;  %v1091_v27 = vpop.f32.mrf.mxu1 }
 0x34f   : > { %v1217_v23 = vmul.f32 0.125, %v1091_v27 }
 0x350   : > { %1453 = vmatpush.msrb.mxu2 %v7128_v62  ;;  %5164 = vmatmul.msk.f32.gmra.mxu1 %vm994_vm14, %v1656_v43 }
 0x351   : > { %v7145_v10 = vsel %vm7026_vm8, %v1217_v23, -inf }
 0x352   : > { %1454 = vmatpush.msrb.mxu2 %v7134_v11  ;;  %v1270_v38 = vsel %vm1251_vm9, %v7145_v10, -inf }
 0x353   : > { %1271 = vmax.xlane.f32.xlu2 %v1270_v38 }
 0x354   : > { %1455 = vmatpush.msrb.mxu2 %v7139_v58 }
 0x355   : > { %5132 = vmatmul.msk.f32.gmra.mxu2 %vm994_vm14, %v6852_v16 }
 0x356   : > { %1534 = vmatpush.msra.mxu2 %v6985_v17  ;;  %v1094_v28 = vpop.f32.mrf.mxu1  ;;  %v1660_v17 = vpop.permute.xlu2 %1659 }
 0x357   : > { %v1218_v34 = vmul.f32 0.125, %v1094_v28 }
 0x358   : > { %1535 = vmatpush.msra.mxu2 %v6990_v14  ;;  %5165 = vmatmul.msk.f32.gmra.mxu1 %vm994_vm14, %v7040_v61 }
 0x359   : > { %v7160_v33 = vsel %vm6972_vm7, %v1218_v34, -inf }
 0x35a   : > { %1536 = vmatpush.msra.mxu2 %v6885_v7  ;;  %v1273_v14 = vsel %vm1251_vm9, %v7160_v33, -inf }
 0x35b   : > { %1274 = vmax.xlane.f32.xlu2 %v1273_v14 }
 0x35c   : > { %1537 = vmatpush.msra.mxu2 %v6888_v22 }
 0x35d   : > { %5133 = vmatmul.msk.f32.gmra.mxu2 %vm994_vm14, %v6943_v44 }
 0x35e   : > { %v7167_v42 = vpop.permute.xlu2 %5500 }
 0x360   : > { %5166 = vmatmul.msk.f32.gmra.mxu1 %vm994_vm14, %v1660_v17 }
 0x365   : > { %5134 = vmatmul.msk.f32.gmra.mxu2 %vm994_vm14, %v6955_v2 }
 0x366   : > { %v1142_v39 = vpop.f32.mrf.mxu2  ;;  %v7177_v27 = vpop.permute.xlu2 %2512 }
 0x367   : > { %v1219_v61 = vmul.f32 0.125, %v1142_v39 }
 0x369   : > { %v7173_v18 = vsel %vm6924_vm6, %v1219_v61, -inf  ;;  %v7191_v61 = vpop.permute.xlu0 %5495 }
 0x36a   : > { %v1276_v54 = vsel %vm1251_vm9, %v7173_v18, -inf }
 0x36b   : > { %1277 = vmax.xlane.f32.xlu2 %v1276_v54 }
 0x36e   : > { %v1145_v43 = vpop.f32.mrf.mxu2  ;;  %v7185_v14 = vpop.permute.xlu2 %2508 }
 0x36f   : > { %v1220_v23 = vmul.f32 0.125, %v1145_v43  ;;  %9298 = vst [vmem:[#allocation48_spill] sm:$0xff] %v7185_v14 }
 0x371   : > { %v7181_v38 = vsel %vm7056_vm10, %v1220_v23, -inf }
 0x372   : > { %v1279_v28 = vsel %vm1251_vm9, %v7181_v38, -inf }
 0x373   : > { %1280 = vmax.xlane.f32.xlu0 %v1279_v28 }
 0x376   : > { %v1148_v34 = vpop.f32.mrf.mxu2  ;;  %v7199_v28 = vpop.permute.xlu2 %2634 }
 0x377   : > { %v1221_v17 = vmul.f32 0.125, %v1148_v34  ;;  %9299 = vst [vmem:[#allocation49_spill] sm:$0xff] %v7199_v28 }
 0x379   : > { %v7189_v39 = vsel %vm7026_vm8, %v1221_v17, -inf  ;;  %v7203_v17 = vpop.permute.xlu0 %2500 }
 0x37a   : > { %v1282_v54 = vsel %vm1251_vm9, %v7189_v39, -inf  ;;  %9300 = vst [vmem:[#allocation50_spill] sm:$0xff] %v7203_v17 }
 0x37b   : > { %1283 = vmax.xlane.f32.xlu1 %v1282_v54 }
 0x37e   : > { %v1151_v43 = vpop.f32.mrf.mxu2  ;;  %v7205_v63 = vpop.permute.xlu2 %2632 }
 0x37f   : > { %v1222_v23 = vmul.f32 0.125, %v1151_v43  ;;  %9301 = vst [vmem:[#allocation51_spill] sm:$0xff] %v7205_v63 }
 0x381   : > { %v7197_v62 = vsel %vm6972_vm7, %v1222_v23, -inf  ;;  %v7207_v22 = vpop.permute.xlu0 %2502 }
 0x382   : > { %v1285_v34 = vsel %vm1251_vm9, %v7197_v62, -inf  ;;  %9302 = vst [vmem:[#allocation52_spill] sm:$0xff] %v7207_v22 }
 0x383   : > { %1286 = vmax.xlane.f32.xlu1 %v1285_v34 }
 0x386   : > { %v7209_v7 = vpop.permute.xlu2 %2504 }
 0x387   : > { %9303 = vst [vmem:[#allocation53_spill] sm:$0xff] %v7209_v7 }
 0x389   : > { %v7211_v54 = vpop.permute.xlu0 %2628 }
 0x38a   : > { %9304 = vst [vmem:[#allocation54_spill] sm:$0xff] %v7211_v54 }
 0x38e   : > { %v7213_v43 = vpop.permute.xlu2 %2630 }
 0x38f   : > { %9305 = vst [vmem:[#allocation55_spill] sm:$0xff] %v7213_v43 }
 0x391   : > { %v7215_v23 = vpop.permute.xlu0 %1787 }
 0x396   : > { %v7217_v58 = vpop.permute.xlu2 %2571 }
 0x397   : > { %9306 = vst [vmem:[#allocation56_spill] sm:$0xff] %v7217_v58 }
 0x399   : > { %v7219_v11 = vpop.permute.xlu0 %1779 }
 0x39a   : > { %9307 = vst [vmem:[#allocation57_spill] sm:$0xff] %v7219_v11 }
 0x39e   : > { %v7221_v28 = vpop.permute.xlu2 %2569 }
 0x39f   : > { %9308 = vst [vmem:[#allocation58_spill] sm:$0xff] %v7221_v28 }
 0x3a1   : > { %v7223_v34 = vpop.permute.xlu0 %1789 }
 0x3a6   : > { %v7225_v17 = vpop.permute.xlu2 %2567 }
 0x3a7   : > { %9309 = vst [vmem:[#allocation59_spill] sm:$0xff] %v7225_v17 }
 0x3a9   : > { %v7227_v63 = vpop.permute.xlu0 %5510 }
 0x3ae   : > { %v7229_v22 = vpop.permute.xlu2 %1781 }
 0x3af   : > { %9310 = vst [vmem:[#allocation60_spill] sm:$0xff] %v7229_v22 }
 0x3b1   : > { %v1254_v7 = vpop.xlane.xlu0 %1253 }
 0x3b2   : > { %v1300_v54 = vsub.f32 %v7090_v13, %v1254_v7 }
 0x3b4   : > { %v1316_v43 = vmul.f32 1.442695, %v1300_v54 }
 0x3b6   : > { %v1257_v47 = vpop.xlane.xlu2 %1256  ;;  %5654 = vpow2.f32 %v1316_v43 }
 0x3b7   : > { %v1301_v58 = vsub.f32 %v7062_v50, %v1257_v47 }
 0x3b9   : > { %v1318_v28 = vmul.f32 1.442695, %v1301_v58 }
 0x3bb   : > { %5656 = vpow2.f32 %v1318_v28 }
 0x3bc   : > { %v7239_v22 = vpop.eup %5654 }
 0x3bd   : > { %v1348_v47 = vsel %vm1251_vm9, %v7239_v22, 0.0 }
 0x3d0   : > { %v1199_v35 = vpop.f32.mrf.mxu2 }
 0x3d1   : > { %v1223_v3 = vmul.f32 0.125, %v1199_v35  ;;  %v7249_v35 = vpop.eup %5656 }
 0x3d2   : > { %v1351_v28 = vsel %vm1251_vm9, %v7249_v35, 0.0 }
 0x3d3   : > { %v7235_v11 = vsel %vm6924_vm6, %v1223_v3, -inf }
 0x3d4   : > { %v1288_v17 = vsel %vm1251_vm9, %v7235_v11, -inf }
 0x3d5   : > { %1289 = vmax.xlane.f32.xlu0 %v1288_v17 }
 0x3d8   : > { %v1202_v48 = vpop.f32.mrf.mxu2 }
 0x3d9   : > { %v1224_v7 = vmul.f32 0.125, %v1202_v48 }
 0x3db   : > { %v7243_v13 = vsel %vm7056_vm10, %v1224_v7, -inf }
 0x3dc   : > { %v1291_v50 = vsel %vm1251_vm9, %v7243_v13, -inf }
 0x3dd   : > { %1349 = vadd.xlane.f32.xlu0 %v1348_v47  ;;  %1292 = vmax.xlane.f32.xlu1 %v1291_v50  ;;  %v1269_v50 = vpop.xlane.xlu2 %1268 }
 0x3e0   : > { %v1205_v3 = vpop.f32.mrf.mxu2 }
 0x3e1   : > { %v1225_v58 = vmul.f32 0.125, %v1205_v3 }
 0x3e3   : > { %v7253_v48 = vsel %vm7026_vm8, %v1225_v58, -inf }
 0x3e4   : > { %v1294_v17 = vsel %vm1251_vm9, %v7253_v48, -inf }
 0x3e5   : > { %1352 = vadd.xlane.f32.xlu0 %v1351_v28  ;;  %1295 = vmax.xlane.f32.xlu2 %v1294_v17  ;;  %v1272_v3 = vpop.xlane.xlu2 %1271  ;;  %v1260_v28 = vpop.xlane.xlu1 %1259 }
 0x3e6   : > { %v1263_v17 = vpop.xlane.xlu0 %1262 }
 0x3e8   : > { %v1208_v54 = vpop.f32.mrf.mxu2 }
 0x3e9   : > { %v1226_v43 = vmul.f32 0.125, %v1208_v54 }
 0x3eb   : > { %v7261_v7 = vsel %vm6972_vm7, %v1226_v43, -inf  ;;  %v1302_v43 = vsub.f32 %v7032_v30, %v1260_v28 }
 0x3ec   : > { %9311 = vst [vmem:[#allocation61_spill] sm:$0xff] %v7261_v7  ;;  %v1297_v47 = vsel %vm1251_vm9, %v7261_v7, -inf }
 0x3ed   : > { %1298 = vmax.xlane.f32.xlu2 %v1297_v47  ;;  %v1275_v58 = vpop.xlane.xlu2 %1274  ;;  %v1320_v47 = vmul.f32 1.442695, %v1302_v43  ;;  %v1266_v51 = vpop.xlane.xlu1 %1265 }
 0x3ee   : > { %v1281_v21 = vpop.xlane.xlu0 %1280 }
 0x3ef   : > { %5658 = vpow2.f32 %v1320_v47 }
 0x3f5   : > { %v1278_v54 = vpop.xlane.xlu2 %1277  ;;  %v7275_v40 = vpop.eup %5658 }
 0x3f6   : > { %2624 = vrot.lane.b32.xlu1 %v6821_v19, %s6167_s15  ;;  %v1308_v36 = vsub.f32 %v7173_v18, %v1278_v54  ;;  %v1304_v19 = vsub.f32 %v7103_v20, %v1266_v51  ;;  %v1284_v4 = vpop.xlane.xlu1 %1283  ;;  %v1305_v18 = vsub.f32 %v7119_v56, %v1269_v50  ;;  %v1702_v50 = vpop.f32.mrf.mxu1 }
 0x3f7   : > { %v1310_v51 = vsub.f32 %v7189_v39, %v1284_v4  ;;  %v1840_v47 = vmul.f32 0.125, %v1702_v50 }
 0x3f8   : > { %v1332_v7 = vmul.f32 1.442695, %v1308_v36  ;;  %v1324_v5 = vmul.f32 1.442695, %v1304_v19  ;;  %v1354_v36 = vsel %vm1251_vm9, %v7275_v40, 0.0 }
 0x3f9   : > { %2622 = vrot.lane.b32.xlu0 %v6812_v29, %s6167_s15  ;;  %v1309_v29 = vsub.f32 %v7181_v38, %v1281_v21  ;;  %v1326_v21 = vmul.f32 1.442695, %v1305_v18 }
 0x3fa   : > { %5660 = vpow2.f32 %v1332_v7 }
 0x3fb   : > { %v1334_v14 = vmul.f32 1.442695, %v1309_v29  ;;  %5662 = vpow2.f32 %v1324_v5  ;;  %v1336_v5 = vmul.f32 1.442695, %v1310_v51 }
 0x3fd   : > { %5664 = vpow2.f32 %v1334_v14 }
 0x3fe   : > { %v7322_v51 = vpop.f32.mrf.mxu1 }
 0x400   : > { %v7278_v30 = vpop.eup %5660 }
 0x401   : > { %v1372_v19 = vsel %vm1251_vm9, %v7278_v30, 0.0  ;;  %v7286_v29 = vpop.eup %5662 }
 0x403   : > { %v7289_v20 = vpop.eup %5664 }
 0x404   : > { %v1375_v4 = vsel %vm1251_vm9, %v7289_v20, 0.0 }
 0x405   : > { %2561 = vrot.lane.b32.xlu2 %v6732_v0, %s6167_s15  ;;  %v1303_v0 = vsub.f32 %v7098_v24, %v1263_v17  ;;  %v1306_v24 = vsub.f32 %v7145_v10, %v1272_v3  ;;  %v1307_v10 = vsub.f32 %v7160_v33, %v1275_v58  ;;  %v7314_v58 = vsel %vm6924_vm6, %v1840_v47, -inf }
 0x406   : > { %v1880_v18 = vsel %vm1251_vm9, %v7314_v58, -inf }
 0x407   : > { %v1322_v28 = vmul.f32 1.442695, %v1303_v0  ;;  %v1360_v0 = vsel %vm1251_vm9, %v7286_v29, 0.0  ;;  %v1328_v56 = vmul.f32 1.442695, %v1306_v24 }
 0x408   : > { %v1330_v17 = vmul.f32 1.442695, %v1307_v10 }
 0x409   : > { %5666 = vpow2.f32 %v1322_v28 }
 0x40a   : > { %5668 = vpow2.f32 %v1326_v21 }
 0x40b   : > { %5670 = vpow2.f32 %v1336_v5  ;;  %v1708_v5 = vpop.f32.mrf.mxu1 }
 0x40c   : > { %5672 = vpow2.f32 %v1328_v56  ;;  %v1842_v10 = vmul.f32 0.125, %v1708_v5 }
 0x40d   : > { %5674 = vpow2.f32 %v1330_v17 }
 0x40f   : > { %v7295_v38 = vpop.eup %5666 }
 0x410   : > { %v7297_v14 = vpop.eup %5668  ;;  %v1357_v39 = vsel %vm1251_vm9, %v7295_v38, 0.0 }
 0x411   : > { %v7302_v7 = vpop.eup %5670  ;;  %v1363_v3 = vsel %vm1251_vm9, %v7297_v14, 0.0 }
 0x412   : > { %v1378_v54 = vsel %vm1251_vm9, %v7302_v7, 0.0  ;;  %v7308_v43 = vpop.eup %5672 }
 0x413   : > { %v1366_v33 = vsel %vm1251_vm9, %v7308_v43, 0.0  ;;  %v1711_v17 = vpop.f32.mrf.mxu1 }
 0x414   : > { %v1843_v47 = vmul.f32 0.125, %v1711_v17 }
 0x420   : > { %1355 = vadd.xlane.f32.xlu1 %v1354_v36  ;;  %v7318_v36 = vpop.eup %5674 }
 0x421   : > { %v1369_v28 = vsel %vm1251_vm9, %v7318_v36, 0.0 }
 0x423   : > { %1373 = vadd.xlane.f32.xlu0 %v1372_v19 }
 0x428   : > { %1361 = vadd.xlane.f32.xlu1 %v1360_v0 }
 0x42b   : > { %1376 = vadd.xlane.f32.xlu0 %v1375_v4 }
 0x42e   : > { %1358 = vadd.xlane.f32.xlu2 %v1357_v39 }
 0x430   : > { %1364 = vadd.xlane.f32.xlu1 %v1363_v3  ;;  %v7336_v3 = vsel %vm7026_vm8, %v1842_v10, -inf }
 0x433   : > { %1379 = vadd.xlane.f32.xlu0 %v1378_v54  ;;  %v1886_v54 = vsel %vm1251_vm9, %v7336_v3, -inf }
 0x436   : > { %1367 = vadd.xlane.f32.xlu2 %v1366_v33 }
 0x43b   : > { %1881 = vmax.xlane.f32.xlu0 %v1880_v18  ;;  %v1287_v18 = vpop.xlane.xlu1 %1286 }
 0x43e   : > { %1370 = vadd.xlane.f32.xlu2 %v1369_v28  ;;  %v7348_v28 = vsel %vm6972_vm7, %v1843_v47, -inf }
 0x448   : > { %v1290_v19 = vpop.xlane.xlu0 %1289 }
 0x449   : > { %v1312_v21 = vsub.f32 %v7235_v11, %v1290_v19  ;;  %2695 = vrot.lane.b32.xlu1 %v6955_v2, %s6166_s14  ;;  %v1311_v19 = vsub.f32 %v7197_v62, %v1287_v18 }
 0x44b   : > { %v1340_v24 = vmul.f32 1.442695, %v1312_v21  ;;  %v1338_v21 = vmul.f32 1.442695, %v1311_v19 }
 0x44d   : > { %5676 = vpow2.f32 %v1340_v24 }
 0x450   : > { %v1350_v0 = vpop.xlane.xlu0 %1349  ;;  %v1293_v24 = vpop.xlane.xlu1 %1292 }
 0x451   : > { %5678 = vrcp.f32 %v1350_v0 }
 0x453   : > { %v7327_v56 = vpop.eup %5676 }
 0x454   : > { %v1384_v4 = vsel %vm1251_vm9, %v7327_v56, 0.0 }
 0x455   : > { %1385 = vadd.xlane.f32.xlu0 %v1384_v4 }
 0x456   : > { %2563 = vrot.lane.b32.xlu2 %v6742_v6, %s6167_s15 }
 0x457   : > { %v5679_v39 = vpop.eup %5678 }
 0x458   : > { %v1412_v11 = vmul.f32 %v5679_v39, %v7239_v22  ;;  %v1353_v50 = vpop.xlane.xlu0 %1352 }
 0x459   : > { %5680 = vrcp.f32 %v1353_v50 }
 0x45a   : > { %5135 = vmatmul.msk.f32.vlgmr.msrb.gmra.mxu2 %vm1251_vm9, %v1412_v11  ;;  %5682 = vpow2.f32 %v1338_v21 }
 0x45b   : > { %5167 = vmatpush.xpose.msk.msrb.mxu2 %vm994_vm14, %v7072_v31  ;;  %v1889_v31 = vsel %vm1251_vm9, %v7348_v28, -inf }
 0x45d   : > { %1887 = vmax.xlane.f32.xlu0 %v1886_v54 }
 0x45f   : > { %v5681_v33 = vpop.eup %5680  ;;  %5168 = vmatpush.xpose.msk.msrb.mxu2 %vm994_vm14, %v6960_v45  ;;  %v1313_v45 = vsub.f32 %v7243_v13, %v1293_v24 }
 0x460   : > { %v1413_v22 = vmul.f32 %v5681_v33, %v7249_v35  ;;  %v1296_v35 = vpop.xlane.xlu2 %1295  ;;  %v7360_v0 = vpop.eup %5682 }
 0x461   : > { %v1342_v5 = vmul.f32 1.442695, %v1313_v45  ;;  %v1314_v62 = vsub.f32 %v7253_v48, %v1296_v35  ;;  %v1381_v4 = vsel %vm1251_vm9, %v7360_v0, 0.0 }
 0x462   : > { %5136 = vmatmul.msk.f32.gmra.mxu2 %vm1251_vm9, %v1413_v22 }
 0x463   : > { %5169 = vmatpush.xpose.msk.msrb.mxu2 %vm994_vm14, %v6949_v9  ;;  %5684 = vpow2.f32 %v1342_v5  ;;  %v1344_v9 = vmul.f32 1.442695, %v1314_v62 }
 0x465   : > { %1890 = vmax.xlane.f32.xlu0 %v1889_v31  ;;  %5686 = vpow2.f32 %v1344_v9 }
 0x467   : > { %5170 = vmatpush.xpose.msk.msrb.mxu2 %vm994_vm14, %v6934_v15 }
 0x468   : > { %v7374_v39 = vpop.permute.xlu1 %2624  ;;  %v7378_v50 = vpop.xlane.xlu2 %1298 }
 0x469   : > { %v7364_v10 = vpop.eup %5684 }
 0x46a   : > { %v1387_v15 = vsel %vm1251_vm9, %v7364_v10, 0.0 }
 0x46b   : > { %v7370_v13 = vpop.eup %5686  ;;  %v7376_v11 = vpop.permute.xlu0 %2622 }
 0x46c   : > { %v1390_v48 = vsel %vm1251_vm9, %v7370_v13, 0.0 }
 0x470   : > { %v7384_v47 = vpop.permute.xlu2 %2561 }
 0x473   : > { %1382 = vadd.xlane.f32.xlu1 %v1381_v4 }
 0x479   : > { %2685 = vrot.lane.b32.xlu0 %v6943_v44, %s6167_s15 }
 0x47b   : > { %1388 = vadd.xlane.f32.xlu1 %v1387_v15 }
 0x47f   : > { %1391 = vadd.xlane.f32.xlu2 %v1390_v48 }
 0x493   : > { %v1356_v17 = vpop.xlane.xlu1 %1355 }
 0x494   : > { %5688 = vrcp.f32 %v1356_v17  ;;  %2693 = vrot.lane.b32.xlu1 %v6943_v44, %s6166_s14  ;;  %v5498_v17 = vunpack.i.h.bf16 %v7191_v61 }
 0x496   : > { %v1374_v54 = vpop.xlane.xlu0 %1373 }
 0x497   : > { %2626 = vrot.lane.b32.xlu2 %v6830_v60, %s6167_s15 }
 0x49a   : > { %v5689_v33 = vpop.eup %5688 }
 0x49b   : > { %v1362_v18 = vpop.xlane.xlu1 %1361  ;;  %v1414_v22 = vmul.f32 %v5689_v33, %v7275_v40  ;;  %v1841_v33 = vmul.f32 0.125, %v7322_v51 }
 0x49c   : > { %5690 = vrcp.f32 %v1362_v18  ;;  %2565 = vrot.lane.b32.xlu1 %v6770_v32, %s6167_s15 }
 0x49d   : > { %5137 = vmatmul.msk.f32.gmra.mxu2 %vm1251_vm9, %v1414_v22 }
 0x49e   : > { %v1377_v19 = vpop.xlane.xlu0 %1376 }
 0x4a1   : > { %v1359_v31 = vpop.xlane.xlu2 %1358 }
 0x4a2   : > { %v5691_v21 = vpop.eup %5690  ;;  %5692 = vrcp.f32 %v1359_v31 }
 0x4a3   : > { %v1365_v24 = vpop.xlane.xlu1 %1364  ;;  %v1416_v45 = vmul.f32 %v5691_v21, %v7286_v29 }
 0x4a4   : > { %5694 = vrcp.f32 %v1365_v24  ;;  %2691 = vrot.lane.b32.xlu1 %v6852_v16, %s6166_s14 }
 0x4a5   : > { %5139 = vmatmul.msk.f32.vlgmr.msra.gmra.mxu3 %vm1251_vm9, %v1416_v45  ;;  %5696 = vrcp.f32 %v1374_v54  ;;  %v5512_v45 = vunpack.i.l.bf16 %v7227_v63 }
 0x4a6   : > { %5175 = vmatpush.xpose.msk.msra.mxu3 %vm994_vm14, %v7223_v34  ;;  %v1380_v35 = vpop.xlane.xlu0 %1379 }
 0x4a8   : > { %v5693_v40 = vpop.eup %5692 }
 0x4a9   : > { %v1368_v5 = vpop.xlane.xlu2 %1367  ;;  %v1415_v62 = vmul.f32 %v5693_v40, %v7295_v38 }
 0x4aa   : > { %v5695_v9 = vpop.eup %5694  ;;  %5176 = vmatpush.xpose.msk.msra.mxu3 %vm994_vm14, %v7215_v23  ;;  %5698 = vrcp.f32 %v1368_v5  ;;  %v5497_v23 = vunpack.i.l.bf16 %v7191_v61 }
 0x4ab   : > { %5138 = vmatmul.msk.f32.gmra.mxu2 %vm1251_vm9, %v1415_v62  ;;  %v1417_v29 = vmul.f32 %v5695_v9, %v7297_v14  ;;  %v5697_v34 = vpop.eup %5696  ;;  %5700 = vrcp.f32 %v1377_v19  ;;  %v5507_v62 = vunpack.i.l.bf16 %v7074_v49  ;;  %v5508_v9 = vunpack.i.h.bf16 %v7074_v49 }
 0x4ac   : > { %2689 = vrot.lane.b32.xlu1 %v6849_v26, %s6166_s14  ;;  %v1420_v38 = vmul.f32 %v5697_v34, %v7278_v30  ;;  %v5502_v30 = vunpack.i.l.bf16 %v7167_v42  ;;  %s335_s14 = sand.u32 1, %s6144_s25  }
 0x4ad   : > { %5140 = vmatmul.msk.f32.gmra.mxu3 %vm1251_vm9, %v1417_v29 }
 0x4ae   : > { %5177 = vmatpush.xpose.msk.msra.mxu3 %vm994_vm14, %v7086_v25  ;;  %v1882_v14 = vpop.xlane.xlu0 %1881 }
 0x4af   : > { %v1920_v54 = vsub.f32 %v7314_v58, %v1882_v14  ;;  %v7427_v58 = vsel %vm7056_vm10, %v1841_v33, -inf }
 0x4b0   : > { %v5699_v4 = vpop.eup %5698 }
 0x4b1   : > { %v1371_v15 = vpop.xlane.xlu2 %1370  ;;  %v1418_v48 = vmul.f32 %v5699_v4, %v7308_v43  ;;  %v5701_v25 = vpop.eup %5700  ;;  %v1940_v18 = vmul.f32 1.442695, %v1920_v54  ;;  %v9315_v54 = vld [vmem:[#allocation38_spill] sm:$0xff] }
 0x4b2   : > { %5178 = vmatpush.xpose.msk.msra.mxu3 %vm994_vm14, %v7076_v37  ;;  %5702 = vrcp.f32 %v1371_v15  ;;  %v5503_v37 = vunpack.i.h.bf16 %v7167_v42  ;;  %v1421_v61 = vmul.f32 %v5701_v25, %v7289_v20  ;;  %v1883_v20 = vsel %vm1251_vm9, %v7427_v58, -inf }
 0x4b3   : > { %5143 = vmatmul.msk.f32.vlgmr.msra.gmra.mxu2 %vm1251_vm9, %v1420_v38  ;;  %5704 = vrcp.f32 %v1380_v35  ;;  %v5513_v35 = vunpack.i.h.bf16 %v7227_v63  ;;  %v7457_v63 = vpack.i.bf16 %v6792_v59, %v6786_v53 }
 0x4b4   : > { %2198 = vmatpush.msra.mxu2 %v5497_v23  ;;  %2681 = vrot.lane.b32.xlu1 %v6849_v26, %s6167_s15  ;;  %5706 = vpow2.f32 %v1940_v18 }
 0x4b5   : > { %5141 = vmatmul.msk.f32.gmra.mxu3 %vm1251_vm9, %v1418_v48 }
 0x4b6   : > { %2199 = vmatpush.msra.mxu2 %v5498_v17 }
 0x4b8   : > { %2200 = vmatpush.msra.mxu2 %v5502_v30  ;;  %v5703_v43 = vpop.eup %5702  ;;  %v9314_v30 = vld [vmem:[#allocation37_spill] sm:$0xff] }
 0x4b9   : > { %v1419_v22 = vmul.f32 %v5703_v43, %v7318_v36  ;;  %v5705_v42 = vpop.eup %5704  ;;  %v7461_v49 = vpop.permute.xlu2 %2563 }
 0x4ba   : > { %2201 = vmatpush.msra.mxu2 %v5503_v37  ;;  %v1422_v51 = vmul.f32 %v5705_v42, %v7302_v7  ;;  %v7434_v36 = vpop.eup %5706  ;;  %v9316_v37 = vld [vmem:[#allocation35_spill] sm:$0xff] }
 0x4bb   : > { %5144 = vmatmul.msk.f32.gmra.mxu2 %vm1251_vm9, %v1421_v61  ;;  %v1976_v19 = vsel %vm1251_vm9, %v7434_v36, 0.0 }
 0x4bc   : > { %2683 = vrot.lane.b32.xlu1 %v6852_v16, %s6167_s15 }
 0x4bd   : > { %5142 = vmatmul.msk.f32.gmra.mxu3 %vm1251_vm9, %v1419_v22 }
 0x4c0   : > { %1884 = vmax.xlane.f32.xlu2 %v1883_v20 }
 0x4c3   : > { %5145 = vmatmul.msk.f32.gmra.mxu2 %vm1251_vm9, %v1422_v51 }
 0x4c4   : > { %2687 = vrot.lane.b32.xlu1 %v6955_v2, %s6167_s15 }
 0x4c8   : > { %v1386_v31 = vpop.xlane.xlu0 %1385  ;;  %1977 = vadd.xlane.f32.xlu2 %v1976_v19  ;;  %v9317_v19 = vld [vmem:[#allocation61_spill] sm:$0xff] }
 0x4c9   : > { %5708 = vrcp.f32 %v1386_v31  ;;  %v1315_v31 = vsub.f32 %v9317_v19, %v7378_v50 }
 0x4cc   : > { %5515 = vrot.lane.b32.xlu1 %v6781_v12, %s6165_s9 }
 0x4cf   : > { %v5709_v21 = vpop.eup %5708 }
 0x4d0   : > { %v1888_v24 = vpop.xlane.xlu0 %1887  ;;  %v1424_v7 = vmul.f32 %v5709_v21, %v7327_v56 }
 0x4d1   : > { %v1922_v40 = vsub.f32 %v7336_v3, %v1888_v24  ;;  %v7453_v3 = vpop.permute.xlu1 %2695 }
 0x4d2   : > { %5147 = vmatmul.msk.f32.vlgmr.msrb.gmra.mxu3 %vm1251_vm9, %v1424_v7  ;;  %v1346_v7 = vmul.f32 1.442695, %v1315_v31 }
 0x4d3   : > { %v1944_v5 = vmul.f32 1.442695, %v1922_v40  ;;  %2255 = vmatpush.msrb.mxu3 %v5512_v45 }
 0x4d5   : > { %5710 = vpow2.f32 %v1944_v5  ;;  %2256 = vmatpush.msrb.mxu3 %v5513_v35 }
 0x4d7   : > { %2257 = vmatpush.msrb.mxu3 %v5507_v62 }
 0x4d8   : > { %v1891_v53 = vpop.xlane.xlu0 %1890 }
 0x4d9   : > { %2258 = vmatpush.msrb.mxu3 %v5508_v9  ;;  %v1923_v48 = vsub.f32 %v7348_v28, %v1891_v53  ;;  %v9313_v28 = vld [vmem:[#allocation48_spill] sm:$0xff] }
 0x4db   : > { %v7449_v29 = vpop.eup %5710  ;;  %v1946_v17 = vmul.f32 1.442695, %v1923_v48 }
 0x4dc   : > { %v1982_v56 = vsel %vm1251_vm9, %v7449_v29, 0.0 }
 0x4dd   : > { %1983 = vadd.xlane.f32.xlu0 %v1982_v56  ;;  %v7506_v42 = vpop.f32.mrf.mxu2 }
 0x4e0   : > { %5520 = vrot.lane.b32.xlu2 %v7457_v63, %s6165_s9 }
 0x4e5   : > { %v7513_v40 = vpop.f32.mrf.mxu2 }
 0x4e6   : > { %v1383_v34 = vpop.xlane.xlu1 %1382 }
 0x4e7   : > { %5712 = vrcp.f32 %v1383_v34 }
 0x4ed   : > { %v5713_v4 = vpop.eup %5712 }
 0x4ee   : > { %v1389_v38 = vpop.xlane.xlu1 %1388  ;;  %v1423_v15 = vmul.f32 %v5713_v4, %v7360_v0 }
 0x4ef   : > { %5714 = vrcp.f32 %v1389_v38 }
 0x4f0   : > { %5146 = vmatmul.msk.f32.gmra.mxu2 %vm1251_vm9, %v1423_v15 }
 0x4f1   : > { %1604 = vrot.lane.b32.xlu0 %v6696_v41, %s6164_s8 }
 0x4f2   : > { %v1392_v23 = vpop.xlane.xlu2 %1391 }
 0x4f3   : > { %5716 = vrcp.f32 %v1392_v23 }
 0x4f4   : > { %5718 = vpow2.f32 %v1946_v17 }
 0x4f5   : > { %v5715_v59 = vpop.eup %5714 }
 0x4f6   : > { %v1425_v14 = vmul.f32 %v5715_v59, %v7364_v10  ;;  %v9312_v10 = vld [vmem:[#allocation33_spill] sm:$0xff] }
 0x4f8   : > { %5148 = vmatmul.msk.f32.gmra.mxu3 %vm1251_vm9, %v1425_v14  ;;  %5171 = vmatmul.msk.f32.vlgmr.msrb.gmra.mxu2 %vm994_vm14, %v6932_v52 }
 0x4f9   : > { %5231 = vmatpush.xpose.msk.msrb.mxu2 %vm994_vm14, %v7177_v27  ;;  %v5717_v0 = vpop.eup %5716 }
 0x4fa   : > { %v1426_v25 = vmul.f32 %v5717_v0, %v7370_v13  ;;  %v7482_v52 = vpop.eup %5718  ;;  %v7502_v18 = vpop.permute.xlu2 %2626  ;;  %v9318_v0 = vld [vmem:[#allocation19_spill] sm:$0xff] }
 0x4fd   : > { %5232 = vmatpush.xpose.msk.msrb.mxu2 %vm994_vm14, %v7046_v55  ;;  %v1985_v55 = vsel %vm1251_vm9, %v7482_v52, 0.0 }
 0x500   : > { %5149 = vmatmul.msk.f32.gmra.mxu3 %vm1251_vm9, %v1426_v25  ;;  %5172 = vmatmul.msk.f32.gmra.mxu2 %vm994_vm14, %v9312_v10 }
 0x501   : > { %5233 = vmatpush.xpose.msk.msrb.mxu2 %vm994_vm14, %v9313_v28 }
 0x505   : > { %5234 = vmatpush.xpose.msk.msrb.mxu2 %vm994_vm14, %v9314_v30 }
 0x506   : > { %v7486_v27 = vpop.permute.xlu1 %2693 }
 0x508   : > { %5173 = vmatmul.msk.f32.gmra.mxu2 %vm994_vm14, %v9315_v54 }
 0x509   : > { %1986 = vadd.xlane.f32.xlu2 %v1985_v55 }
 0x50e   : > { %v7492_v13 = vpop.permute.xlu1 %2565 }
 0x510   : > { %5174 = vmatmul.msk.f32.gmra.mxu2 %vm994_vm14, %v9316_v37 }
 0x516   : > { %v7496_v33 = vpop.permute.xlu1 %2691 }
 0x51e   : > { %v7498_v43 = vpop.permute.xlu1 %2689 }
 0x520   : > { %v7516_v38 = vpop.f32.mrf.mxu2 }
 0x526   : > { %v7500_v61 = vpop.permute.xlu1 %2681 }
 0x52e   : > { %v7504_v22 = vpop.permute.xlu1 %2683  ;;  %v7521_v59 = vpop.f32.mrf.mxu2 }
 0x533   : > { %v1885_v20 = vpop.xlane.xlu2 %1884 }
 0x534   : > { %v1921_v51 = vsub.f32 %v7427_v58, %v1885_v20 }
 0x536   : > { %v1942_v21 = vmul.f32 1.442695, %v1921_v51  ;;  %v7511_v24 = vpop.permute.xlu1 %2687  ;;  %v7523_v14 = vpop.f32.mrf.mxu2 }
 0x538   : > { %5720 = vpow2.f32 %v1942_v21 }
 0x539   : > { %5722 = vpow2.f32 %v1346_v7  ;;  %v9319_v7 = vld [vmem:[#allocation17_spill] sm:$0xff] }
 0x53b   : > { %v1978_v45 = vpop.xlane.xlu2 %1977 }
 0x53c   : > { %5724 = vrcp.f32 %v1978_v45  ;;  %v9320_v45 = vld [vmem:[#allocation18_spill] sm:$0xff] }
 0x53e   : > { %v5721_v35 = vpop.eup %5720  ;;  %v5516_v5 = vpop.permute.xlu1 %5515 }
 0x53f   : > { %v5517_v62 = vunpack.i.l.bf16 %v5516_v5  ;;  %v1979_v9 = vsel %vm1251_vm9, %v5721_v35, 0.0  ;;  %v5518_v58 = vunpack.i.h.bf16 %v5516_v5  ;;  %v5723_v56 = vpop.eup %5722  ;;  %v7525_v48 = vpop.f32.mrf.mxu2 }
 0x540   : > { %1980 = vadd.xlane.f32.xlu1 %v1979_v9  ;;  %v1393_v53 = vsel %vm1251_vm9, %v5723_v56, 0.0  ;;  %v7561_v5 = vpop.permute.xlu0 %2685 }
 0x541   : > { %2141 = vmatpush.msrb.mxu1 %v5517_v62  ;;  %v975_v62 = vld [vmem:[#allocation7 + $0x8] sm:$0xff] }
 0x542   : > { %v5725_v34 = vpop.eup %5724 }
 0x543   : > { %2142 = vmatpush.msrb.mxu1 %v5518_v58  ;;  %v5521_v50 = vpop.permute.xlu2 %5520  ;;  %v2032_v23 = vmul.f32 %v5725_v34, %v7434_v36  ;;  %v974_v58 = vld [vmem:[#allocation7] sm:$0xff] }
 0x544   : > { %v5522_v4 = vunpack.i.l.bf16 %v5521_v50  ;;  %v5523_v15 = vunpack.i.h.bf16 %v5521_v50 }
 0x546   : > { %2143 = vmatpush.msrb.mxu1 %v5522_v4 }
 0x547   : > { %v7529_v17 = vpop.f32.mrf.mxu2 }
 0x548   : > { %1394 = vadd.xlane.f32.xlu1 %v1393_v53  ;;  %2144 = vmatpush.msrb.mxu1 %v5523_v15 }
 0x549   : > { %5187 = vmatmul.msk.f32.vlgmr.msrb.gmra.mxu1 %vm1251_vm9, %v2032_v23 }
 0x54a   : > { %2447 = vmatpush.msra.mxu1 %v975_v62  ;;  %v9322_v62 = vld [vmem:[#allocation40_spill] sm:$0xff] }
 0x54c   : > { %2448 = vmatpush.msra.mxu1 %v974_v58 }
 0x550   : > { %v1984_v50 = vpop.xlane.xlu0 %1983 }
 0x561   : > { %1606 = vrot.lane.b32.xlu1 %v9318_v0, %s6164_s8 }
 0x563   : > { %v1605_v58 = vpop.permute.xlu0 %1604 }
 0x573   : > { %v7531_v25 = vpop.f32.mrf.mxu2 }
 0x57b   : > { %v1763_v36 = vpop.f32.mrf.mxu2 }
 0x57c   : > { %v1844_v10 = vmul.f32 0.125, %v1763_v36  ;;  %v1987_v36 = vpop.xlane.xlu2 %1986 }
 0x57e   : > { %v7535_v28 = vsel %vm6924_vm6, %v1844_v10, -inf }
 0x57f   : > { %v1892_v30 = vsel %vm1251_vm9, %v7535_v28, -inf }
 0x580   : > { %1893 = vmax.xlane.f32.xlu0 %v1892_v30 }
 0x583   : > { %v1766_v54 = vpop.f32.mrf.mxu2 }
 0x584   : > { %v1845_v55 = vmul.f32 0.125, %v1766_v54 }
 0x586   : > { %v7541_v37 = vsel %vm7056_vm10, %v1845_v55, -inf }
 0x587   : > { %v1895_v20 = vsel %vm1251_vm9, %v7541_v37, -inf }
 0x58b   : > { %1896 = vmax.xlane.f32.xlu1 %v1895_v20  ;;  %v1769_v51 = vpop.f32.mrf.mxu2 }
 0x58c   : > { %v1846_v19 = vmul.f32 0.125, %v1769_v51 }
 0x58e   : > { %v7547_v31 = vsel %vm7026_vm8, %v1846_v19, -inf }
 0x58f   : > { %v1898_v21 = vsel %vm1251_vm9, %v7547_v31, -inf }
 0x590   : > { %1899 = vmax.xlane.f32.xlu2 %v1898_v21  ;;  %v9321_v21 = vld [vmem:[#allocation42_spill] sm:$0xff] }
 0x593   : > { %v1772_v4 = vpop.f32.mrf.mxu2 }
 0x594   : > { %1600 = vrot.lane.b32.xlu0 %v9319_v7, %s6164_s8  ;;  %v1847_v53 = vmul.f32 0.125, %v1772_v4  ;;  %v9328_v4 = vld [vmem:[#allocation60_spill] sm:$0xff] }
 0x596   : > { %v7566_v54 = vsel %vm6972_vm7, %v1847_v53, -inf }
 0x59c   : > { %1594 = vrot.lane.b32.xlu0 %v9320_v45, %s6165_s9 }
 0x5a4   : > { %1592 = vrot.lane.b32.xlu1 %v9319_v7, %s6165_s9 }
 0x5a8   : > { %1602 = vrot.lane.b32.xlu2 %v9320_v45, %s6164_s8 }
 0x5ac   : > { %1596 = vrot.lane.b32.xlu1 %v6696_v41, %s6165_s9 }
 0x5b3   : > { %v1981_v9 = vpop.xlane.xlu1 %1980 }
 0x5b4   : > { %5726 = vrcp.f32 %v1981_v9  ;;  %v9324_v9 = vld [vmem:[#allocation36_spill] sm:$0xff] }
 0x5b5   : > { %5728 = vrcp.f32 %v1984_v50  ;;  %v9326_v50 = vld [vmem:[#allocation59_spill] sm:$0xff] }
 0x5ba   : > { %v5727_v34 = vpop.eup %5726 }
 0x5bb   : > { %v1395_v15 = vpop.xlane.xlu1 %1394  ;;  %v2033_v23 = vmul.f32 %v5727_v34, %v5721_v35  ;;  %v5729_v10 = vpop.eup %5728  ;;  %v1901_v35 = vsel %vm1251_vm9, %v7566_v54, -inf  ;;  %v9327_v34 = vld [vmem:[#allocation57_spill] sm:$0xff] }
 0x5bc   : > { %5730 = vrcp.f32 %v1395_v15  ;;  %v2034_v20 = vmul.f32 %v5729_v10, %v7449_v29  ;;  %v9323_v29 = vld [vmem:[#allocation56_spill] sm:$0xff] }
 0x5bd   : > { %5188 = vmatmul.msk.f32.gmra.mxu1 %vm1251_vm9, %v2033_v23  ;;  %5732 = vrcp.f32 %v1987_v36 }
 0x5c2   : > { %v5731_v30 = vpop.eup %5730 }
 0x5c3   : > { %v1427_v55 = vmul.f32 %v5731_v30, %v5723_v56  ;;  %v5733_v51 = vpop.eup %5732 }
 0x5c4   : > { %v2035_v19 = vmul.f32 %v5733_v51, %v7482_v52  ;;  %v9325_v52 = vld [vmem:[#allocation58_spill] sm:$0xff] }
 0x5c5   : > { %5150 = vmatmul.msk.f32.gmra.mxu3 %vm1251_vm9, %v1427_v55  ;;  %5189 = vmatmul.msk.f32.gmra.mxu1 %vm1251_vm9, %v2034_v20 }
 0x5c6   : > { %1902 = vmax.xlane.f32.xlu0 %v1901_v35 }
 0x5cd   : > { %5179 = vmatmul.msk.f32.vlgmr.msra.gmra.mxu3 %vm994_vm14, %v9321_v21  ;;  %5190 = vmatmul.msk.f32.gmra.mxu1 %vm1251_vm9, %v2035_v19 }
 0x5ce   : > { %5239 = vmatpush.xpose.msk.msra.mxu3 %vm994_vm14, %v9322_v62 }
 0x5d2   : > { %5240 = vmatpush.xpose.msk.msra.mxu3 %vm994_vm14, %v9323_v29 }
 0x5d3   : > { %v1607_v56 = vpop.permute.xlu1 %1606 }
 0x5d4   : > { %5151 = vmatpush.xpose.msk.msrb.mxu0 %vm994_vm14, %v1607_v56 }
 0x5d5   : > { %5180 = vmatmul.msk.f32.gmra.mxu3 %vm994_vm14, %v9324_v9  ;;  %5215 = vmatmul.msk.f32.vlgmr.msra.gmra.mxu1 %vm994_vm14, %v7506_v42  ;;  %v1498_v42 = vpop.f32.mrf.mxu3 }
 0x5d6   : > { %5241 = vmatpush.xpose.msk.msra.mxu3 %vm994_vm14, %v9325_v52 }
 0x5d8   : > { %5152 = vmatpush.xpose.msk.msrb.mxu0 %vm994_vm14, %v1605_v58 }
 0x5da   : > { %5242 = vmatpush.xpose.msk.msra.mxu3 %vm994_vm14, %v9326_v50 }
 0x5dd   : > { %5181 = vmatmul.msk.f32.gmra.mxu3 %vm994_vm14, %v9327_v34  ;;  %5216 = vmatmul.msk.f32.gmra.mxu1 %vm994_vm14, %v7513_v40  ;;  %v1501_v36 = vpop.f32.mrf.mxu3 }
 0x5e5   : > { %5182 = vmatmul.msk.f32.gmra.mxu3 %vm994_vm14, %v9328_v4  ;;  %5217 = vmatmul.msk.f32.gmra.mxu1 %vm994_vm14, %v7516_v38  ;;  %v1504_v38 = vpop.f32.mrf.mxu3 }
 0x5ed   : > { %5218 = vmatmul.msk.f32.gmra.mxu1 %vm994_vm14, %v7521_v59  ;;  %v1507_v55 = vpop.f32.mrf.mxu3 }
 0x5f3   : > { %v1894_v15 = vpop.xlane.xlu0 %1893 }
 0x5f4   : > { %v1924_v23 = vsub.f32 %v7535_v28, %v1894_v15 }
 0x5f5   : > { %5219 = vmatmul.msk.f32.gmra.mxu1 %vm994_vm14, %v1498_v42  ;;  %v1580_v21 = vpop.f32.mrf.mxu3 }
 0x5f6   : > { %v1948_v53 = vmul.f32 1.442695, %v1924_v23 }
 0x5f8   : > { %5734 = vpow2.f32 %v1948_v53 }
 0x5fd   : > { %5220 = vmatmul.msk.f32.gmra.mxu1 %vm994_vm14, %v1501_v36 }
 0x5fe   : > { %v7604_v40 = vpop.eup %5734  ;;  %v1897_v28 = vpop.xlane.xlu1 %1896 }
 0x5ff   : > { %v1988_v10 = vsel %vm1251_vm9, %v7604_v40, 0.0  ;;  %v1925_v23 = vsub.f32 %v7541_v37, %v1897_v28 }
 0x600   : > { %1989 = vadd.xlane.f32.xlu2 %v1988_v10 }
 0x603   : > { %v1900_v30 = vpop.xlane.xlu2 %1899 }
 0x604   : > { %v1926_v56 = vsub.f32 %v7547_v31, %v1900_v30 }
 0x605   : > { %5221 = vmatmul.msk.f32.gmra.mxu1 %vm994_vm14, %v1504_v38  ;;  %v1950_v38 = vmul.f32 1.442695, %v1925_v23 }
 0x606   : > { %v1601_v20 = vpop.permute.xlu0 %1600  ;;  %v1952_v52 = vmul.f32 1.442695, %v1926_v56  ;;  %v9331_v56 = vld [vmem:[#allocation51_spill] sm:$0xff] }
 0x608   : > { %5736 = vpow2.f32 %v1952_v52  ;;  %v9333_v52 = vld [vmem:[#allocation54_spill] sm:$0xff] }
 0x609   : > { %5738 = vpow2.f32 %v1950_v38 }
 0x60b   : > { %v1603_v59 = vpop.permute.xlu2 %1602 }
 0x60c   : > { %5153 = vmatpush.xpose.msk.msrb.mxu0 %vm994_vm14, %v1603_v59 }
 0x60d   : > { %5222 = vmatmul.msk.f32.gmra.mxu1 %vm994_vm14, %v1507_v55 }
 0x60e   : > { %v1595_v51 = vpop.permute.xlu0 %1594  ;;  %v7634_v15 = vpop.eup %5736 }
 0x60f   : > { %v1994_v10 = vsel %vm1251_vm9, %v7634_v15, 0.0 }
 0x610   : > { %5154 = vmatpush.xpose.msk.msrb.mxu0 %vm994_vm14, %v1601_v20 }
 0x615   : > { %5223 = vmatmul.msk.f32.gmra.mxu1 %vm994_vm14, %v7523_v14  ;;  %v1583_v14 = vpop.f32.mrf.mxu3 }
 0x616   : > { %v1593_v35 = vpop.permute.xlu1 %1592 }
 0x617   : > { %5155 = vmatmul.msk.f32.vlgmr.msrb.gmra.mxu0 %vm994_vm14, %v1593_v35 }
 0x61d   : > { %5224 = vmatmul.msk.f32.gmra.mxu1 %vm994_vm14, %v7525_v48  ;;  %v1586_v62 = vpop.f32.mrf.mxu3 }
 0x61e   : > { %v1597_v19 = vpop.permute.xlu1 %1596 }
 0x61f   : > { %5156 = vmatmul.msk.f32.gmra.mxu0 %vm994_vm14, %v1595_v51  ;;  %v5739_v51 = vpop.eup %5738 }
 0x625   : > { %5225 = vmatmul.msk.f32.gmra.mxu1 %vm994_vm14, %v7529_v17 }
 0x627   : > { %5157 = vmatmul.msk.f32.gmra.mxu0 %vm994_vm14, %v1597_v19 }
 0x62d   : > { %5226 = vmatmul.msk.f32.gmra.mxu1 %vm994_vm14, %v7531_v25 }
 0x635   : > { %5227 = vmatmul.msk.f32.gmra.mxu1 %vm994_vm14, %v1580_v21  ;;  %v1991_v21 = vsel %vm1251_vm9, %v5739_v51, 0.0 }
 0x639   : > { %v1903_v30 = vpop.xlane.xlu0 %1902 }
 0x63a   : > { %v1927_v20 = vsub.f32 %v7566_v54, %v1903_v30 }
 0x63c   : > { %v1954_v35 = vmul.f32 1.442695, %v1927_v20 }
 0x63d   : > { %5228 = vmatmul.msk.f32.gmra.mxu1 %vm994_vm14, %v1583_v14 }
 0x63e   : > { %5740 = vpow2.f32 %v1954_v35 }
 0x644   : > { %v5741_v14 = vpop.eup %5740 }
 0x645   : > { %5229 = vmatmul.msk.f32.gmra.mxu1 %vm994_vm14, %v1586_v62 }
 0x648   : > { %v1589_v48 = vpop.f32.mrf.mxu3 }
 0x64d   : > { %5230 = vmatmul.msk.f32.gmra.mxu1 %vm994_vm14, %v1589_v48  ;;  %v1997_v48 = vsel %vm1251_vm9, %v5741_v14, 0.0 }
 0x650   : > { %v1824_v29 = vpop.f32.mrf.mxu3 }
 0x651   : > { %v1848_v17 = vmul.f32 0.125, %v1824_v29  ;;  %v9329_v29 = vld [vmem:[#allocation49_spill] sm:$0xff] }
 0x653   : > { %v1864_v9 = vsel %vm6924_vm6, %v1848_v17, -inf  ;;  %v9330_v17 = vld [vmem:[#allocation34_spill] sm:$0xff] }
 0x654   : > { %v1904_v25 = vsel %vm1251_vm9, %v1864_v9, -inf }
 0x655   : > { %1905 = vmax.xlane.f32.xlu1 %v1904_v25  ;;  %v9332_v25 = vld [vmem:[#allocation55_spill] sm:$0xff] }
 0x658   : > { %v1827_v58 = vpop.f32.mrf.mxu3 }
 0x659   : > { %v1849_v50 = vmul.f32 0.125, %v1827_v58 }
 0x65b   : > { %v1865_v34 = vsel %vm7056_vm10, %v1849_v50, -inf }
 0x65c   : > { %v1907_v4 = vsel %vm1251_vm9, %v1865_v34, -inf }
 0x65d   : > { %1908 = vmax.xlane.f32.xlu0 %v1907_v4 }
 0x660   : > { %v1830_v42 = vpop.f32.mrf.mxu3 }
 0x661   : > { %v1850_v31 = vmul.f32 0.125, %v1830_v42 }
 0x663   : > { %v7639_v53 = vsel %vm7026_vm8, %v1850_v31, -inf }
 0x664   : > { %v1910_v36 = vsel %vm1251_vm9, %v7639_v53, -inf }
 0x665   : > { %1911 = vmax.xlane.f32.xlu1 %v1910_v36  ;;  %1995 = vadd.xlane.f32.xlu0 %v1994_v10 }
 0x668   : > { %v1833_v59 = vpop.f32.mrf.mxu3 }
 0x669   : > { %v1851_v55 = vmul.f32 0.125, %v1833_v59 }
 0x66b   : > { %v1867_v37 = vsel %vm6972_vm7, %v1851_v55, -inf }
 0x66c   : > { %v1913_v28 = vsel %vm1251_vm9, %v1867_v37, -inf }
 0x66d   : > { %1914 = vmax.xlane.f32.xlu1 %v1913_v28 }
 0x673   : > { %v1990_v19 = vpop.xlane.xlu2 %1989 }
 0x674   : > { %5742 = vrcp.f32 %v1990_v19 }
 0x675   : > { %1992 = vadd.xlane.f32.xlu1 %v1991_v21 }
 0x679   : > { %3305 = vrot.lane.b32.xlu0 %v9318_v0, %s6168_s17 }
 0x67a   : > { %v5743_v54 = vpop.eup %5742 }
 0x67b   : > { %v2036_v62 = vmul.f32 %v5743_v54, %v7604_v40 }
 0x67d   : > { %1998 = vadd.xlane.f32.xlu1 %v1997_v48  ;;  %5191 = vmatmul.msk.f32.vlgmr.msra.gmra.mxu2 %vm1251_vm9, %v2036_v62  ;;  %v9334_v62 = vld [vmem:[#allocation46_spill] sm:$0xff]  ;;  %v9335_v48 = vld [vmem:[#allocation47_spill] sm:$0xff] }
 0x67e   : > { %5247 = vmatpush.xpose.msk.msra.mxu2 %vm994_vm14, %v9329_v29  ;;  %v7683_v29 = vpack.i.bf16 %v9335_v48, %v9334_v62 }
 0x681   : > { %5535 = vrot.lane.b32.xlu0 %v9330_v17, %s6167_s15 }
 0x682   : > { %5248 = vmatpush.xpose.msk.msra.mxu2 %vm994_vm14, %v9331_v56 }
 0x686   : > { %5249 = vmatpush.xpose.msk.msra.mxu2 %vm994_vm14, %v9332_v25 }
 0x68a   : > { %5250 = vmatpush.xpose.msk.msra.mxu2 %vm994_vm14, %v9333_v52 }
 0x6c8   : > { %v1906_v40 = vpop.xlane.xlu1 %1905 }
 0x6c9   : > { %v1928_v58 = vsub.f32 %v1864_v9, %v1906_v40  ;;  %v9337_v40 = vld [vmem:[#allocation23_spill] sm:$0xff] }
 0x6cb   : > { %v1956_v50 = vmul.f32 1.442695, %v1928_v58 }
 0x6cd   : > { %5744 = vpow2.f32 %v1956_v50 }
 0x6d0   : > { %v1909_v4 = vpop.xlane.xlu0 %1908 }
 0x6d1   : > { %v1929_v42 = vsub.f32 %v1865_v34, %v1909_v4 }
 0x6d3   : > { %v7665_v31 = vpop.eup %5744  ;;  %v1958_v23 = vmul.f32 1.442695, %v1929_v42  ;;  %v9339_v42 = vld [vmem:[#allocation22_spill] sm:$0xff] }
 0x6d4   : > { %v2000_v36 = vsel %vm1251_vm9, %v7665_v31, 0.0 }
 0x6d5   : > { %5746 = vpow2.f32 %v1958_v23  ;;  %2001 = vadd.xlane.f32.xlu2 %v2000_v36 }
 0x6d8   : > { %v1912_v10 = vpop.xlane.xlu1 %1911  ;;  %v1996_v55 = vpop.xlane.xlu0 %1995 }
 0x6d9   : > { %v1930_v4 = vsub.f32 %v7639_v53, %v1912_v10 }
 0x6db   : > { %v7669_v38 = vpop.eup %5746  ;;  %v1960_v36 = vmul.f32 1.442695, %v1930_v4 }
 0x6dc   : > { %v2003_v30 = vsel %vm1251_vm9, %v7669_v38, 0.0 }
 0x6dd   : > { %2004 = vadd.xlane.f32.xlu1 %v2003_v30  ;;  %v9340_v30 = vld [vmem:[#allocation39_spill] sm:$0xff] }
 0x6e0   : > { %v1915_v9 = vpop.xlane.xlu1 %1914 }
 0x6e1   : > { %v1931_v59 = vsub.f32 %v1867_v37, %v1915_v9  ;;  %v9342_v9 = vld [vmem:[#allocation52_spill] sm:$0xff] }
 0x6e3   : > { %v1962_v20 = vmul.f32 1.442695, %v1931_v59  ;;  %v9344_v59 = vld [vmem:[#allocation53_spill] sm:$0xff] }
 0x6e5   : > { %5748 = vpow2.f32 %v1962_v20  ;;  %v9346_v20 = vld [vmem:[#allocation41_spill] sm:$0xff] }
 0x6e8   : > { %v1993_v34 = vpop.xlane.xlu1 %1992 }
 0x6e9   : > { %5750 = vrcp.f32 %v1993_v34  ;;  %v9347_v34 = vld [vmem:[#allocation44_spill] sm:$0xff] }
 0x6ea   : > { %5752 = vrcp.f32 %v1996_v55  ;;  %v9345_v55 = vld [vmem:[#allocation21_spill] sm:$0xff] }
 0x6eb   : > { %v7673_v28 = vpop.eup %5748  ;;  %v3306_v35 = vpop.permute.xlu0 %3305 }
 0x6ec   : > { %5295 = vmatpush.xpose.msk.msrb.mxu1 %vm994_vm14, %v3306_v35  ;;  %v2009_v19 = vsel %vm1251_vm9, %v7673_v28, 0.0  ;;  %v9348_v35 = vld [vmem:[#allocation45_spill] sm:$0xff] }
 0x6ed   : > { %2010 = vadd.xlane.f32.xlu0 %v2009_v19  ;;  %1598 = vrot.lane.b32.xlu2 %v9318_v0, %s6165_s9  ;;  %v7733_v19 = vpack.i.bf16 %v9348_v35, %v9347_v34 }
 0x6ef   : > { %v5751_v21 = vpop.eup %5750 }
 0x6f0   : > { %v2037_v37 = vmul.f32 %v5751_v21, %v5739_v51  ;;  %v1999_v54 = vpop.xlane.xlu1 %1998  ;;  %v5753_v56 = vpop.eup %5752  ;;  %v9336_v51 = vld [vmem:[#allocation28_spill] sm:$0xff]  ;;  %v9352_v21 = vld [vmem:[#allocation31_spill] sm:$0xff] }
 0x6f1   : > { %5754 = vrcp.f32 %v1999_v54  ;;  %v2038_v25 = vmul.f32 %v5753_v56, %v7634_v15  ;;  %v5539_v58 = vpack.i.bf16 %v9337_v40, %v9336_v51  ;;  %v9338_v15 = vld [vmem:[#allocation29_spill] sm:$0xff] }
 0x6f2   : > { %5192 = vmatmul.msk.f32.gmra.mxu2 %vm1251_vm9, %v2037_v37  ;;  %v5544_v23 = vpack.i.bf16 %v9339_v42, %v9338_v15  ;;  %5756 = vpow2.f32 %v1960_v36 }
 0x6f6   : > { %5530 = vrot.lane.b32.xlu1 %v7683_v29, %s6167_s15 }
 0x6f7   : > { %v5755_v52 = vpop.eup %5754 }
 0x6f8   : > { %v2039_v50 = vmul.f32 %v5755_v52, %v5741_v14  ;;  %v7707_v53 = vpop.eup %5756  ;;  %v9341_v14 = vld [vmem:[#allocation50_spill] sm:$0xff] }
 0x6f9   : > { %v2006_v10 = vsel %vm1251_vm9, %v7707_v53, 0.0 }
 0x6fa   : > { %5193 = vmatmul.msk.f32.gmra.mxu2 %vm1251_vm9, %v2038_v25 }
 0x6fe   : > { %3303 = vrot.lane.b32.xlu1 %v6696_v41, %s6168_s17 }
 0x700   : > { %v7788_v51 = vpop.f32.mrf.mxu2 }
 0x701   : > { %5540 = vrot.lane.b32.xlu0 %v5539_v58, %s6167_s15  ;;  %9354 = vst [vmem:[#allocation33_spill] sm:$0xff] %v7788_v51 }
 0x702   : > { %5194 = vmatmul.msk.f32.gmra.mxu2 %vm1251_vm9, %v2039_v50  ;;  %v5536_v50 = vpop.permute.xlu0 %5535 }
 0x706   : > { %5550 = vrot.lane.b32.xlu1 %v7457_v63, %s6167_s15 }
 0x709   : > { %5545 = vrot.lane.b32.xlu0 %v5544_v23, %s6167_s15 }
 0x70a   : > { %5235 = vmatmul.msk.f32.vlgmr.msrb.gmra.mxu2 %vm994_vm14, %v9340_v30 }
 0x70e   : > { %3299 = vrot.lane.b32.xlu1 %v9319_v7, %s6168_s17 }
 0x711   : > { %3291 = vrot.lane.b32.xlu0 %v9319_v7, %s6169_s19  ;;  %v9343_v7 = vld [vmem:[#allocation20_spill] sm:$0xff] }
 0x712   : > { %5236 = vmatmul.msk.f32.gmra.mxu2 %vm994_vm14, %v9341_v14 }
 0x716   : > { %2007 = vadd.xlane.f32.xlu2 %v2006_v10  ;;  %3366 = vrot.lane.b32.xlu1 %v6770_v32, %s6168_s17 }
 0x719   : > { %3293 = vrot.lane.b32.xlu0 %v9320_v45, %s6169_s19 }
 0x71a   : > { %5237 = vmatmul.msk.f32.gmra.mxu2 %vm994_vm14, %v9342_v9 }
 0x71e   : > { %3360 = vrot.lane.b32.xlu1 %v9343_v7, %s6168_s17 }
 0x721   : > { %3364 = vrot.lane.b32.xlu0 %v6742_v6, %s6168_s17 }
 0x722   : > { %5238 = vmatmul.msk.f32.gmra.mxu2 %vm994_vm14, %v9344_v59 }
 0x726   : > { %3297 = vrot.lane.b32.xlu1 %v9318_v0, %s6169_s19  ;;  %v9349_v0 = vld [vmem:[#allocation27_spill] sm:$0xff] }
 0x729   : > { %3362 = vrot.lane.b32.xlu0 %v9345_v55, %s6168_s17 }
 0x72a   : > { %5251 = vmatmul.msk.f32.vlgmr.msra.gmra.mxu2 %vm994_vm14, %v9346_v20 }
 0x72e   : > { %5525 = vrot.lane.b32.xlu2 %v7733_v19, %s6167_s15  ;;  %3352 = vrot.lane.b32.xlu1 %v9343_v7, %s6169_s19 }
 0x731   : > { %3356 = vrot.lane.b32.xlu0 %v6742_v6, %s6169_s19  ;;  %v9350_v6 = vld [vmem:[#allocation25_spill] sm:$0xff] }
 0x732   : > { %5252 = vmatmul.msk.f32.gmra.mxu2 %vm994_vm14, %v7376_v11  ;;  %v9351_v11 = vld [vmem:[#allocation32_spill] sm:$0xff] }
 0x736   : > { %3301 = vrot.lane.b32.xlu2 %v9320_v45, %s6168_s17  ;;  %3427 = vrot.lane.b32.xlu1 %v6830_v60, %s6168_s17 }
 0x739   : > { %3425 = vrot.lane.b32.xlu0 %v9349_v0, %s6168_s17 }
 0x73a   : > { %5253 = vmatmul.msk.f32.gmra.mxu2 %vm994_vm14, %v7374_v39 }
 0x73e   : > { %3295 = vrot.lane.b32.xlu2 %v6696_v41, %s6169_s19 }
 0x741   : > { %3421 = vrot.lane.b32.xlu0 %v9350_v6, %s6168_s17 }
 0x742   : > { %5254 = vmatmul.msk.f32.gmra.mxu2 %vm994_vm14, %v7502_v18  ;;  %v1641_v18 = vpop.f32.mrf.mxu0 }
 0x743   : > { %v1836_v48 = vmul.f32 0.125, %v1641_v18 }
 0x745   : > { %v7778_v56 = vsel %vm6924_vm6, %v1836_v48, -inf  ;;  %v5537_v48 = vunpack.i.l.bf16 %v5536_v50 }
 0x746   : > { %5555 = vrot.lane.b32.xlu2 %v9351_v11, %s6167_s15 }
 0x748   : > { %v2002_v45 = vpop.xlane.xlu2 %2001 }
 0x749   : > { %5758 = vrcp.f32 %v2002_v45  ;;  %3413 = vrot.lane.b32.xlu0 %v9350_v6, %s6169_s19 }
 0x74e   : > { %5560 = vrot.lane.b32.xlu2 %v9352_v21, %s6167_s15  ;;  %s5067_s15 = sshll.u32 %s335_s14, 7 }
 0x74f   : > { %v5759_v39 = vpop.eup %5758 }
 0x750   : > { %v2040_v41 = vmul.f32 %v5759_v39, %v7665_v31  ;;  %v1599_v37 = vpop.permute.xlu2 %1598  ;;  %v2005_v54 = vpop.xlane.xlu1 %2004 }
 0x751   : > { %5760 = vrcp.f32 %v2005_v54  ;;  %5158 = vmatmul.msk.f32.gmra.mxu0 %vm994_vm14, %v1599_v37 }
 0x752   : > { %5195 = vmatmul.msk.f32.vlgmr.msrb.gmra.mxu3 %vm1251_vm9, %v2040_v41 }
 0x753   : > { %5255 = vmatpush.xpose.msk.msrb.mxu3 %vm994_vm14, %v7453_v3  ;;  %v1644_v3 = vpop.f32.mrf.mxu0 }
 0x754   : > { %v1837_v23 = vmul.f32 0.125, %v1644_v3 }
 0x756   : > { %3354 = vrot.lane.b32.xlu2 %v9345_v55, %s6169_s19  ;;  %v7807_v14 = vsel %vm7056_vm10, %v1837_v23, -inf }
 0x757   : > { %v5761_v62 = vpop.eup %5760  ;;  %5256 = vmatpush.xpose.msk.msrb.mxu3 %vm994_vm14, %v7486_v27  ;;  %v1868_v27 = vsel %vm1251_vm9, %v7778_v56, -inf  ;;  %v1871_v7 = vsel %vm1251_vm9, %v7807_v14, -inf }
 0x758   : > { %v2041_v31 = vmul.f32 %v5761_v62, %v7669_v38  ;;  %v9353_v38 = vld [vmem:[#allocation26_spill] sm:$0xff] }
 0x75a   : > { %5196 = vmatmul.msk.f32.gmra.mxu3 %vm1251_vm9, %v2041_v31 }
 0x75b   : > { %5257 = vmatpush.xpose.msk.msrb.mxu3 %vm994_vm14, %v7496_v33  ;;  %v1647_v25 = vpop.f32.mrf.mxu0 }
 0x75c   : > { %v1838_v52 = vmul.f32 0.125, %v1647_v25 }
 0x75e   : > { %3358 = vrot.lane.b32.xlu2 %v6770_v32, %s6169_s19  ;;  %v7792_v40 = vsel %vm7026_vm8, %v1838_v52, -inf }
 0x75f   : > { %5258 = vmatpush.xpose.msk.msrb.mxu3 %vm994_vm14, %v7498_v43  ;;  %v1874_v43 = vsel %vm1251_vm9, %v7792_v40, -inf }
 0x760   : > { %1869 = vmax.xlane.f32.xlu1 %v1868_v27  ;;  %v2011_v15 = vpop.xlane.xlu0 %2010 }
 0x766   : > { %3423 = vrot.lane.b32.xlu2 %v9353_v38, %s6168_s17 }
 0x768   : > { %v5531_v33 = vpop.permute.xlu1 %5530 }
 0x769   : > { %v5532_v18 = vunpack.i.l.bf16 %v5531_v33  ;;  %v5533_v62 = vunpack.i.h.bf16 %v5531_v33 }
 0x770   : > { %v3304_v32 = vpop.permute.xlu1 %3303 }
 0x771   : > { %5296 = vmatpush.xpose.msk.msrb.mxu1 %vm994_vm14, %v3304_v32 }
 0x773   : > { %1875 = vmax.xlane.f32.xlu0 %v1874_v43  ;;  %v5541_v30 = vpop.permute.xlu0 %5540 }
 0x774   : > { %v5542_v25 = vunpack.i.l.bf16 %v5541_v30  ;;  %v5543_v43 = vunpack.i.h.bf16 %v5541_v30 }
 0x775   : > { %v7797_v58 = vpop.f32.mrf.mxu2 }
 0x776   : > { %9355 = vst [vmem:[#allocation48_spill] sm:$0xff] %v7797_v58 }
 0x778   : > { %v5551_v55 = vpop.permute.xlu1 %5550 }
 0x779   : > { %3415 = vrot.lane.b32.xlu1 %v9353_v38, %s6169_s19 }
 0x77b   : > { %v5546_v39 = vpop.permute.xlu0 %5545 }
 0x77c   : > { %v5547_v33 = vunpack.i.l.bf16 %v5546_v39  ;;  %v5548_v23 = vunpack.i.h.bf16 %v5546_v39 }
 0x77d   : > { %v7801_v4 = vpop.f32.mrf.mxu2 }
 0x77e   : > { %9356 = vst [vmem:[#allocation37_spill] sm:$0xff] %v7801_v4 }
 0x780   : > { %v3300_v27 = vpop.permute.xlu1 %3299 }
 0x783   : > { %v3292_v32 = vpop.permute.xlu0 %3291 }
 0x785   : > { %v7803_v42 = vpop.f32.mrf.mxu2 }
 0x786   : > { %9357 = vst [vmem:[#allocation38_spill] sm:$0xff] %v7803_v42 }
 0x789   : > { %v2008_v36 = vpop.xlane.xlu2 %2007 }
 0x78a   : > { %5762 = vrcp.f32 %v2008_v36  ;;  %v7834_v36 = vpop.permute.xlu1 %3366 }
 0x78b   : > { %5764 = vrcp.f32 %v2011_v15  ;;  %v9358_v15 = vld [vmem:[#allocation43_spill] sm:$0xff] }
 0x78d   : > { %v2547_v10 = vpop.f32.mrf.mxu2 }
 0x78e   : > { %v2742_v9 = vmul.f32 0.125, %v2547_v10 }
 0x78f   : > { %1872 = vmax.xlane.f32.xlu2 %v1871_v7 }
 0x790   : > { %v5763_v59 = vpop.eup %5762  ;;  %v7813_v20 = vsel %vm6924_vm6, %v2742_v9, -inf  ;;  %v5552_v9 = vunpack.i.l.bf16 %v5551_v55 }
 0x791   : > { %v5526_v34 = vpop.permute.xlu2 %5525  ;;  %v2774_v35 = vsel %vm1251_vm9, %v7813_v20, -inf  ;;  %v2042_v6 = vmul.f32 %v5763_v59, %v7707_v53  ;;  %v5765_v54 = vpop.eup %5764  ;;  %v5538_v53 = vunpack.i.h.bf16 %v5536_v50  ;;  %v5553_v59 = vunpack.i.h.bf16 %v5551_v55 }
 0x792   : > { %v5527_v45 = vunpack.i.l.bf16 %v5526_v34  ;;  %2775 = vmax.xlane.f32.xlu0 %v2774_v35  ;;  %v5528_v41 = vunpack.i.h.bf16 %v5526_v34  ;;  %v2043_v3 = vmul.f32 %v5765_v54, %v7673_v28  ;;  %v3294_v34 = vpop.permute.xlu0 %3293 }
 0x793   : > { %5197 = vmatmul.msk.f32.gmra.mxu3 %vm1251_vm9, %v2042_v6 }
 0x794   : > { %2986 = vmatpush.msrb.mxu2 %v5527_v45  ;;  %v7845_v45 = vpop.permute.xlu1 %3360 }
 0x795   : > { %v2550_v37 = vpop.f32.mrf.mxu2 }
 0x796   : > { %2987 = vmatpush.msrb.mxu2 %v5528_v41  ;;  %v2743_v38 = vmul.f32 0.125, %v2550_v37 }
 0x798   : > { %2988 = vmatpush.msrb.mxu2 %v5532_v18  ;;  %v7827_v28 = vsel %vm7056_vm10, %v2743_v38, -inf }
 0x799   : > { %v3302_v31 = vpop.permute.xlu2 %3301  ;;  %v2777_v50 = vsel %vm1251_vm9, %v7827_v28, -inf }
 0x79a   : > { %2989 = vmatpush.msrb.mxu2 %v5533_v62  ;;  %5297 = vmatpush.xpose.msk.msrb.mxu1 %vm994_vm14, %v3302_v31 }
 0x79b   : > { %5198 = vmatmul.msk.f32.gmra.mxu3 %vm1251_vm9, %v2043_v3 }
 0x79c   : > { %3092 = vmatpush.msra.mxu2 %v5537_v48  ;;  %v3298_v37 = vpop.permute.xlu1 %3297 }
 0x79d   : > { %v7822_v52 = vpop.f32.mrf.mxu2 }
 0x79e   : > { %3093 = vmatpush.msra.mxu2 %v5538_v53  ;;  %5298 = vmatpush.xpose.msk.msrb.mxu1 %vm994_vm14, %v3300_v27 }
 0x7a0   : > { %3094 = vmatpush.msra.mxu2 %v5542_v25 }
 0x7a1   : > { %5299 = vmatmul.msk.f32.vlgmr.msrb.gmra.mxu1 %vm994_vm14, %v3292_v32  ;;  %v3296_v55 = vpop.permute.xlu2 %3295 }
 0x7a2   : > { %3095 = vmatpush.msra.mxu2 %v5547_v33 }
 0x7a3   : > { %5243 = vmatmul.msk.f32.vlgmr.msra.gmra.mxu3 %vm994_vm14, %v9358_v15  ;;  %2778 = vmax.xlane.f32.xlu1 %v2777_v50  ;;  %v2744_v50 = vmul.f32 0.125, %v7822_v52 }
 0x7a4   : > { %3039 = vmatpush.msra.mxu3 %v5543_v43 }
 0x7a5   : > { %v2556_v10 = vpop.f32.mrf.mxu2  ;;  %v7884_v15 = vsel %vm7026_vm8, %v2744_v50, -inf }
 0x7a6   : > { %v2745_v7 = vmul.f32 0.125, %v2556_v10  ;;  %3040 = vmatpush.msra.mxu3 %v5548_v23  ;;  %v7890_v23 = vpop.permute.xlu0 %3364 }
 0x7a8   : > { %3041 = vmatpush.msra.mxu3 %v5552_v9  ;;  %v7838_v30 = vsel %vm6972_vm7, %v2745_v7, -inf }
 0x7a9   : > { %5300 = vmatmul.msk.f32.gmra.mxu1 %vm994_vm14, %v3294_v34  ;;  %v2783_v35 = vsel %vm1251_vm9, %v7838_v30, -inf  ;;  %v5556_v18 = vpop.permute.xlu2 %5555  ;;  %v7908_v34 = vpop.permute.xlu1 %3352 }
 0x7aa   : > { %3042 = vmatpush.msra.mxu3 %v5553_v59  ;;  %2784 = vmax.xlane.f32.xlu0 %v2783_v35  ;;  %v5557_v62 = vunpack.i.l.bf16 %v5556_v18  ;;  %v5558_v31 = vunpack.i.h.bf16 %v5556_v18 }
 0x7ab   : > { %5244 = vmatmul.msk.f32.gmra.mxu3 %vm994_vm14, %v7384_v47 }
 0x7ad   : > { %v2669_v6 = vpop.f32.mrf.mxu2 }
 0x7ae   : > { %v2750_v10 = vmul.f32 0.125, %v2669_v6  ;;  %v7898_v9 = vpop.permute.xlu0 %3362 }
 0x7b0   : > { %v7894_v52 = vsel %vm6924_vm6, %v2750_v10, -inf }
 0x7b1   : > { %5301 = vmatmul.msk.f32.gmra.mxu1 %vm994_vm14, %v3296_v55  ;;  %v5561_v48 = vpop.permute.xlu2 %5560  ;;  %v7916_v55 = vpop.permute.xlu1 %3427 }
 0x7b2   : > { %v5562_v27 = vunpack.i.l.bf16 %v5561_v48  ;;  %v5563_v38 = vunpack.i.h.bf16 %v5561_v48 }
 0x7b3   : > { %5245 = vmatmul.msk.f32.gmra.mxu3 %vm994_vm14, %v7461_v49 }
 0x7b5   : > { %v2672_v39 = vpop.f32.mrf.mxu2 }
 0x7b6   : > { %v2751_v41 = vmul.f32 0.125, %v2672_v39  ;;  %v7902_v7 = vpop.permute.xlu0 %3356 }
 0x7b8   : > { %v7852_v54 = vsel %vm7056_vm10, %v2751_v41, -inf }
 0x7b9   : > { %5302 = vmatmul.msk.f32.gmra.mxu1 %vm994_vm14, %v3298_v37  ;;  %v2801_v47 = vsel %vm1251_vm9, %v7852_v54, -inf }
 0x7ba   : > { %2802 = vmax.xlane.f32.xlu0 %v2801_v47 }
 0x7bb   : > { %5246 = vmatmul.msk.f32.gmra.mxu3 %vm994_vm14, %v7492_v13 }
 0x7bc   : > { %3488 = vrot.lane.b32.xlu1 %v6955_v2, %s6168_s17 }
 0x7bd   : > { %v2675_v49 = vpop.f32.mrf.mxu2 }
 0x7c3   : > { %5259 = vmatmul.msk.f32.vlgmr.msrb.gmra.mxu3 %vm994_vm14, %v7500_v61 }
 0x7c4   : > { %3145 = vmatpush.msrb.mxu3 %v5557_v62  ;;  %3486 = vrot.lane.b32.xlu1 %v6943_v44, %s6168_s17  ;;  %v7930_v62 = vpop.permute.xlu2 %3354 }
 0x7c5   : > { %v2678_v3 = vpop.f32.mrf.mxu2 }
 0x7c6   : > { %v2753_v53 = vmul.f32 0.125, %v2678_v3  ;;  %3146 = vmatpush.msrb.mxu3 %v5558_v31 }
 0x7c8   : > { %3147 = vmatpush.msrb.mxu3 %v5562_v27  ;;  %v7867_v13 = vsel %vm6972_vm7, %v2753_v53, -inf }
 0x7c9   : > { %v2807_v25 = vsel %vm1251_vm9, %v7867_v13, -inf }
 0x7ca   : > { %3148 = vmatpush.msrb.mxu3 %v5563_v38  ;;  %2808 = vmax.xlane.f32.xlu0 %v2807_v25  ;;  %v2752_v38 = vmul.f32 0.125, %v2675_v49 }
 0x7cb   : > { %5260 = vmatmul.msk.f32.gmra.mxu3 %vm994_vm14, %v7504_v22  ;;  %v2780_v22 = vsel %vm1251_vm9, %v7884_v15, -inf }
 0x7cc   : > { %v7942_v25 = vpop.permute.xlu2 %3358 }
 0x7ce   : > { %v1650_v61 = vpop.f32.mrf.mxu0 }
 0x7cf   : > { %v1839_v32 = vmul.f32 0.125, %v1650_v61 }
 0x7d1   : > { %v7875_v33 = vsel %vm6972_vm7, %v1839_v32, -inf }
 0x7d2   : > { %v1877_v43 = vsel %vm1251_vm9, %v7875_v33, -inf }
 0x7d3   : > { %1878 = vmax.xlane.f32.xlu2 %v1877_v43  ;;  %5261 = vmatmul.msk.f32.gmra.mxu3 %vm994_vm14, %v7561_v5  ;;  %v2798_v5 = vsel %vm1251_vm9, %v7894_v52, -inf  ;;  %v7922_v41 = vpop.xlane.xlu1 %1869 }
 0x7d5   : > { %v7906_v59 = vpop.f32.mrf.mxu3 }
 0x7d6   : > { %9359 = vst [vmem:[#allocation35_spill] sm:$0xff] %v7906_v59 }
 0x7db   : > { %5262 = vmatmul.msk.f32.gmra.mxu3 %vm994_vm14, %v7511_v24  ;;  %2781 = vmax.xlane.f32.xlu2 %v2780_v22  ;;  %v7904_v24 = vpop.permute.xlu0 %3425  ;;  %v7946_v22 = vsel %vm7026_vm8, %v2752_v38, -inf }
 0x7dd   : > { %v7914_v6 = vpop.f32.mrf.mxu3 }
 0x7de   : > { %9360 = vst [vmem:[#allocation61_spill] sm:$0xff] %v7914_v6 }
 0x7e3   : > { %v7912_v35 = vpop.permute.xlu0 %3421 }
 0x7eb   : > { %v7918_v39 = vpop.permute.xlu0 %3413  ;;  %v7928_v47 = vpop.permute.xlu1 %3415 }
 0x7ee   : > { %2799 = vmax.xlane.f32.xlu1 %v2798_v5 }
 0x7f3   : > { %3417 = vrot.lane.b32.xlu2 %v9349_v0, %s6169_s19  ;;  %v7924_v37 = vpop.xlane.xlu0 %1875 }
 0x807   : > { %3419 = vrot.lane.b32.xlu1 %v6830_v60, %s6169_s19  ;;  %v7932_v60 = vpop.xlane.xlu0 %2775 }
 0x816   : > { %v7920_v0 = vpop.f32.mrf.mxu3  ;;  %v7934_v31 = vpop.xlane.xlu1 %2778 }
 0x817   : > { %9361 = vst [vmem:[#allocation19_spill] sm:$0xff] %v7920_v0 }
 0x81d   : > { %v2785_v61 = vpop.xlane.xlu0 %2784 }
 0x81e   : > { %v7926_v18 = vpop.f32.mrf.mxu3  ;;  %v2825_v10 = vsub.f32 %v7838_v30, %v2785_v61 }
 0x81f   : > { %9362 = vst [vmem:[#allocation17_spill] sm:$0xff] %v7926_v18 }
 0x826   : > { %v2608_v48 = vpop.f32.mrf.mxu3 }
 0x827   : > { %v2746_v3 = vmul.f32 0.125, %v2608_v48  ;;  %v2804_v48 = vsel %vm1251_vm9, %v7946_v22, -inf }
 0x829   : > { %v7938_v27 = vsel %vm6924_vm6, %v2746_v3, -inf  ;;  %v2844_v3 = vmul.f32 1.442695, %v2825_v10 }
 0x82a   : > { %v2786_v53 = vsel %vm1251_vm9, %v7938_v27, -inf }
 0x82b   : > { %2787 = vmax.xlane.f32.xlu2 %v2786_v53  ;;  %v7958_v53 = vpop.permute.xlu2 %3423  ;;  %5766 = vpow2.f32 %v2844_v3 }
 0x82e   : > { %v2611_v32 = vpop.f32.mrf.mxu3  ;;  %v3489_v50 = vpop.permute.xlu1 %3488 }
 0x82f   : > { %v2747_v43 = vmul.f32 0.125, %v2611_v32  ;;  %5319 = vmatpush.xpose.msk.msra.mxu1 %vm994_vm14, %v3489_v50 }
 0x831   : > { %v7952_v5 = vsel %vm7056_vm10, %v2747_v43, -inf  ;;  %v7969_v10 = vpop.eup %5766 }
 0x832   : > { %v2789_v49 = vsel %vm1251_vm9, %v7952_v5, -inf  ;;  %v2879_v3 = vsel %vm1251_vm9, %v7969_v10, 0.0 }
 0x833   : > { %2790 = vmax.xlane.f32.xlu1 %v2789_v49  ;;  %2805 = vmax.xlane.f32.xlu2 %v2804_v48  ;;  %v7967_v43 = vpop.xlane.xlu2 %1872 }
 0x836   : > { %v2614_v38 = vpop.f32.mrf.mxu3  ;;  %v3487_v50 = vpop.permute.xlu1 %3486 }
 0x837   : > { %v2748_v32 = vmul.f32 0.125, %v2614_v38  ;;  %5320 = vmatpush.xpose.msk.msra.mxu1 %vm994_vm14, %v3487_v50 }
 0x839   : > { %v7963_v30 = vsel %vm7026_vm8, %v2748_v32, -inf }
 0x83a   : > { %v2792_v61 = vsel %vm1251_vm9, %v7963_v30, -inf }
 0x83b   : > { %2793 = vmax.xlane.f32.xlu1 %v2792_v61 }
 0x83e   : > { %v2617_v49 = vpop.f32.mrf.mxu3 }
 0x83f   : > { %v2749_v48 = vmul.f32 0.125, %v2617_v49 }
 0x841   : > { %v7973_v38 = vsel %vm6972_vm7, %v2749_v48, -inf }
 0x842   : > { %v2795_v32 = vsel %vm1251_vm9, %v7973_v38, -inf }
 0x843   : > { %2880 = vadd.xlane.f32.xlu1 %v2879_v3  ;;  %2796 = vmax.xlane.f32.xlu0 %v2795_v32 }
 0x846   : > { %v7979_v50 = vpop.xlane.xlu2 %1878  ;;  %v2730_v61 = vpop.f32.mrf.mxu3 }
 0x847   : > { %v2754_v21 = vmul.f32 0.125, %v2730_v61  ;;  %v7994_v61 = vpop.f32.mrf.mxu1 }
 0x848   : > { %9363 = vst [vmem:[#allocation18_spill] sm:$0xff] %v7994_v61 }
 0x849   : > { %v7983_v11 = vsel %vm6924_vm6, %v2754_v21, -inf }
 0x84a   : > { %v2810_v49 = vsel %vm1251_vm9, %v7983_v11, -inf }
 0x84b   : > { %2811 = vmax.xlane.f32.xlu0 %v2810_v49  ;;  %v2822_v49 = vsub.f32 %v7813_v20, %v7932_v60  ;;  %v2823_v20 = vsub.f32 %v7827_v28, %v7934_v31 }
 0x84e   : > { %v2733_v48 = vpop.f32.mrf.mxu3  ;;  %v2782_v18 = vpop.xlane.xlu2 %2781 }
 0x84f   : > { %v2755_v0 = vmul.f32 0.125, %v2733_v48  ;;  %v2824_v6 = vsub.f32 %v7884_v15, %v2782_v18  ;;  %v8004_v18 = vpop.f32.mrf.mxu1  ;;  %v2838_v48 = vmul.f32 1.442695, %v2822_v49  ;;  %v2840_v49 = vmul.f32 1.442695, %v2823_v20 }
 0x850   : > { %9364 = vst [vmem:[#allocation42_spill] sm:$0xff] %v8004_v18 }
 0x851   : > { %v7990_v3 = vsel %vm7056_vm10, %v2755_v0, -inf  ;;  %v2842_v21 = vmul.f32 1.442695, %v2824_v6 }
 0x852   : > { %v2813_v32 = vsel %vm1251_vm9, %v7990_v3, -inf }
 0x853   : > { %2814 = vmax.xlane.f32.xlu0 %v2813_v32  ;;  %5768 = vpow2.f32 %v2842_v21 }
 0x854   : > { %5770 = vpow2.f32 %v2838_v48 }
 0x855   : > { %5772 = vpow2.f32 %v2840_v49 }
 0x856   : > { %v2736_v59 = vpop.f32.mrf.mxu3 }
 0x857   : > { %v2756_v42 = vmul.f32 0.125, %v2736_v59  ;;  %v8018_v21 = vpop.f32.mrf.mxu1 }
 0x858   : > { %9365 = vst [vmem:[#allocation40_spill] sm:$0xff] %v8018_v21 }
 0x859   : > { %v8000_v15 = vsel %vm7026_vm8, %v2756_v42, -inf  ;;  %v8006_v32 = vpop.eup %5768 }
 0x85a   : > { %v2816_v0 = vsel %vm1251_vm9, %v8000_v15, -inf  ;;  %v2876_v42 = vsel %vm1251_vm9, %v8006_v32, 0.0 }
 0x85b   : > { %2817 = vmax.xlane.f32.xlu2 %v2816_v0  ;;  %v8020_v0 = vpop.eup %5770 }
 0x85c   : > { %v2870_v31 = vsel %vm1251_vm9, %v8020_v0, 0.0 }
 0x85e   : > { %v2739_v17 = vpop.f32.mrf.mxu3 }
 0x85f   : > { %v2757_v6 = vmul.f32 0.125, %v2739_v17  ;;  %v8027_v4 = vpop.f32.mrf.mxu1 }
 0x860   : > { %9366 = vst [vmem:[#allocation56_spill] sm:$0xff] %v8027_v4 }
 0x861   : > { %v8012_v59 = vsel %vm6972_vm7, %v2757_v6, -inf  ;;  %v2800_v17 = vpop.xlane.xlu1 %2799  ;;  %v8025_v6 = vpop.eup %5772 }
 0x862   : > { %v2819_v60 = vsel %vm1251_vm9, %v8012_v59, -inf  ;;  %v2830_v28 = vsub.f32 %v7894_v52, %v2800_v17 }
 0x863   : > { %2877 = vadd.xlane.f32.xlu2 %v2876_v42  ;;  %2820 = vmax.xlane.f32.xlu0 %v2819_v60  ;;  %v2873_v42 = vsel %vm1251_vm9, %v8025_v6, 0.0 }
 0x864   : > { %v2854_v48 = vmul.f32 1.442695, %v2830_v28  ;;  %v8041_v28 = vpop.permute.xlu2 %3417 }
 0x866   : > { %5774 = vpow2.f32 %v2854_v48  ;;  %v2803_v48 = vpop.xlane.xlu0 %2802 }
 0x867   : > { %v8033_v60 = vpop.f32.mrf.mxu1 }
 0x868   : > { %9367 = vst [vmem:[#allocation36_spill] sm:$0xff] %v8033_v60  ;;  %v2831_v60 = vsub.f32 %v7852_v54, %v2803_v48 }
 0x86b   : > { %2871 = vadd.xlane.f32.xlu0 %v2870_v31 }
 0x86c   : > { %v8031_v20 = vpop.eup %5774 }
 0x86d   : > { %v2894_v52 = vsel %vm1251_vm9, %v8031_v20, 0.0 }
 0x86e   : > { %v2809_v54 = vpop.xlane.xlu0 %2808 }
 0x86f   : > { %v8037_v49 = vpop.f32.mrf.mxu1 }
 0x870   : > { %9368 = vst [vmem:[#allocation58_spill] sm:$0xff] %v8037_v49 }
 0x873   : > { %2874 = vadd.xlane.f32.xlu0 %v2873_v42 }
 0x877   : > { %v8039_v17 = vpop.f32.mrf.mxu1 }
 0x878   : > { %9369 = vst [vmem:[#allocation59_spill] sm:$0xff] %v8039_v17 }
 0x879   : > { %v8045_v58 = vpop.permute.xlu1 %3419 }
 0x87b   : > { %2895 = vadd.xlane.f32.xlu0 %v2894_v52  ;;  %v2856_v52 = vmul.f32 1.442695, %v2831_v60 }
 0x87f   : > { %v8043_v31 = vpop.f32.mrf.mxu1 }
 0x880   : > { %9370 = vst [vmem:[#allocation57_spill] sm:$0xff] %v8043_v31 }
 0x887   : > { %v8048_v4 = vpop.f32.mrf.mxu1 }
 0x89e   : > { %v2788_v42 = vpop.xlane.xlu2 %2787 }
 0x89f   : > { %v2826_v51 = vsub.f32 %v7938_v27, %v2788_v42  ;;  %v8057_v42 = vpop.f32.mrf.mxu1 }
 0x8a1   : > { %v2846_v21 = vmul.f32 1.442695, %v2826_v51 }
 0x8a3   : > { %5776 = vpow2.f32 %v2846_v21 }
 0x8a4   : > { %5778 = vpow2.f32 %v2856_v52 }
 0x8a6   : > { %v2791_v49 = vpop.xlane.xlu1 %2790  ;;  %v2806_v18 = vpop.xlane.xlu2 %2805 }
 0x8a7   : > { %v2827_v17 = vsub.f32 %v7952_v5, %v2791_v49  ;;  %v2832_v12 = vsub.f32 %v7946_v22, %v2806_v18 }
 0x8a9   : > { %v8052_v61 = vpop.eup %5776  ;;  %v2848_v31 = vmul.f32 1.442695, %v2827_v17  ;;  %v2858_v51 = vmul.f32 1.442695, %v2832_v12  ;;  %v2833_v17 = vsub.f32 %v7867_v13, %v2809_v54  ;;  %v8069_v12 = vpop.f32.mrf.mxu1 }
 0x8aa   : > { %v2882_v27 = vsel %vm1251_vm9, %v8052_v61, 0.0  ;;  %v8059_v60 = vpop.eup %5778  ;;  %9371 = vst [vmem:[#allocation60_spill] sm:$0xff] %v8069_v12 }
 0x8ab   : > { %5780 = vpow2.f32 %v2848_v31  ;;  %2883 = vadd.xlane.f32.xlu2 %v2882_v27  ;;  %v2897_v31 = vsel %vm1251_vm9, %v8059_v60, 0.0  ;;  %v2860_v48 = vmul.f32 1.442695, %v2833_v17 }
 0x8ac   : > { %5782 = vpow2.f32 %v2858_v51 }
 0x8ae   : > { %v2794_v21 = vpop.xlane.xlu1 %2793 }
 0x8af   : > { %v2828_v5 = vsub.f32 %v7963_v30, %v2794_v21 }
 0x8b1   : > { %v8062_v49 = vpop.eup %5780  ;;  %v2850_v22 = vmul.f32 1.442695, %v2828_v5  ;;  %v8082_v17 = vpop.f32.mrf.mxu1 }
 0x8b2   : > { %v2885_v18 = vsel %vm1251_vm9, %v8062_v49, 0.0  ;;  %v8071_v30 = vpop.eup %5782 }
 0x8b3   : > { %5784 = vpow2.f32 %v2850_v22  ;;  %2886 = vadd.xlane.f32.xlu1 %v2885_v18  ;;  %2898 = vadd.xlane.f32.xlu2 %v2897_v31  ;;  %v2900_v54 = vsel %vm1251_vm9, %v8071_v30, 0.0 }
 0x8b4   : > { %5786 = vpow2.f32 %v2860_v48 }
 0x8b6   : > { %v2797_v52 = vpop.xlane.xlu0 %2796 }
 0x8b7   : > { %v2829_v13 = vsub.f32 %v7973_v38, %v2797_v52 }
 0x8b9   : > { %v8073_v27 = vpop.eup %5784  ;;  %v2852_v21 = vmul.f32 1.442695, %v2829_v13 }
 0x8ba   : > { %v2888_v51 = vsel %vm1251_vm9, %v8073_v27, 0.0  ;;  %v8080_v22 = vpop.eup %5786 }
 0x8bb   : > { %2889 = vadd.xlane.f32.xlu1 %v2888_v51  ;;  %2901 = vadd.xlane.f32.xlu2 %v2900_v54  ;;  %5788 = vpow2.f32 %v2852_v21  ;;  %v2903_v38 = vsel %vm1251_vm9, %v8080_v22, 0.0  ;;  %v8092_v54 = vpop.f32.mrf.mxu1 }
 0x8bc   : > { %9372 = vst [vmem:[#allocation49_spill] sm:$0xff] %v8092_v54 }
 0x8be   : > { %v2812_v5 = vpop.xlane.xlu0 %2811 }
 0x8bf   : > { %v2834_v18 = vsub.f32 %v7983_v11, %v2812_v5 }
 0x8c1   : > { %v2862_v31 = vmul.f32 1.442695, %v2834_v18  ;;  %v8087_v52 = vpop.eup %5788 }
 0x8c2   : > { %v2891_v11 = vsel %vm1251_vm9, %v8087_v52, 0.0 }
 0x8c3   : > { %5790 = vpow2.f32 %v2862_v31  ;;  %2904 = vadd.xlane.f32.xlu2 %v2903_v38 }
 0x8c6   : > { %v2815_v48 = vpop.xlane.xlu0 %2814 }
 0x8c7   : > { %v2835_v51 = vsub.f32 %v7990_v3, %v2815_v48  ;;  %v8103_v48 = vpop.f32.mrf.mxu1 }
 0x8c9   : > { %v8090_v13 = vpop.eup %5790  ;;  %v2864_v12 = vmul.f32 1.442695, %v2835_v51 }
 0x8ca   : > { %v2906_v21 = vsel %vm1251_vm9, %v8090_v13, 0.0 }
 0x8cb   : > { %5792 = vpow2.f32 %v2864_v12  ;;  %2892 = vadd.xlane.f32.xlu2 %v2891_v11  ;;  %2907 = vadd.xlane.f32.xlu0 %v2906_v21 }
 0x8ce   : > { %v2818_v5 = vpop.xlane.xlu2 %2817 }
 0x8cf   : > { %v2836_v18 = vsub.f32 %v8000_v15, %v2818_v5  ;;  %v8109_v11 = vpop.f32.mrf.mxu1 }
 0x8d1   : > { %v8099_v31 = vpop.eup %5792  ;;  %v2866_v3 = vmul.f32 1.442695, %v2836_v18 }
 0x8d2   : > { %v2909_v38 = vsel %vm1251_vm9, %v8099_v31, 0.0 }
 0x8d3   : > { %5794 = vpow2.f32 %v2866_v3  ;;  %2910 = vadd.xlane.f32.xlu1 %v2909_v38 }
 0x8d6   : > { %v2821_v51 = vpop.xlane.xlu0 %2820  ;;  %v2878_v38 = vpop.xlane.xlu2 %2877 }
 0x8d7   : > { %v8114_v3 = vpop.f32.mrf.mxu1 }
 0x8d9   : > { %v8105_v54 = vpop.eup %5794 }
 0x8da   : > { %v2912_v12 = vsel %vm1251_vm9, %v8105_v54, 0.0 }
 0x8db   : > { %2913 = vadd.xlane.f32.xlu2 %v2912_v12 }
 0x8de   : > { %v2872_v15 = vpop.xlane.xlu0 %2871 }
 0x8df   : > { %5796 = vrcp.f32 %v2872_v15  ;;  %3484 = vrot.lane.b32.xlu0 %v6852_v16, %s6168_s17  ;;  %v8125_v15 = vpop.f32.mrf.mxu1 }
 0x8e5   : > { %v5797_v21 = vpop.eup %5796 }
 0x8e6   : > { %v2934_v5 = vmul.f32 %v5797_v21, %v8020_v0  ;;  %v2875_v18 = vpop.xlane.xlu0 %2874  ;;  %v2881_v21 = vpop.xlane.xlu1 %2880 }
 0x8e7   : > { %5798 = vrcp.f32 %v2875_v18  ;;  %v8138_v18 = vpop.f32.mrf.mxu1 }
 0x8e8   : > { %5263 = vmatmul.msk.f32.vlgmr.msrb.gmra.mxu2 %vm1251_vm9, %v2934_v5  ;;  %5800 = vrcp.f32 %v2878_v38 }
 0x8e9   : > { %5303 = vmatpush.xpose.msk.msrb.mxu2 %vm994_vm14, %v7834_v36  ;;  %5802 = vrcp.f32 %v2881_v21 }
 0x8ec   : > { %3474 = vrot.lane.b32.xlu1 %v6849_v26, %s6169_s19 }
 0x8ed   : > { %v5799_v12 = vpop.eup %5798  ;;  %5304 = vmatpush.xpose.msk.msrb.mxu2 %vm994_vm14, %v7890_v23 }
 0x8ee   : > { %v2935_v0 = vmul.f32 %v5799_v12, %v8025_v6  ;;  %v5801_v36 = vpop.eup %5800  ;;  %v2837_v6 = vsub.f32 %v8012_v59, %v2821_v51  ;;  %v2896_v5 = vpop.xlane.xlu0 %2895 }
 0x8ef   : > { %v2936_v23 = vmul.f32 %v5801_v36, %v8006_v32  ;;  %5804 = vrcp.f32 %v2896_v5  ;;  %v8148_v32 = vpop.f32.mrf.mxu1  ;;  %v1918_v36 = vsub.f32 %v7792_v40, %v7924_v37 }
 0x8f0   : > { %5264 = vmatmul.msk.f32.gmra.mxu2 %vm1251_vm9, %v2935_v0  ;;  %v2868_v38 = vmul.f32 1.442695, %v2837_v6 }
 0x8f1   : > { %5305 = vmatpush.xpose.msk.msrb.mxu2 %vm994_vm14, %v7898_v9  ;;  %v5803_v9 = vpop.eup %5802 }
 0x8f2   : > { %5806 = vpow2.f32 %v2868_v38 }
 0x8f3   : > { %3482 = vrot.lane.b32.xlu2 %v6849_v26, %s6168_s17  ;;  %v2937_v26 = vmul.f32 %v5803_v9, %v7969_v10  ;;  %v1916_v10 = vsub.f32 %v7778_v56, %v7922_v41  ;;  %v1936_v56 = vmul.f32 1.442695, %v1918_v36  ;;  %s9089_s17 = scalar_lea.vmem [#allocation10], %s5067_s15 }
 0x8f4   : > { %3476 = vrot.lane.b32.xlu1 %v6852_v16, %s6169_s19  ;;  %s4949_s29 = sshll.u32 %s9089_s17, 4  ;;  %s4950_s29 = int_to_ptr.vmem [resolvable:$true] %s4949_s29 }
 0x8f5   : > { %5306 = vmatpush.xpose.msk.msrb.mxu2 %vm994_vm14, %v7845_v45  ;;  %v5805_v16 = vpop.eup %5804  ;;  %v1932_v12 = vmul.f32 1.442695, %v1916_v10 }
 0x8f6   : > { %v2942_v59 = vmul.f32 %v5805_v16, %v8031_v20 }
 0x8f7   : > { %v8156_v0 = vpop.f32.mrf.mxu1  ;;  %5808 = vpow2.f32 %v1932_v12 }
 0x8f8   : > { %5265 = vmatmul.msk.f32.gmra.mxu2 %vm1251_vm9, %v2936_v23  ;;  %v8146_v45 = vpop.eup %5806 }
 0x8f9   : > { %v2915_v51 = vsel %vm1251_vm9, %v8146_v45, 0.0 }
 0x8fc   : > { %5570 = vrot.lane.b32.xlu1 %v7683_v29, %s6165_s9 }
 0x8fd   : > { %v8160_v21 = vpop.eup %5808 }
 0x8fe   : > { %v1964_v20 = vsel %vm1251_vm9, %v8160_v21, 0.0 }
 0x900   : > { %5266 = vmatmul.msk.f32.gmra.mxu2 %vm1251_vm9, %v2937_v26 }
 0x904   : > { %3478 = vrot.lane.b32.xlu1 %v6943_v44, %s6169_s19  ;;  %v8158_v44 = vpop.f32.mrf.mxu1 }
 0x908   : > { %5271 = vmatmul.msk.f32.vlgmr.msra.gmra.mxu2 %vm1251_vm9, %v2942_v59 }
 0x909   : > { %2916 = vadd.xlane.f32.xlu0 %v2915_v51 }
 0x90c   : > { %v8168_v41 = vpop.f32.mrf.mxu1 }
 0x914   : > { %v3346_v37 = vpop.f32.mrf.mxu1 }
 0x915   : > { %v3537_v59 = vmul.f32 0.125, %v3346_v37 }
 0x91c   : > { %1965 = vadd.xlane.f32.xlu2 %v1964_v20 }
 0x91d   : > { %5565 = vrot.lane.b32.xlu0 %v7733_v19, %s6165_s9 }
 0x91e   : > { %v2884_v23 = vpop.xlane.xlu2 %2883 }
 0x91f   : > { %5810 = vrcp.f32 %v2884_v23 }
 0x920   : > { %5812 = vpow2.f32 %v1936_v56 }
 0x925   : > { %v5811_v6 = vpop.eup %5810 }
 0x926   : > { %v2938_v5 = vmul.f32 %v5811_v6, %v8052_v61  ;;  %v2887_v9 = vpop.xlane.xlu1 %2886  ;;  %v2899_v38 = vpop.xlane.xlu2 %2898 }
 0x927   : > { %5814 = vrcp.f32 %v2887_v9  ;;  %v8174_v40 = vpop.eup %5812 }
 0x928   : > { %5816 = vrcp.f32 %v2899_v38  ;;  %5267 = vmatmul.msk.f32.vlgmr.msra.gmra.mxu3 %vm1251_vm9, %v2938_v5  ;;  %v1970_v16 = vsel %vm1251_vm9, %v8174_v40, 0.0 }
 0x929   : > { %5311 = vmatpush.xpose.msk.msra.mxu3 %vm994_vm14, %v7916_v55 }
 0x92d   : > { %v5815_v26 = vpop.eup %5814  ;;  %5312 = vmatpush.xpose.msk.msra.mxu3 %vm994_vm14, %v7904_v24  ;;  %v8188_v24 = vsel %vm7026_vm8, %v3537_v59, -inf  ;;  %v3536_v59 = vmul.f32 0.125, %v8168_v41  ;;  %v3535_v41 = vmul.f32 0.125, %v8158_v44 }
 0x92e   : > { %v5817_v61 = vpop.eup %5816  ;;  %v2890_v51 = vpop.xlane.xlu1 %2889  ;;  %1971 = vadd.xlane.f32.xlu1 %v1970_v16  ;;  %v2939_v12 = vmul.f32 %v5815_v26, %v8062_v49  ;;  %v1917_v49 = vsub.f32 %v7807_v14, %v7967_v43  ;;  %v1919_v14 = vsub.f32 %v7875_v33, %v7979_v50 }
 0x92f   : > { %v2902_v10 = vpop.xlane.xlu2 %2901  ;;  %5818 = vrcp.f32 %v2890_v51  ;;  %v2943_v55 = vmul.f32 %v5817_v61, %v8059_v60  ;;  %v3573_v60 = vsel %vm1251_vm9, %v8188_v24, -inf  ;;  %v3349_v51 = vpop.f32.mrf.mxu1 }
 0x930   : > { %5820 = vrcp.f32 %v2902_v10  ;;  %5268 = vmatmul.msk.f32.gmra.mxu3 %vm1251_vm9, %v2939_v12  ;;  %v1938_v5 = vmul.f32 1.442695, %v1919_v14 }
 0x931   : > { %5272 = vmatmul.msk.f32.gmra.mxu2 %vm1251_vm9, %v2943_v55  ;;  %5313 = vmatpush.xpose.msk.msra.mxu3 %vm994_vm14, %v7958_v53  ;;  %v3538_v55 = vmul.f32 0.125, %v3349_v51 }
 0x934   : > { %3480 = vrot.lane.b32.xlu2 %v6955_v2, %s6169_s19  ;;  %v1934_v2 = vmul.f32 1.442695, %v1917_v49 }
 0x935   : > { %v5819_v20 = vpop.eup %5818  ;;  %5314 = vmatpush.xpose.msk.msra.mxu3 %vm994_vm14, %v7912_v35 }
 0x936   : > { %v5821_v36 = vpop.eup %5820  ;;  %3574 = vmax.xlane.f32.xlu1 %v3573_v60  ;;  %v2940_v53 = vmul.f32 %v5819_v20, %v8073_v27  ;;  %v8244_v20 = vsel %vm6972_vm7, %v3538_v55, -inf }
 0x937   : > { %v2905_v23 = vpop.xlane.xlu2 %2904  ;;  %v2944_v56 = vmul.f32 %v5821_v36, %v8071_v30  ;;  %v3576_v60 = vsel %vm1251_vm9, %v8244_v20, -inf }
 0x938   : > { %5822 = vrcp.f32 %v2905_v23  ;;  %5269 = vmatmul.msk.f32.gmra.mxu3 %vm1251_vm9, %v2940_v53 }
 0x939   : > { %5273 = vmatmul.msk.f32.gmra.mxu2 %vm1251_vm9, %v2944_v56  ;;  %5824 = vpow2.f32 %v1934_v2 }
 0x93e   : > { %v5823_v35 = vpop.eup %5822  ;;  %v2908_v27 = vpop.xlane.xlu0 %2907 }
 0x93f   : > { %v2893_v43 = vpop.xlane.xlu2 %2892  ;;  %v2945_v6 = vmul.f32 %v5823_v35, %v8080_v22  ;;  %v8206_v9 = vpop.eup %5824 }
 0x940   : > { %5826 = vrcp.f32 %v2893_v43  ;;  %v1967_v38 = vsel %vm1251_vm9, %v8206_v9, 0.0 }
 0x941   : > { %5274 = vmatmul.msk.f32.gmra.mxu2 %vm1251_vm9, %v2945_v6  ;;  %5828 = vpow2.f32 %v1938_v5 }
 0x942   : > { %5830 = vrcp.f32 %v2908_v27 }
 0x946   : > { %v5827_v30 = vpop.eup %5826  ;;  %v2911_v22 = vpop.xlane.xlu1 %2910 }
 0x947   : > { %v2941_v33 = vmul.f32 %v5827_v30, %v8087_v52  ;;  %1968 = vadd.xlane.f32.xlu0 %v1967_v38  ;;  %v8214_v50 = vpop.eup %5828  ;;  %5832 = vrcp.f32 %v2911_v22 }
 0x948   : > { %v5831_v37 = vpop.eup %5830  ;;  %v1973_v61 = vsel %vm1251_vm9, %v8214_v50, 0.0 }
 0x949   : > { %5270 = vmatmul.msk.f32.gmra.mxu3 %vm1251_vm9, %v2941_v33  ;;  %5307 = vmatmul.msk.f32.vlgmr.msrb.gmra.mxu2 %vm994_vm14, %v7908_v34  ;;  %v2946_v26 = vmul.f32 %v5831_v37, %v8090_v13  ;;  %v8228_v13 = vsel %vm7056_vm10, %v3536_v59, -inf }
 0x94d   : > { %v5833_v52 = vpop.eup %5832 }
 0x94e   : > { %v2914_v16 = vpop.xlane.xlu2 %2913  ;;  %v2947_v12 = vmul.f32 %v5833_v52, %v8099_v31 }
 0x94f   : > { %5575 = vrot.lane.b32.xlu1 %v7733_v19, %s6169_s19  ;;  %1974 = vadd.xlane.f32.xlu0 %v1973_v61  ;;  %5834 = vrcp.f32 %v2914_v16  ;;  %v3570_v19 = vsel %vm1251_vm9, %v8228_v13, -inf }
 0x951   : > { %5275 = vmatmul.msk.f32.vlgmr.msrb.gmra.mxu3 %vm1251_vm9, %v2946_v26  ;;  %5308 = vmatmul.msk.f32.gmra.mxu2 %vm994_vm14, %v7930_v62  ;;  %v3485_v34 = vpop.permute.xlu0 %3484  ;;  %v8240_v62 = vsel %vm6924_vm6, %v3535_v41, -inf }
 0x952   : > { %5321 = vmatpush.xpose.msk.msra.mxu1 %vm994_vm14, %v3485_v34  ;;  %v3567_v31 = vsel %vm1251_vm9, %v8240_v62, -inf }
 0x955   : > { %v5835_v44 = vpop.eup %5834 }
 0x956   : > { %v3483_v10 = vpop.permute.xlu2 %3482  ;;  %v2948_v36 = vmul.f32 %v5835_v44, %v8105_v54 }
 0x957   : > { %3571 = vmax.xlane.f32.xlu0 %v3570_v19  ;;  %5322 = vmatpush.xpose.msk.msra.mxu1 %vm994_vm14, %v3483_v10 }
 0x959   : > { %5276 = vmatmul.msk.f32.gmra.mxu3 %vm1251_vm9, %v2947_v12  ;;  %5309 = vmatmul.msk.f32.gmra.mxu2 %vm994_vm14, %v7902_v7 }
 0x95d   : > { %3568 = vmax.xlane.f32.xlu2 %v3567_v31 }
 0x95e   : > { %v3475_v49 = vpop.permute.xlu1 %3474 }
 0x95f   : > { %3577 = vmax.xlane.f32.xlu0 %v3576_v60  ;;  %5323 = vmatmul.msk.f32.vlgmr.msra.gmra.mxu1 %vm994_vm14, %v3475_v49 }
 0x961   : > { %5277 = vmatmul.msk.f32.gmra.mxu3 %vm1251_vm9, %v2948_v36  ;;  %5310 = vmatmul.msk.f32.gmra.mxu2 %vm994_vm14, %v7942_v25 }
 0x966   : > { %v3477_v7 = vpop.permute.xlu1 %3476 }
 0x967   : > { %5324 = vmatmul.msk.f32.gmra.mxu1 %vm994_vm14, %v3477_v7 }
 0x96b   : > { %v8259_v2 = vpop.f32.mrf.mxu2 }
 0x96e   : > { %v5571_v23 = vpop.permute.xlu1 %5570 }
 0x96f   : > { %v5572_v5 = vunpack.i.l.bf16 %v5571_v23  ;;  %v5573_v30 = vunpack.i.h.bf16 %v5571_v23 }
 0x973   : > { %v8263_v25 = vpop.f32.mrf.mxu2 }
 0x975   : > { %5580 = vrot.lane.b32.xlu2 %v7683_v29, %s6169_s19 }
 0x976   : > { %v3479_v53 = vpop.permute.xlu1 %3478 }
 0x977   : > { %5325 = vmatmul.msk.f32.gmra.mxu1 %vm994_vm14, %v3479_v53 }
 0x97b   : > { %v8270_v33 = vpop.f32.mrf.mxu2 }
 0x97c   : > { %v2917_v56 = vpop.xlane.xlu0 %2916 }
 0x97d   : > { %5836 = vrcp.f32 %v2917_v56 }
 0x983   : > { %v5837_v54 = vpop.eup %5836 }
 0x984   : > { %v2949_v14 = vmul.f32 %v5837_v54, %v8146_v45 }
 0x986   : > { %5278 = vmatmul.msk.f32.gmra.mxu3 %vm1251_vm9, %v2949_v14 }
 0x98e   : > { %5315 = vmatmul.msk.f32.vlgmr.msra.gmra.mxu3 %vm994_vm14, %v7918_v39  ;;  %v8276_v39 = vpop.f32.mrf.mxu2 }
 0x98f   : > { %v1966_v35 = vpop.xlane.xlu2 %1965  ;;  %v5566_v43 = vpop.permute.xlu0 %5565 }
 0x990   : > { %5838 = vrcp.f32 %v1966_v35  ;;  %v5567_v29 = vunpack.i.l.bf16 %v5566_v43  ;;  %v5568_v6 = vunpack.i.h.bf16 %v5566_v43 }
 0x992   : > { %2084 = vmatpush.msra.mxu0 %v5567_v29 }
 0x994   : > { %2085 = vmatpush.msra.mxu0 %v5568_v6 }
 0x996   : > { %v5839_v27 = vpop.eup %5838  ;;  %2086 = vmatpush.msra.mxu0 %v5572_v5  ;;  %5316 = vmatmul.msk.f32.gmra.mxu3 %vm994_vm14, %v7928_v47  ;;  %v8280_v22 = vpop.f32.mrf.mxu2 }
 0x997   : > { %v2028_v45 = vmul.f32 %v5839_v27, %v8160_v21  ;;  %v3481_v38 = vpop.permute.xlu2 %3480 }
 0x998   : > { %2087 = vmatpush.msra.mxu0 %v5573_v30  ;;  %5326 = vmatmul.msk.f32.gmra.mxu1 %vm994_vm14, %v3481_v38 }
 0x999   : > { %5183 = vmatmul.msk.f32.vlgmr.msra.gmra.mxu0 %vm1251_vm9, %v2028_v45 }
 0x99e   : > { %5317 = vmatmul.msk.f32.gmra.mxu3 %vm994_vm14, %v8041_v28 }
 0x9a1   : > { %v1972_v47 = vpop.xlane.xlu1 %1971 }
 0x9a6   : > { %5318 = vmatmul.msk.f32.gmra.mxu3 %vm994_vm14, %v8045_v58 }
 0x9a9   : > { %v3575_v37 = vpop.xlane.xlu1 %3574 }
 0x9aa   : > { %v3617_v29 = vsub.f32 %v8188_v24, %v3575_v37 }
 0x9ab   : > { %v8290_v10 = vpop.f32.mrf.mxu3 }
 0x9ac   : > { %v3635_v45 = vmul.f32 1.442695, %v3617_v29 }
 0x9b3   : > { %v8300_v36 = vpop.f32.mrf.mxu3 }
 0x9b4   : > { %v8282_v21 = vpop.f32.mrf.mxu2 }
 0x9ba   : > { %v1969_v26 = vpop.xlane.xlu0 %1968 }
 0x9bb   : > { %5840 = vrcp.f32 %v1969_v26  ;;  %v8309_v6 = vpop.f32.mrf.mxu3 }
 0x9bc   : > { %v8284_v16 = vpop.f32.mrf.mxu2  ;;  %5842 = vrcp.f32 %v1972_v47 }
 0x9c1   : > { %v5841_v61 = vpop.eup %5840  ;;  %v5576_v59 = vpop.permute.xlu1 %5575 }
 0x9c2   : > { %v5577_v34 = vunpack.i.l.bf16 %v5576_v59  ;;  %v2029_v28 = vmul.f32 %v5841_v61, %v8206_v9  ;;  %v5578_v52 = vunpack.i.h.bf16 %v5576_v59  ;;  %v1975_v58 = vpop.xlane.xlu0 %1974  ;;  %v5843_v41 = vpop.eup %5842 }
 0x9c3   : > { %5844 = vrcp.f32 %v1975_v58  ;;  %v2030_v19 = vmul.f32 %v5843_v41, %v8174_v40 }
 0x9c4   : > { %v8287_v51 = vpop.f32.mrf.mxu2  ;;  %5184 = vmatmul.msk.f32.gmra.mxu0 %vm1251_vm9, %v2029_v28  ;;  %3779 = vmatpush.msra.mxu2 %v5577_v34 }
 0x9c6   : > { %3780 = vmatpush.msra.mxu2 %v5578_v52 }
 0x9c9   : > { %v5845_v44 = vpop.eup %5844 }
 0x9ca   : > { %v3572_v31 = vpop.xlane.xlu0 %3571  ;;  %v2031_v40 = vmul.f32 %v5845_v44, %v8214_v50 }
 0x9cb   : > { %v3616_v23 = vsub.f32 %v8228_v13, %v3572_v31 }
 0x9cc   : > { %v3401_v12 = vpop.f32.mrf.mxu2  ;;  %5185 = vmatmul.msk.f32.gmra.mxu0 %vm1251_vm9, %v2030_v19  ;;  %v8327_v59 = vpop.f32.mrf.mxu3 }
 0x9cd   : > { %v3539_v55 = vmul.f32 0.125, %v3401_v12  ;;  %v3633_v54 = vmul.f32 1.442695, %v3616_v23 }
 0x9cf   : > { %v8296_v9 = vsel %vm6924_vm6, %v3539_v55, -inf }
 0x9d0   : > { %v3569_v49 = vpop.xlane.xlu2 %3568  ;;  %v3579_v60 = vsel %vm1251_vm9, %v8296_v9, -inf }
 0x9d1   : > { %v3615_v7 = vsub.f32 %v8240_v62, %v3569_v49  ;;  %3580 = vmax.xlane.f32.xlu1 %v3579_v60  ;;  %v977_v49 = vld [vmem:[#allocation7 + $0x18] sm:$0xff] }
 0x9d2   : > { %v3578_v47 = vpop.xlane.xlu0 %3577  ;;  %2334 = vmatpush.msrb.mxu0 %v977_v49 }
 0x9d3   : > { %v3631_v53 = vmul.f32 1.442695, %v3615_v7  ;;  %v3618_v34 = vsub.f32 %v8244_v20, %v3578_v47 }
 0x9d4   : > { %v3404_v56 = vpop.f32.mrf.mxu2  ;;  %5186 = vmatmul.msk.f32.gmra.mxu0 %vm1251_vm9, %v2031_v40  ;;  %v8342_v44 = vpop.f32.mrf.mxu3 }
 0x9d5   : > { %5846 = vpow2.f32 %v3631_v53  ;;  %v3637_v41 = vmul.f32 1.442695, %v3618_v34  ;;  %v3540_v40 = vmul.f32 0.125, %v3404_v56 }
 0x9d6   : > { %5848 = vpow2.f32 %v3633_v54 }
 0x9d7   : > { %5850 = vpow2.f32 %v3635_v45  ;;  %v8358_v29 = vsel %vm7056_vm10, %v3540_v40, -inf }
 0x9d8   : > { %v5581_v14 = vpop.permute.xlu2 %5580  ;;  %5852 = vpow2.f32 %v3637_v41  ;;  %v3582_v56 = vsel %vm1251_vm9, %v8358_v29, -inf }
 0x9d9   : > { %v5582_v35 = vunpack.i.l.bf16 %v5581_v14  ;;  %v5583_v62 = vunpack.i.h.bf16 %v5581_v14  ;;  %v976_v14 = vld [vmem:[#allocation7 + $0x10] sm:$0xff] }
 0x9da   : > { %2335 = vmatpush.msrb.mxu0 %v976_v14 }
 0x9db   : > { %v8306_v43 = vpop.eup %5846  ;;  %3781 = vmatpush.msra.mxu2 %v5582_v35 }
 0x9dc   : > { %v3407_v50 = vpop.f32.mrf.mxu2  ;;  %v3523_v5 = vpop.f32.mrf.mxu1  ;;  %v3663_v13 = vsel %vm1251_vm9, %v8306_v43, 0.0 }
 0x9dd   : > { %v3541_v27 = vmul.f32 0.125, %v3407_v50  ;;  %v3547_v30 = vmul.f32 0.125, %v3523_v5  ;;  %3664 = vadd.xlane.f32.xlu0 %v3663_v13  ;;  %3782 = vmatpush.msra.mxu2 %v5583_v62  ;;  %v8325_v61 = vpop.eup %5848  ;;  %v8348_v53 = vpop.f32.mrf.mxu3  ;;  %v9373_v13 = vld [vmem:[#allocation24_spill] sm:$0xff] }
 0x9de   : > { %v3666_v52 = vsel %vm1251_vm9, %v8325_v61, 0.0  ;;  %v8338_v55 = vpop.eup %5850 }
 0x9df   : > { %v8315_v38 = vsel %vm6924_vm6, %v3547_v30, -inf  ;;  %v8319_v24 = vsel %vm7026_vm8, %v3541_v27, -inf  ;;  %v3669_v20 = vsel %vm1251_vm9, %v8338_v55, 0.0  ;;  %v8344_v31 = vpop.eup %5852 }
 0x9e0   : > { %v3585_v37 = vsel %vm1251_vm9, %v8319_v24, -inf  ;;  %v3603_v26 = vsel %vm1251_vm9, %v8315_v38, -inf  ;;  %v3672_v7 = vsel %vm1251_vm9, %v8344_v31, 0.0 }
 0x9e1   : > { %3586 = vmax.xlane.f32.xlu1 %v3585_v37  ;;  %3604 = vmax.xlane.f32.xlu2 %v3603_v26 }
 0x9e4   : > { %v3526_v28 = vpop.f32.mrf.mxu1 }
 0x9e5   : > { %v3548_v58 = vmul.f32 0.125, %v3526_v28  ;;  %3667 = vadd.xlane.f32.xlu0 %v3666_v52  ;;  %v8364_v62 = vpop.f32.mrf.mxu3 }
 0x9e7   : > { %v8334_v19 = vsel %vm7056_vm10, %v3548_v58, -inf }
 0x9e8   : > { %v3606_v12 = vsel %vm1251_vm9, %v8334_v19, -inf }
 0x9e9   : > { %3607 = vmax.xlane.f32.xlu2 %v3606_v12  ;;  %v3410_v12 = vpop.f32.mrf.mxu2 }
 0x9ed   : > { %3670 = vadd.xlane.f32.xlu0 %v3669_v20  ;;  %v3542_v20 = vmul.f32 0.125, %v3410_v12  ;;  %v9374_v12 = vld [vmem:[#allocation18_spill] sm:$0xff] }
 0x9ef   : > { %v8391_v46 = vsel %vm6972_vm7, %v3542_v20, -inf }
 0x9f4   : > { %v3529_v60 = vpop.f32.mrf.mxu1 }
 0x9f5   : > { %v3549_v23 = vmul.f32 0.125, %v3529_v60  ;;  %3673 = vadd.xlane.f32.xlu0 %v3672_v7  ;;  %v3588_v60 = vsel %vm1251_vm9, %v8391_v46, -inf }
 0x9f7   : > { %v8352_v54 = vsel %vm7026_vm8, %v3549_v23, -inf }
 0x9f8   : > { %v3609_v35 = vsel %vm1251_vm9, %v8352_v54, -inf }
 0x9f9   : > { %3610 = vmax.xlane.f32.xlu2 %v3609_v35 }
 0x9fa   : > { %5590 = vrot.lane.b32.xlu1 %v7457_v63, %s6169_s19 }
 0x9fd   : > { %3583 = vmax.xlane.f32.xlu0 %v3582_v56 }
 0xa09   : > { %v8366_v50 = vpop.f32.mrf.mxu3 }
 0xa11   : > { %v3462_v5 = vpop.f32.mrf.mxu3  ;;  %5585 = vrot.lane.b32.xlu0 %v9373_v13, %s6169_s19 }
 0xa12   : > { %v3543_v47 = vmul.f32 0.125, %v3462_v5 }
 0xa14   : > { %v8379_v26 = vsel %vm6924_vm6, %v3543_v47, -inf }
 0xa15   : > { %v3591_v28 = vsel %vm1251_vm9, %v8379_v26, -inf  ;;  %v3532_v49 = vpop.f32.mrf.mxu1 }
 0xa16   : > { %v2089_v27 = vpop.f32.mrf.mxu0  ;;  %v3550_v7 = vmul.f32 0.125, %v3532_v49 }
 0xa17   : > { %5199 = vmatmul.msk.f32.vlgmr.msrb.gmra.mxu0 %vm994_vm14, %v2089_v27 }
 0xa18   : > { %v8397_v40 = vsel %vm6972_vm7, %v3550_v7, -inf }
 0xa19   : > { %v3465_v30 = vpop.f32.mrf.mxu3  ;;  %v3612_v14 = vsel %vm1251_vm9, %v8397_v40, -inf }
 0xa1a   : > { %v3544_v45 = vmul.f32 0.125, %v3465_v30 }
 0xa1c   : > { %v8373_v63 = vsel %vm7056_vm10, %v3544_v45, -inf }
 0xa1d   : > { %v3594_v37 = vsel %vm1251_vm9, %v8373_v63, -inf }
 0xa1e   : > { %3595 = vmax.xlane.f32.xlu2 %v3594_v37 }
 0xa21   : > { %v3468_v34 = vpop.f32.mrf.mxu3 }
 0xa22   : > { %v3545_v35 = vmul.f32 0.125, %v3468_v34 }
 0xa24   : > { %3592 = vmax.xlane.f32.xlu1 %v3591_v28  ;;  %v8405_v27 = vsel %vm7026_vm8, %v3545_v35, -inf }
 0xa25   : > { %v3597_v30 = vsel %vm1251_vm9, %v8405_v27, -inf }
 0xa29   : > { %v3471_v52 = vpop.f32.mrf.mxu3 }
 0xa2a   : > { %v3546_v58 = vmul.f32 0.125, %v3471_v52 }
 0xa2c   : > { %v8385_v1 = vsel %vm6972_vm7, %v3546_v58, -inf }
 0xa2d   : > { %v3600_v41 = vsel %vm1251_vm9, %v8385_v1, -inf }
 0xa2e   : > { %3601 = vmax.xlane.f32.xlu2 %v3600_v41 }
 0xa3b   : > { %3589 = vmax.xlane.f32.xlu0 %v3588_v60 }
 0xa41   : > { %v2092_v23 = vpop.f32.mrf.mxu0 }
 0xa42   : > { %5200 = vmatmul.msk.f32.gmra.mxu0 %vm994_vm14, %v2092_v23 }
 0xa43   : > { %3613 = vmax.xlane.f32.xlu0 %v3612_v14 }
 0xa44   : > { %v3581_v56 = vpop.xlane.xlu1 %3580 }
 0xa45   : > { %v3619_v5 = vsub.f32 %v8296_v9, %v3581_v56  ;;  %v9376_v56 = vld [vmem:[#allocation40_spill] sm:$0xff] }
 0xa47   : > { %v3639_v13 = vmul.f32 1.442695, %v3619_v5 }
 0xa49   : > { %5854 = vpow2.f32 %v3639_v13  ;;  %v2095_v8 = vpop.f32.mrf.mxu0 }
 0xa4a   : > { %5201 = vmatmul.msk.f32.gmra.mxu0 %vm994_vm14, %v2095_v8 }
 0xa4b   : > { %3598 = vmax.xlane.f32.xlu0 %v3597_v30 }
 0xa4f   : > { %v8410_v45 = vpop.eup %5854 }
 0xa50   : > { %v3665_v47 = vpop.xlane.xlu0 %3664  ;;  %v3675_v57 = vsel %vm1251_vm9, %v8410_v45, 0.0 }
 0xa51   : > { %5856 = vrcp.f32 %v3665_v47  ;;  %v2098_v37 = vpop.f32.mrf.mxu0  ;;  %v9377_v47 = vld [vmem:[#allocation56_spill] sm:$0xff] }
 0xa52   : > { %5202 = vmatmul.msk.f32.gmra.mxu0 %vm994_vm14, %v2098_v37 }
 0xa53   : > { %3676 = vadd.xlane.f32.xlu0 %v3675_v57 }
 0xa54   : > { %v3587_v9 = vpop.xlane.xlu1 %3586  ;;  %v8437_v37 = vpop.xlane.xlu2 %3604 }
 0xa55   : > { %v3621_v34 = vsub.f32 %v8319_v24, %v3587_v9  ;;  %v9375_v24 = vld [vmem:[#allocation42_spill] sm:$0xff] }
 0xa57   : > { %v5857_v28 = vpop.eup %5856  ;;  %v3643_v52 = vmul.f32 1.442695, %v3621_v34 }
 0xa58   : > { %v3727_v58 = vmul.f32 %v5857_v28, %v8306_v43  ;;  %v3668_v41 = vpop.xlane.xlu0 %3667 }
 0xa59   : > { %5858 = vpow2.f32 %v3643_v52 }
 0xa5a   : > { %5203 = vmatmul.msk.f32.gmra.mxu0 %vm994_vm14, %v9374_v12  ;;  %5327 = vmatmul.msk.f32.vlgmr.msra.gmra.mxu2 %vm1251_vm9, %v3727_v58  ;;  %5860 = vrcp.f32 %v3668_v41 }
 0xa5f   : > { %v8420_v20 = vpop.eup %5858 }
 0xa60   : > { %v3681_v49 = vsel %vm1251_vm9, %v8420_v20, 0.0  ;;  %v3671_v60 = vpop.xlane.xlu0 %3670  ;;  %v5861_v7 = vpop.eup %5860 }
 0xa61   : > { %3682 = vadd.xlane.f32.xlu1 %v3681_v49  ;;  %5862 = vrcp.f32 %v3671_v60  ;;  %v3728_v43 = vmul.f32 %v5861_v7, %v8325_v61  ;;  %v9380_v60 = vld [vmem:[#allocation37_spill] sm:$0xff] }
 0xa62   : > { %5204 = vmatmul.msk.f32.gmra.mxu0 %vm994_vm14, %v9375_v24  ;;  %v9381_v24 = vld [vmem:[#allocation34_spill] sm:$0xff] }
 0xa63   : > { %5328 = vmatmul.msk.f32.gmra.mxu2 %vm1251_vm9, %v3728_v43 }
 0xa67   : > { %v5863_v23 = vpop.eup %5862 }
 0xa68   : > { %v3674_v14 = vpop.xlane.xlu0 %3673  ;;  %v3729_v35 = vmul.f32 %v5863_v23, %v8338_v55  ;;  %v9378_v55 = vld [vmem:[#allocation33_spill] sm:$0xff]  ;;  %v9382_v23 = vld [vmem:[#allocation38_spill] sm:$0xff] }
 0xa69   : > { %5864 = vrcp.f32 %v3674_v14 }
 0xa6a   : > { %5205 = vmatmul.msk.f32.gmra.mxu0 %vm994_vm14, %v9376_v56  ;;  %v9383_v56 = vld [vmem:[#allocation35_spill] sm:$0xff] }
 0xa6b   : > { %5329 = vmatmul.msk.f32.gmra.mxu2 %vm1251_vm9, %v3729_v35  ;;  %v979_v35 = vld [vmem:[#allocation7 + $0x28] sm:$0xff] }
 0xa6c   : > { %v5591_v52 = vpop.permute.xlu1 %5590  ;;  %3224 = vmatpush.msra.mxu0 %v979_v35 }
 0xa6d   : > { %v5592_v41 = vunpack.i.l.bf16 %v5591_v52  ;;  %v5593_v49 = vunpack.i.h.bf16 %v5591_v52 }
 0xa6f   : > { %v5865_v5 = vpop.eup %5864 }
 0xa70   : > { %v3584_v13 = vpop.xlane.xlu0 %3583  ;;  %v3730_v8 = vmul.f32 %v5865_v5, %v8344_v31  ;;  %v8445_v31 = vpop.xlane.xlu2 %3607  ;;  %v978_v5 = vld [vmem:[#allocation7 + $0x20] sm:$0xff] }
 0xa71   : > { %v3620_v30 = vsub.f32 %v8358_v29, %v3584_v13  ;;  %v9379_v29 = vld [vmem:[#allocation48_spill] sm:$0xff]  ;;  %3225 = vmatpush.msra.mxu0 %v978_v5 }
 0xa72   : > { %5206 = vmatmul.msk.f32.gmra.mxu0 %vm994_vm14, %v9377_v47 }
 0xa73   : > { %v3641_v61 = vmul.f32 1.442695, %v3620_v30  ;;  %5330 = vmatmul.msk.f32.gmra.mxu2 %vm1251_vm9, %v3730_v8  ;;  %v9384_v30 = vld [vmem:[#allocation61_spill] sm:$0xff] }
 0xa75   : > { %5866 = vpow2.f32 %v3641_v61  ;;  %v9385_v61 = vld [vmem:[#allocation19_spill] sm:$0xff] }
 0xa78   : > { %v3611_v12 = vpop.xlane.xlu2 %3610 }
 0xa7a   : > { %5207 = vmatmul.msk.f32.gmra.mxu0 %vm994_vm14, %v9378_v55 }
 0xa7b   : > { %v8441_v57 = vpop.eup %5866 }
 0xa7c   : > { %v3678_v9 = vsel %vm1251_vm9, %v8441_v57, 0.0 }
 0xa7d   : > { %3679 = vadd.xlane.f32.xlu0 %v3678_v9 }
 0xa82   : > { %5208 = vmatmul.msk.f32.gmra.mxu0 %vm994_vm14, %v9379_v29 }
 0xa83   : > { %v5586_v34 = vpop.permute.xlu0 %5585 }
 0xa84   : > { %v5587_v28 = vunpack.i.l.bf16 %v5586_v34  ;;  %v5588_v58 = vunpack.i.h.bf16 %v5586_v34 }
 0xa86   : > { %3832 = vmatpush.msrb.mxu3 %v5587_v28  ;;  %v3629_v28 = vsub.f32 %v8352_v54, %v3611_v12 }
 0xa88   : > { %3833 = vmatpush.msrb.mxu3 %v5588_v58 }
 0xa8a   : > { %5209 = vmatmul.msk.f32.gmra.mxu0 %vm994_vm14, %v9380_v60  ;;  %3834 = vmatpush.msrb.mxu3 %v5592_v41  ;;  %v9386_v41 = vld [vmem:[#allocation17_spill] sm:$0xff] }
 0xa8c   : > { %3835 = vmatpush.msrb.mxu3 %v5593_v49  ;;  %v3659_v49 = vmul.f32 1.442695, %v3629_v28 }
 0xa91   : > { %v3596_v7 = vpop.xlane.xlu2 %3595  ;;  %5595 = vrot.lane.b32.xlu0 %v9381_v24, %s6169_s19 }
 0xa92   : > { %v3624_v43 = vsub.f32 %v8373_v63, %v3596_v7  ;;  %5210 = vmatmul.msk.f32.gmra.mxu0 %vm994_vm14, %v9382_v23 }
 0xa94   : > { %v3649_v14 = vmul.f32 1.442695, %v3624_v43 }
 0xa96   : > { %5868 = vpow2.f32 %v3649_v14 }
 0xa97   : > { %v3593_v9 = vpop.xlane.xlu1 %3592 }
 0xa98   : > { %v3623_v52 = vsub.f32 %v8379_v26, %v3593_v9 }
 0xa9a   : > { %5211 = vmatmul.msk.f32.gmra.mxu0 %vm994_vm14, %v9383_v56 }
 0xa9c   : > { %v8458_v13 = vpop.eup %5868 }
 0xa9d   : > { %v3690_v8 = vsel %vm1251_vm9, %v8458_v13, 0.0 }
 0xa9e   : > { %3691 = vadd.xlane.f32.xlu1 %v3690_v8 }
 0xaa1   : > { %v3602_v63 = vpop.xlane.xlu2 %3601 }
 0xaa2   : > { %5212 = vmatmul.msk.f32.gmra.mxu0 %vm994_vm14, %v9384_v30  ;;  %v3626_v47 = vsub.f32 %v8385_v1, %v3602_v63  ;;  %v3647_v1 = vmul.f32 1.442695, %v3623_v52  ;;  %v9387_v30 = vld [vmem:[#allocation30_spill] sm:$0xff]  ;;  %v8515_v63 = vpop.f32.mrf.mxu0 }
 0xaa4   : > { %v3653_v55 = vmul.f32 1.442695, %v3626_v47 }
 0xaa6   : > { %5870 = vpow2.f32 %v3653_v55 }
 0xaaa   : > { %5213 = vmatmul.msk.f32.gmra.mxu0 %vm994_vm14, %v9385_v61 }
 0xaac   : > { %v8472_v7 = vpop.eup %5870 }
 0xaad   : > { %v3696_v54 = vsel %vm1251_vm9, %v8472_v7, 0.0 }
 0xaae   : > { %v3590_v29 = vpop.xlane.xlu0 %3589 }
 0xaaf   : > { %v3622_v34 = vsub.f32 %v8391_v46, %v3590_v29 }
 0xab1   : > { %v3645_v58 = vmul.f32 1.442695, %v3622_v34 }
 0xab2   : > { %5214 = vmatmul.msk.f32.gmra.mxu0 %vm994_vm14, %v9386_v41 }
 0xab3   : > { %5872 = vpow2.f32 %v3645_v58 }
 0xab4   : > { %5874 = vpow2.f32 %v3659_v49 }
 0xab5   : > { %5876 = vpow2.f32 %v3647_v1  ;;  %v981_v1 = vld [vmem:[#allocation7 + $0x38] sm:$0xff] }
 0xab6   : > { %v3614_v60 = vpop.xlane.xlu0 %3613  ;;  %4017 = vmatpush.msra.mxu3 %v981_v1 }
 0xab7   : > { %v3630_v9 = vsub.f32 %v8397_v40, %v3614_v60  ;;  %v980_v60 = vld [vmem:[#allocation7 + $0x30] sm:$0xff] }
 0xab8   : > { %4018 = vmatpush.msra.mxu3 %v980_v60 }
 0xab9   : > { %v8474_v24 = vpop.eup %5872 }
 0xaba   : > { %5279 = vmatmul.msk.f32.vlgmr.msra.gmra.mxu0 %vm994_vm14, %v8259_v2  ;;  %v3684_v26 = vsel %vm1251_vm9, %v8474_v24, 0.0  ;;  %v8482_v46 = vpop.eup %5874 }
 0xabb   : > { %3697 = vadd.xlane.f32.xlu0 %v3696_v54  ;;  %3685 = vadd.xlane.f32.xlu2 %v3684_v26  ;;  %v8484_v43 = vpop.eup %5876  ;;  %v3705_v2 = vsel %vm1251_vm9, %v8482_v46, 0.0  ;;  %v5616_v26 = vld [vmem:[#allocation5 + $0x1] ss:$0 sm:$0xff] }
 0xabc   : > { %v3687_v35 = vsel %vm1251_vm9, %v8484_v43, 0.0 }
 0xabe   : > { %v3599_v12 = vpop.xlane.xlu0 %3598 }
 0xabf   : > { %v3625_v23 = vsub.f32 %v8405_v27, %v3599_v12  ;;  %v8521_v61 = vpop.f32.mrf.mxu0 }
 0xac1   : > { %v3651_v14 = vmul.f32 1.442695, %v3625_v23 }
 0xac2   : > { %5280 = vmatmul.msk.f32.gmra.mxu0 %vm994_vm14, %v8263_v25 }
 0xac3   : > { %5878 = vpow2.f32 %v3651_v14  ;;  %3706 = vadd.xlane.f32.xlu0 %v3705_v2  ;;  %3688 = vadd.xlane.f32.xlu2 %v3687_v35 }
 0xac6   : > { %v3677_v56 = vpop.xlane.xlu0 %3676 }
 0xac7   : > { %5880 = vrcp.f32 %v3677_v56 }
 0xac9   : > { %v8493_v5 = vpop.eup %5878 }
 0xaca   : > { %5281 = vmatmul.msk.f32.gmra.mxu0 %vm994_vm14, %v8270_v33  ;;  %v3693_v27 = vsel %vm1251_vm9, %v8493_v5, 0.0  ;;  %v9388_v33 = vld [vmem:[#allocation32_spill] sm:$0xff] }
 0xacb   : > { %3694 = vadd.xlane.f32.xlu1 %v3693_v27 }
 0xacd   : > { %v5881_v25 = vpop.eup %5880 }
 0xace   : > { %v3731_v8 = vmul.f32 %v5881_v25, %v8410_v45  ;;  %v9389_v45 = vld [vmem:[#allocation31_spill] sm:$0xff] }
 0xad0   : > { %5331 = vmatmul.msk.f32.vlgmr.msrb.gmra.mxu3 %vm1251_vm9, %v3731_v8 }
 0xad2   : > { %5282 = vmatmul.msk.f32.gmra.mxu0 %vm994_vm14, %v8276_v39 }
 0xad7   : > { %4086 = vrot.lane.b32.xlu0 %v5616_v26, %s6163_s22 }
 0xada   : > { %5283 = vmatmul.msk.f32.gmra.mxu0 %vm994_vm14, %v8290_v10  ;;  %v3627_v10 = vsub.f32 %v8315_v38, %v8437_v37  ;;  %v3661_v37 = vmul.f32 1.442695, %v3630_v9 }
 0xadb   : > { %5600 = vrot.lane.b32.xlu2 %v9387_v30, %s6169_s19 }
 0xadc   : > { %v3655_v47 = vmul.f32 1.442695, %v3627_v10 }
 0xae2   : > { %5284 = vmatmul.msk.f32.gmra.mxu0 %vm994_vm14, %v8300_v36  ;;  %v3683_v36 = vpop.xlane.xlu1 %3682 }
 0xae4   : > { %5605 = vrot.lane.b32.xlu1 %v9388_v33, %s6169_s19 }
 0xaea   : > { %5285 = vmatmul.msk.f32.gmra.mxu0 %vm994_vm14, %v8309_v6 }
 0xaec   : > { %5610 = vrot.lane.b32.xlu1 %v9389_v45, %s6169_s19  ;;  %s5399_s19 = sshll.u32 %s6233_s28, 7  ;;  %s4936_s28 = scalar_lea.sflag [#allocation4], %s335_s14 }
 0xaed   : > { %s4948_s23 = scalar_lea.hbm %s9207_s7, %s5399_s19 }
 0xaee   : > { %s4951_s16 = sshll.u32 %s4948_s23, 4  ;;  %s4952_s16 = int_to_ptr.hbm [resolvable:$true] %s4951_s16 }
 0xaef   : > { %s6092_s18 = sshra.s32 %s4952_s16, 4  ;;  %s6093_s18 = int_to_ptr.hbm [resolvable:$true] %s6092_s18 }
 0xaf0   : > { %v3680_v39 = vpop.xlane.xlu0 %3679  ;;  %s6094_s1 = scalar_lea.hbm %s6093_s18, 128  ;;  %p6099_p3 = scmp.lt.s32.totalorder %s6093_s18, %s9207_s7 }
 0xaf1   : > { %5882 = vrcp.f32 %v3680_v39  ;;  %p6095_p0 = scmp.ne.s32.totalorder %s6093_s18, %s6094_s1  ;;  %p6100_p4 = scmp.lt.s32.totalorder %s6098_s13, %s6094_s1 }
 0xaf2   : > { %5286 = vmatmul.msk.f32.gmra.mxu0 %vm994_vm14, %v8327_v59  ;;  %5884 = vrcp.f32 %v3683_v36  ;;  %v8530_v59 = vpop.f32.mrf.mxu0 }
 0xaf3   : > { %5886 = vpow2.f32 %v3655_v47  ;;  %p6096_p1 = pnand %p6095_p0, %p6250_p5  ;;  %p6101_p7 = por %p6100_p4, %p6099_p3 }
 0xaf4   : > { %5888 = vpow2.f32 %v3661_v37 }
 0xaf5   : > { %p6097_p2 = pneg %p6096_p1 }
 0xaf7   : > { %v5883_v55 = vpop.eup %5882  ;;  %p6102_p8 = pnand %p6101_p7, %p6097_p2 }
 0xaf8   : > { %v3732_v6 = vmul.f32 %v5883_v55, %v8441_v57  ;;  %v5885_v38 = vpop.eup %5884  ;;  %v3628_v57 = vsub.f32 %v8334_v19, %v8445_v31 }
 0xaf9   : > { %v8528_v29 = vpop.eup %5886  ;;  %v3733_v34 = vmul.f32 %v5885_v38, %v8420_v20 }
 0xafa   : > { %5287 = vmatmul.msk.f32.gmra.mxu0 %vm994_vm14, %v8280_v22  ;;  %5332 = vmatmul.msk.f32.gmra.mxu3 %vm1251_vm9, %v3732_v6  ;;  %v3699_v22 = vsel %vm1251_vm9, %v8528_v29, 0.0  ;;  %v8540_v58 = vpop.eup %5888  ;;  %v3657_v20 = vmul.f32 1.442695, %v3628_v57  ;;  %v8542_v41 = vpop.f32.mrf.mxu0 }
 0xafc   : > { %5890 = vpow2.f32 %v3657_v20 }
 0xb02   : > { %5288 = vmatmul.msk.f32.gmra.mxu0 %vm994_vm14, %v8282_v21  ;;  %5333 = vmatmul.msk.f32.gmra.mxu3 %vm1251_vm9, %v3733_v34  ;;  %v3708_v21 = vsel %vm1251_vm9, %v8540_v58, 0.0  ;;  %v8548_v49 = vpop.eup %5890  ;;  %v8552_v19 = vpop.f32.mrf.mxu0 }
 0xb03   : > { %v5596_v40 = vpop.permute.xlu0 %5595  ;;  %v3702_v31 = vsel %vm1251_vm9, %v8548_v49, 0.0 }
 0xb04   : > { %v5597_v28 = vunpack.i.l.bf16 %v5596_v40  ;;  %3700 = vadd.xlane.f32.xlu2 %v3699_v22  ;;  %v5598_v52 = vunpack.i.h.bf16 %v5596_v40 }
 0xb06   : > { %3885 = vmatpush.msrb.mxu1 %v5597_v28 }
 0xb08   : > { %3886 = vmatpush.msrb.mxu1 %v5598_v52 }
 0xb0a   : > { %5289 = vmatmul.msk.f32.gmra.mxu0 %vm994_vm14, %v8284_v16  ;;  %v8558_v16 = vpop.f32.mrf.mxu0 }
 0xb0c   : > { %3709 = vadd.xlane.f32.xlu2 %v3708_v21 }
 0xb11   : > { %v3692_v2 = vpop.xlane.xlu1 %3691 }
 0xb12   : > { %5290 = vmatmul.msk.f32.gmra.mxu0 %vm994_vm14, %v8287_v51  ;;  %v8562_v54 = vpop.f32.mrf.mxu0 }
 0xb16   : > { %3703 = vadd.xlane.f32.xlu1 %v3702_v31 }
 0xb1a   : > { %5291 = vmatmul.msk.f32.gmra.mxu0 %vm994_vm14, %v8342_v44  ;;  %v8566_v12 = vpop.f32.mrf.mxu0 }
 0xb22   : > { %5292 = vmatmul.msk.f32.gmra.mxu0 %vm994_vm14, %v8348_v53  ;;  %v3784_v53 = vpop.f32.mrf.mxu2  ;;  %v8586_v34 = vpop.f32.mrf.mxu0 }
 0xb2a   : > { %5293 = vmatmul.msk.f32.gmra.mxu0 %vm994_vm14, %v8364_v62  ;;  %v3787_v25 = vpop.f32.mrf.mxu2  ;;  %v8588_v40 = vpop.f32.mrf.mxu0 }
 0xb2e   : > { %v3686_v51 = vpop.xlane.xlu2 %3685  ;;  %v3698_v45 = vpop.xlane.xlu0 %3697 }
 0xb2f   : > { %5892 = vrcp.f32 %v3686_v51 }
 0xb32   : > { %5294 = vmatmul.msk.f32.gmra.mxu0 %vm994_vm14, %v8366_v50  ;;  %v3790_v33 = vpop.f32.mrf.mxu2  ;;  %v8590_v57 = vpop.f32.mrf.mxu0 }
 0xb35   : > { %v5893_v44 = vpop.eup %5892 }
 0xb36   : > { %v3689_v23 = vpop.xlane.xlu2 %3688  ;;  %v3734_v14 = vmul.f32 %v5893_v44, %v8474_v24  ;;  %v3707_v1 = vpop.xlane.xlu0 %3706 }
 0xb37   : > { %5894 = vrcp.f32 %v3689_v23 }
 0xb38   : > { %5334 = vmatmul.msk.f32.gmra.mxu3 %vm1251_vm9, %v3734_v14  ;;  %5896 = vrcp.f32 %v3692_v2 }
 0xb3a   : > { %v3793_v47 = vpop.f32.mrf.mxu2  ;;  %v8595_v20 = vpop.f32.mrf.mxu0 }
 0xb3d   : > { %v5895_v35 = vpop.eup %5894 }
 0xb3e   : > { %v5601_v62 = vpop.permute.xlu2 %5600  ;;  %v3735_v50 = vmul.f32 %v5895_v35, %v8484_v43  ;;  %v3695_v24 = vpop.xlane.xlu1 %3694 }
 0xb3f   : > { %v5602_v56 = vunpack.i.l.bf16 %v5601_v62  ;;  %v5603_v27 = vunpack.i.h.bf16 %v5601_v62  ;;  %v5897_v8 = vpop.eup %5896  ;;  %5898 = vrcp.f32 %v3695_v24 }
 0xb40   : > { %5343 = vmatmul.msk.f32.vlgmr.msra.gmra.mxu3 %vm994_vm14, %v3784_v53  ;;  %v3736_v30 = vmul.f32 %v5897_v8, %v8458_v13  ;;  %5900 = vrcp.f32 %v3698_v45  ;;  %v9391_v45 = vld [vmem:[#allocation58_spill] sm:$0xff] }
 0xb41   : > { %3887 = vmatpush.msrb.mxu1 %v5602_v56 }
 0xb42   : > { %v8598_v60 = vpop.f32.mrf.mxu0 }
 0xb43   : > { %3888 = vmatpush.msrb.mxu1 %v5603_v27  ;;  %v9390_v27 = vld [vmem:[#allocation36_spill] sm:$0xff] }
 0xb44   : > { %5335 = vmatmul.msk.f32.vlgmr.msrb.gmra.mxu1 %vm1251_vm9, %v3735_v50  ;;  %v2451_v50 = vadd.f32 %v9390_v27, %v8515_v63 }
 0xb45   : > { %v5899_v39 = vpop.eup %5898 }
 0xb46   : > { %v3737_v43 = vmul.f32 %v5899_v39, %v8493_v5  ;;  %v5901_v36 = vpop.eup %5900  ;;  %v2454_v39 = vadd.f32 %v9391_v45, %v8521_v61  ;;  %v5946_v45 = vld [vmem:[%s6311_s21 + $0x20] sm:$0xff] }
 0xb47   : > { %v3738_v13 = vmul.f32 %v5901_v36, %v8472_v7 }
 0xb48   : > { %5344 = vmatmul.msk.f32.gmra.mxu3 %vm994_vm14, %v3787_v25 }
 0xb4a   : > { %v8602_v23 = vpop.f32.mrf.mxu0 }
 0xb4c   : > { %5336 = vmatmul.msk.f32.gmra.mxu1 %vm1251_vm9, %v3736_v30  ;;  %v8615_v30 = vpop.permute.xlu0 %4086 }
 0xb50   : > { %5345 = vmatmul.msk.f32.gmra.mxu3 %vm994_vm14, %v3790_v33 }
 0xb52   : > { %v8607_v62 = vpop.f32.mrf.mxu0 }
 0xb53   : > { %v3837_v38 = vpop.f32.mrf.mxu3 }
 0xb54   : > { %5337 = vmatmul.msk.f32.gmra.mxu1 %vm1251_vm9, %v3737_v43  ;;  %v5942_v43 = vld [vmem:[%s6311_s21] sm:$0xff] }
 0xb56   : > { %v5606_v10 = vpop.permute.xlu1 %5605 }
 0xb57   : > { %v5607_v55 = vunpack.i.l.bf16 %v5606_v10  ;;  %v5608_v6 = vunpack.i.h.bf16 %v5606_v10 }
 0xb58   : > { %5346 = vmatmul.msk.f32.gmra.mxu3 %vm994_vm14, %v3793_v47 }
 0xb59   : > { %3938 = vmatpush.msrb.mxu2 %v5607_v55 }
 0xb5b   : > { %3939 = vmatpush.msrb.mxu2 %v5608_v6 }
 0xb5c   : > { %5338 = vmatmul.msk.f32.gmra.mxu1 %vm1251_vm9, %v3738_v13 }
 0xb5e   : > { %v5611_v9 = vpop.permute.xlu1 %5610 }
 0xb5f   : > { %v5612_v37 = vunpack.i.l.bf16 %v5611_v9  ;;  %v5613_v5 = vunpack.i.h.bf16 %v5611_v9 }
 0xb60   : > { %5347 = vmatmul.msk.f32.gmra.mxu3 %vm994_vm14, %v3837_v38  ;;  %v9392_v38 = vld [vmem:[#allocation59_spill] sm:$0xff] }
 0xb61   : > { %3940 = vmatpush.msrb.mxu2 %v5612_v37  ;;  %v2457_v61 = vadd.f32 %v9392_v38, %v8530_v59  ;;  %v5943_v37 = vld [vmem:[%s6311_s21 + $0x8] sm:$0xff] }
 0xb63   : > { %3941 = vmatpush.msrb.mxu2 %v5613_v5 }
 0xb77   : > { %v3701_v22 = vpop.xlane.xlu2 %3700 }
 0xb78   : > { %5902 = vrcp.f32 %v3701_v22 }
 0xb7d   : > { %v3840_v7 = vpop.f32.mrf.mxu3 }
 0xb7e   : > { %v5903_v28 = vpop.eup %5902  ;;  %5348 = vmatmul.msk.f32.gmra.mxu3 %vm994_vm14, %v3840_v7 }
 0xb7f   : > { %v3739_v52 = vmul.f32 %v5903_v28, %v8528_v29  ;;  %v3710_v44 = vpop.xlane.xlu2 %3709 }
 0xb81   : > { %5339 = vmatmul.msk.f32.vlgmr.msrb.gmra.mxu2 %vm1251_vm9, %v3739_v52 }
 0xb85   : > { %v3843_v21 = vpop.f32.mrf.mxu3 }
 0xb86   : > { %5349 = vmatmul.msk.f32.gmra.mxu3 %vm994_vm14, %v3843_v21 }
 0xb89   : > { %v3704_v31 = vpop.xlane.xlu1 %3703 }
 0xb8a   : > { %5904 = vrcp.f32 %v3704_v31 }
 0xb8b   : > { %5906 = vrcp.f32 %v3707_v1 }
 0xb8c   : > { %5908 = vrcp.f32 %v3710_v44 }
 0xb90   : > { %v5905_v51 = vpop.eup %5904 }
 0xb91   : > { %v3740_v26 = vmul.f32 %v5905_v51, %v8548_v49  ;;  %v5907_v29 = vpop.eup %5906  ;;  %v8610_v49 = vpop.f32.mrf.mxu0  ;;  %v9393_v51 = vld [vmem:[#allocation57_spill] sm:$0xff] }
 0xb92   : > { %v3741_v14 = vmul.f32 %v5907_v29, %v8482_v46  ;;  %v5909_v53 = vpop.eup %5908  ;;  %v2460_v59 = vadd.f32 %v9393_v51, %v8542_v41  ;;  %v2463_v41 = vadd.f32 %v8048_v4, %v8552_v19  ;;  %v2466_v19 = vadd.f32 %v8057_v42, %v8558_v16 }
 0xb93   : > { %5340 = vmatmul.msk.f32.gmra.mxu2 %vm1251_vm9, %v3740_v26  ;;  %v3742_v2 = vmul.f32 %v5909_v53, %v8540_v58  ;;  %v5944_v26 = vld [vmem:[%s6311_s21 + $0x10] sm:$0xff] }
 0xb99   : > { %v3227_v35 = vpop.f32.mrf.mxu0 }
 0xb9a   : > { %v3275_v24 = vadd.f32 %v3227_v35, %v2451_v50  ;;  %v5945_v50 = vld [vmem:[%s6311_s21 + $0x18] sm:$0xff] }
 0xb9b   : > { %5341 = vmatmul.msk.f32.gmra.mxu2 %vm1251_vm9, %v3741_v14 }
 0xba1   : > { %v3230_v46 = vpop.f32.mrf.mxu0 }
 0xba2   : > { %v3276_v63 = vadd.f32 %v3230_v46, %v2454_v39 }
 0xba3   : > { %5342 = vmatmul.msk.f32.gmra.mxu2 %vm1251_vm9, %v3742_v2 }
 0xba9   : > { %v3233_v55 = vpop.f32.mrf.mxu0 }
 0xbaa   : > { %v3277_v7 = vadd.f32 %v3233_v55, %v2457_v61  ;;  %v5947_v61 = vld [vmem:[%s6311_s21 + $0x28] sm:$0xff] }
 0xbb1   : > { %v3236_v31 = vpop.f32.mrf.mxu0 }
 0xbb2   : > { %v3278_v29 = vadd.f32 %v3236_v31, %v2460_v59 }
 0xbb9   : > { %v3239_v27 = vpop.f32.mrf.mxu0 }
 0xbbb   : > { %v3846_v56 = vpop.f32.mrf.mxu3 }
 0xbbc   : > { %5350 = vmatmul.msk.f32.gmra.mxu3 %vm994_vm14, %v3846_v56 }
 0xbc1   : > { %v3890_v25 = vpop.f32.mrf.mxu1  ;;  %v3242_v4 = vpop.f32.mrf.mxu0 }
 0xbc3   : > { %v4020_v8 = vpop.f32.mrf.mxu3 }
 0xbc4   : > { %v4068_v58 = vadd.f32 %v4020_v8, %v3275_v24  ;;  %5351 = vmatmul.msk.f32.gmra.mxu3 %vm994_vm14, %v3890_v25  ;;  %v3279_v25 = vadd.f32 %v3239_v27, %v2463_v41 }
 0xbc6   : > { %v4089_v33 = vadd.f32 %v8615_v30, %v4068_v58 }
 0xbc8   : > { %v8622_v10 = vadd.f32 %v5942_v43, %v4089_v33 }
 0xbc9   : > { %v3893_v36 = vpop.f32.mrf.mxu1 }
 0xbca   : > { %v4121_v47 = vsel %vm370_vm0, %v8622_v10, 0.0 }
 0xbcb   : > { %v4023_v6 = vpop.f32.mrf.mxu3  ;;  %4122 = vadd.xlane.f32.xlu2 %v4121_v47 }
 0xbcc   : > { %v4069_v13 = vadd.f32 %v4023_v6, %v3276_v63  ;;  %5352 = vmatmul.msk.f32.gmra.mxu3 %vm994_vm14, %v3893_v36  ;;  %v3280_v36 = vadd.f32 %v3242_v4, %v2466_v19 }
 0xbce   : > { %v4090_v9 = vadd.f32 %v8615_v30, %v4069_v13  ;;  %v3245_v13 = vpop.f32.mrf.mxu0 }
 0xbd0   : > { %v8631_v5 = vadd.f32 %v5943_v37, %v4090_v9  ;;  %v9394_v9 = vld [vmem:[#allocation60_spill] sm:$0xff] }
 0xbd1   : > { %v3896_v22 = vpop.f32.mrf.mxu1  ;;  %v2469_v38 = vadd.f32 %v9394_v9, %v8562_v54 }
 0xbd2   : > { %v4124_v28 = vsel %vm370_vm0, %v8631_v5, 0.0 }
 0xbd3   : > { %v4026_v52 = vpop.f32.mrf.mxu3  ;;  %4125 = vadd.xlane.f32.xlu2 %v4124_v28 }
 0xbd4   : > { %v4070_v21 = vadd.f32 %v4026_v52, %v3277_v7  ;;  %5353 = vmatmul.msk.f32.gmra.mxu3 %vm994_vm14, %v3896_v22  ;;  %v3281_v22 = vadd.f32 %v3245_v13, %v2469_v38  ;;  %v5948_v52 = vld [vmem:[%s6311_s21 + $0x30] sm:$0xff]  ;;  %v5950_v13 = vld [vmem:[%s6311_s21 + $0x40] sm:$0xff] }
 0xbd6   : > { %v4091_v1 = vadd.f32 %v8615_v30, %v4070_v21  ;;  %v3248_v59 = vpop.f32.mrf.mxu0 }
 0xbd8   : > { %v8640_v44 = vadd.f32 %v5944_v26, %v4091_v1  ;;  %v2472_v26 = vadd.f32 %v8082_v17, %v8566_v12 }
 0xbd9   : > { %v3899_v53 = vpop.f32.mrf.mxu1 }
 0xbda   : > { %v4127_v14 = vsel %vm370_vm0, %v8640_v44, 0.0 }
 0xbdb   : > { %v4029_v2 = vpop.f32.mrf.mxu3  ;;  %4128 = vadd.xlane.f32.xlu0 %v4127_v14 }
 0xbdc   : > { %v4071_v35 = vadd.f32 %v4029_v2, %v3278_v29  ;;  %5354 = vmatmul.msk.f32.gmra.mxu3 %vm994_vm14, %v3899_v53  ;;  %v3282_v29 = vadd.f32 %v3248_v59, %v2472_v26  ;;  %v9395_v2 = vld [vmem:[#allocation16_spill] sm:$0xff] }
 0xbde   : > { %v4092_v56 = vadd.f32 %v8615_v30, %v4071_v35  ;;  %v3251_v14 = vpop.f32.mrf.mxu0 }
 0xbe0   : > { %v8649_v46 = vadd.f32 %v5945_v50, %v4092_v56 }
 0xbe2   : > { %v4130_v24 = vsel %vm370_vm0, %v8649_v46, 0.0 }
 0xbe3   : > { %v4032_v8 = vpop.f32.mrf.mxu3  ;;  %4131 = vadd.xlane.f32.xlu2 %v4130_v24  ;;  %v9396_v24 = vld [vmem:[#allocation49_spill] sm:$0xff] }
 0xbe4   : > { %v4072_v58 = vadd.f32 %v4032_v8, %v3279_v25  ;;  %v2475_v8 = vadd.f32 %v9396_v24, %v8586_v34 }
 0xbe6   : > { %v4093_v33 = vadd.f32 %v8615_v30, %v4072_v58  ;;  %v5949_v58 = vld [vmem:[%s6311_s21 + $0x38] sm:$0xff] }
 0xbe8   : > { %v8655_v39 = vadd.f32 %v5946_v45, %v4093_v33  ;;  %v3283_v33 = vadd.f32 %v3251_v14, %v2475_v8 }
 0xbea   : > { %v4133_v43 = vsel %vm370_vm0, %v8655_v39, 0.0 }
 0xbeb   : > { %4134 = vadd.xlane.f32.xlu2 %v4133_v43 }
 0xc01   : > { %v4035_v63 = vpop.f32.mrf.mxu3 }
 0xc02   : > { %v4073_v47 = vadd.f32 %v4035_v63, %v3280_v36  ;;  %v3254_v36 = vpop.f32.mrf.mxu0 }
 0xc04   : > { %v4094_v55 = vadd.f32 %v8615_v30, %v4073_v47  ;;  %v3943_v6 = vpop.f32.mrf.mxu2 }
 0xc05   : > { %5355 = vmatmul.msk.f32.gmra.mxu3 %vm994_vm14, %v3943_v6  ;;  %v2478_v6 = vadd.f32 %v8103_v48, %v8588_v40 }
 0xc06   : > { %v8666_v37 = vadd.f32 %v5947_v61, %v4094_v55 }
 0xc07   : > { %v3284_v61 = vadd.f32 %v3254_v36, %v2478_v6 }
 0xc08   : > { %v4136_v42 = vsel %vm370_vm0, %v8666_v37, 0.0 }
 0xc09   : > { %v4038_v16 = vpop.f32.mrf.mxu3  ;;  %4137 = vadd.xlane.f32.xlu1 %v4136_v42 }
 0xc0a   : > { %v4074_v7 = vadd.f32 %v4038_v16, %v3281_v22  ;;  %v3257_v48 = vpop.f32.mrf.mxu0 }
 0xc0c   : > { %v4095_v28 = vadd.f32 %v8615_v30, %v4074_v7 }
 0xc0e   : > { %v8672_v21 = vadd.f32 %v5948_v52, %v4095_v28 }
 0xc10   : > { %v4139_v31 = vsel %vm370_vm0, %v8672_v21, 0.0 }
 0xc11   : > { %4140 = vadd.xlane.f32.xlu1 %v4139_v31 }
 0xc16   : > { %v3946_v54 = vpop.f32.mrf.mxu2 }
 0xc17   : > { %5356 = vmatmul.msk.f32.gmra.mxu3 %vm994_vm14, %v3946_v54  ;;  %v5951_v54 = vld [vmem:[%s6311_s21 + $0x48] sm:$0xff] }
 0xc1e   : > { %v3949_v1 = vpop.f32.mrf.mxu2 }
 0xc1f   : > { %5357 = vmatmul.msk.f32.gmra.mxu3 %vm994_vm14, %v3949_v1 }
 0xc26   : > { %v3952_v51 = vpop.f32.mrf.mxu2 }
 0xc27   : > { %5358 = vmatmul.msk.f32.gmra.mxu3 %vm994_vm14, %v3952_v51  ;;  %v2481_v51 = vadd.f32 %v8109_v11, %v8590_v57  ;;  %v3260_v57 = vpop.f32.mrf.mxu0 }
 0xc29   : > { %v3285_v14 = vadd.f32 %v3257_v48, %v2481_v51 }
 0xc3e   : > { %v4123_v53 = vpop.xlane.xlu2 %4122 }
 0xc3f   : > { %v4169_v35 = vmul.f32 %v4123_v53, %v9395_v2  ;;  %v4041_v56 = vpop.f32.mrf.mxu3 }
 0xc40   : > { %v4075_v27 = vadd.f32 %v4041_v56, %v3282_v29 }
 0xc41   : > { %v8683_v41 = vsub.f32 %v8622_v10, %v4169_v35 }
 0xc42   : > { %v4096_v50 = vadd.f32 %v8615_v30, %v4075_v27 }
 0xc43   : > { %v4201_v25 = vmul.f32 %v8683_v41, %v8683_v41 }
 0xc44   : > { %v8691_v17 = vadd.f32 %v5949_v58, %v4096_v50  ;;  %v2484_v50 = vadd.f32 %v8114_v3, %v8595_v20 }
 0xc45   : > { %v4217_v12 = vsel %vm370_vm0, %v4201_v25, 0.0 }
 0xc46   : > { %v4126_v45 = vpop.xlane.xlu2 %4125  ;;  %4218 = vadd.xlane.f32.xlu2 %v4217_v12  ;;  %v4142_v43 = vsel %vm370_vm0, %v8691_v17, 0.0  ;;  %v3286_v58 = vadd.f32 %v3260_v57, %v2484_v50 }
 0xc47   : > { %v4170_v4 = vmul.f32 %v4126_v45, %v9395_v2  ;;  %v4044_v19 = vpop.f32.mrf.mxu3  ;;  %4143 = vadd.xlane.f32.xlu1 %v4142_v43  ;;  %v5952_v45 = vld [vmem:[%s6311_s21 + $0x50] sm:$0xff] }
 0xc48   : > { %v4076_v63 = vadd.f32 %v4044_v19, %v3283_v33 }
 0xc49   : > { %v8698_v34 = vsub.f32 %v8631_v5, %v4170_v4 }
 0xc4a   : > { %v4097_v47 = vadd.f32 %v8615_v30, %v4076_v63 }
 0xc4b   : > { %v4202_v55 = vmul.f32 %v8698_v34, %v8698_v34 }
 0xc4c   : > { %v8706_v9 = vadd.f32 %v5950_v13, %v4097_v47  ;;  %v5953_v47 = vld [vmem:[%s6311_s21 + $0x58] sm:$0xff] }
 0xc4d   : > { %v4220_v38 = vsel %vm370_vm0, %v4202_v55, 0.0 }
 0xc4e   : > { %v4129_v22 = vpop.xlane.xlu0 %4128  ;;  %4221 = vadd.xlane.f32.xlu2 %v4220_v38  ;;  %v4145_v42 = vsel %vm370_vm0, %v8706_v9, 0.0 }
 0xc4f   : > { %v4171_v16 = vmul.f32 %v4129_v22, %v9395_v2  ;;  %v4047_v7 = vpop.f32.mrf.mxu3  ;;  %4146 = vadd.xlane.f32.xlu1 %v4145_v42 }
 0xc50   : > { %v4077_v28 = vadd.f32 %v4047_v7, %v3284_v61 }
 0xc51   : > { %v8713_v52 = vsub.f32 %v8640_v44, %v4171_v16  ;;  %v3263_v16 = vpop.f32.mrf.mxu0 }
 0xc52   : > { %v4098_v40 = vadd.f32 %v8615_v30, %v4077_v28  ;;  %v2487_v28 = vadd.f32 %v8125_v15, %v8598_v60 }
 0xc53   : > { %v4203_v31 = vmul.f32 %v8713_v52, %v8713_v52 }
 0xc54   : > { %v8719_v1 = vadd.f32 %v5951_v54, %v4098_v40  ;;  %v3287_v40 = vadd.f32 %v3263_v16, %v2487_v28 }
 0xc55   : > { %v4223_v59 = vsel %vm370_vm0, %v4203_v31, 0.0 }
 0xc56   : > { %v4132_v26 = vpop.xlane.xlu2 %4131  ;;  %4224 = vadd.xlane.f32.xlu2 %v4223_v59  ;;  %v4148_v29 = vsel %vm370_vm0, %v8719_v1, 0.0 }
 0xc57   : > { %v4172_v53 = vmul.f32 %v4132_v26, %v9395_v2  ;;  %v4050_v35 = vpop.f32.mrf.mxu3  ;;  %4149 = vadd.xlane.f32.xlu0 %v4148_v29 }
 0xc58   : > { %v4078_v27 = vadd.f32 %v4050_v35, %v3285_v14  ;;  %v5954_v14 = vld [vmem:[%s6311_s21 + $0x60] sm:$0xff]  ;;  %v2490_v35 = vadd.f32 %v8138_v18, %v8602_v23 }
 0xc59   : > { %v8728_v56 = vsub.f32 %v8649_v46, %v4172_v53  ;;  %v3266_v60 = vpop.f32.mrf.mxu0  ;;  %v4517_v18 = vld [vmem:[#allocation8 + $0x50] sm:$0xff]  ;;  %v4518_v23 = vld [vmem:[#allocation8 + $0x58] sm:$0xff] }
 0xc5a   : > { %v4099_v25 = vadd.f32 %v8615_v30, %v4078_v27  ;;  %v3288_v27 = vadd.f32 %v3266_v60, %v2490_v35 }
 0xc5b   : > { %v4204_v11 = vmul.f32 %v8728_v56, %v8728_v56 }
 0xc5c   : > { %v8738_v43 = vadd.f32 %v5952_v45, %v4099_v25  ;;  %v5955_v25 = vld [vmem:[%s6311_s21 + $0x68] sm:$0xff]  ;;  %v4520_v45 = vld [vmem:[#allocation8 + $0x68] sm:$0xff] }
 0xc5d   : > { %v4226_v24 = vsel %vm370_vm0, %v4204_v11, 0.0 }
 0xc5e   : > { %4227 = vadd.xlane.f32.xlu2 %v4226_v24  ;;  %v4135_v8 = vpop.xlane.xlu2 %4134  ;;  %v4151_v63 = vsel %vm370_vm0, %v8738_v43, 0.0 }
 0xc5f   : > { %v4173_v12 = vmul.f32 %v4135_v8, %v9395_v2  ;;  %v4053_v33 = vpop.f32.mrf.mxu3 }
 0xc60   : > { %v4079_v19 = vadd.f32 %v4053_v33, %v3286_v58  ;;  %v4521_v58 = vld [vmem:[#allocation8 + $0x70] sm:$0xff]  ;;  %v4519_v33 = vld [vmem:[#allocation8 + $0x60] sm:$0xff] }
 0xc61   : > { %v8741_v4 = vsub.f32 %v8655_v39, %v4173_v12  ;;  %v4522_v12 = vld [vmem:[#allocation8 + $0x78] sm:$0xff]  ;;  %4584 = vmatpush.msra.mxu1 %v4521_v58 }
 0xc62   : > { %v4100_v20 = vadd.f32 %v8615_v30, %v4079_v19  ;;  %4649 = vmatpush.msra.mxu2 %v4522_v12  ;;  %v4515_v19 = vld [vmem:[#allocation8 + $0x40] sm:$0xff] }
 0xc63   : > { %v4205_v3 = vmul.f32 %v8741_v4, %v8741_v4  ;;  %4585 = vmatpush.msra.mxu1 %v4519_v33  ;;  %v5956_v33 = vld [vmem:[%s6311_s21 + $0x70] sm:$0xff] }
 0xc64   : > { %v8750_v55 = vadd.f32 %v5953_v47, %v4100_v20  ;;  %4650 = vmatpush.msra.mxu2 %v4520_v45  ;;  %v4513_v20 = vld [vmem:[#allocation8 + $0x30] sm:$0xff]  ;;  %v4512_v47 = vld [vmem:[#allocation8 + $0x28] sm:$0xff] }
 0xc65   : > { %v4229_v36 = vsel %vm370_vm0, %v4205_v3, 0.0  ;;  %4586 = vmatpush.msra.mxu1 %v4517_v18  ;;  %v4516_v3 = vld [vmem:[#allocation8 + $0x48] sm:$0xff] }
 0xc66   : > { %4230 = vadd.xlane.f32.xlu1 %v4229_v36  ;;  %4152 = vadd.xlane.f32.xlu2 %v4151_v63  ;;  %v4154_v6 = vsel %vm370_vm0, %v8750_v55, 0.0  ;;  %v4514_v36 = vld [vmem:[#allocation8 + $0x38] sm:$0xff]  ;;  %v4511_v63 = vld [vmem:[#allocation8 + $0x20] sm:$0xff] }
 0xc67   : > { %4651 = vmatpush.msra.mxu2 %v4518_v23  ;;  %4587 = vmatpush.msra.mxu1 %v4515_v19 }
 0xc69   : > { %4652 = vmatpush.msra.mxu2 %v4516_v3  ;;  %4588 = vmatpush.msra.mxu1 %v4513_v20 }
 0xc6b   : > { %4653 = vmatpush.msra.mxu2 %v4514_v36  ;;  %4589 = vmatpush.msra.mxu1 %v4511_v63 }
 0xc6d   : > { %4654 = vmatpush.msra.mxu2 %v4512_v47 }
 0xc6e   : > { %4155 = vadd.xlane.f32.xlu1 %v4154_v6  ;;  %v4509_v6 = vld [vmem:[#allocation8 + $0x10] sm:$0xff] }
 0xc6f   : > { %4590 = vmatpush.msra.mxu1 %v4509_v6 }
 0xc7c   : > { %v4138_v13 = vpop.xlane.xlu1 %4137 }
 0xc7d   : > { %v4174_v38 = vmul.f32 %v4138_v13, %v9395_v2  ;;  %v4510_v13 = vld [vmem:[#allocation8 + $0x18] sm:$0xff] }
 0xc7e   : > { %4655 = vmatpush.msra.mxu2 %v4510_v13 }
 0xc7f   : > { %v8756_v61 = vsub.f32 %v8666_v37, %v4174_v38  ;;  %v3269_v38 = vpop.f32.mrf.mxu0 }
 0xc81   : > { %v4206_v22 = vmul.f32 %v8756_v61, %v8756_v61 }
 0xc83   : > { %v4232_v42 = vsel %vm370_vm0, %v4206_v22, 0.0  ;;  %v4507_v22 = vld [vmem:[#allocation8] sm:$0xff] }
 0xc84   : > { %v4141_v7 = vpop.xlane.xlu1 %4140  ;;  %4233 = vadd.xlane.f32.xlu0 %v4232_v42  ;;  %v4508_v42 = vld [vmem:[#allocation8 + $0x8] sm:$0xff]  ;;  %4591 = vmatpush.msra.mxu1 %v4507_v22 }
 0xc85   : > { %v4175_v48 = vmul.f32 %v4141_v7, %v9395_v2  ;;  %4656 = vmatpush.msra.mxu2 %v4508_v42  ;;  %v2493_v7 = vadd.f32 %v8148_v32, %v8607_v62  ;;  %v2496_v32 = vadd.f32 %v8156_v0, %v8610_v49  ;;  %v5957_v42 = vld [vmem:[%s6311_s21 + $0x78] sm:$0xff] }
 0xc87   : > { %v8765_v31 = vsub.f32 %v8672_v21, %v4175_v48 }
 0xc88   : > { %v4056_v54 = vpop.f32.mrf.mxu3 }
 0xc89   : > { %v4080_v51 = vadd.f32 %v4056_v54, %v3287_v40  ;;  %v4207_v59 = vmul.f32 %v8765_v31, %v8765_v31  ;;  %v3289_v54 = vadd.f32 %v3269_v38, %v2493_v7 }
 0xc8b   : > { %v4101_v26 = vadd.f32 %v8615_v30, %v4080_v51  ;;  %v4235_v29 = vsel %vm370_vm0, %v4207_v59, 0.0 }
 0xc8c   : > { %4236 = vadd.xlane.f32.xlu2 %v4235_v29 }
 0xc8d   : > { %v8772_v53 = vadd.f32 %v5954_v14, %v4101_v26  ;;  %v3272_v14 = vpop.f32.mrf.mxu0 }
 0xc8f   : > { %v4157_v15 = vsel %vm370_vm0, %v8772_v53, 0.0 }
 0xc90   : > { %4158 = vadd.xlane.f32.xlu0 %v4157_v15 }
 0xc9a   : > { %v4059_v11 = vpop.f32.mrf.mxu3 }
 0xc9b   : > { %v4081_v57 = vadd.f32 %v4059_v11, %v3288_v27  ;;  %v3290_v11 = vadd.f32 %v3272_v14, %v2496_v32  ;;  %v8823_v14 = vld [vmem:[#allocation2 + $0x3] ss:$0 sm:$0xff] }
 0xc9d   : > { %v4102_v50 = vadd.f32 %v8615_v30, %v4081_v57 }
 0xc9f   : > { %v8780_v24 = vadd.f32 %v5955_v25, %v4102_v50 }
 0xca1   : > { %v4160_v8 = vsel %vm370_vm0, %v8780_v24, 0.0 }
 0xca2   : > { %4161 = vadd.xlane.f32.xlu2 %v4160_v8  ;;  %v4062_v16 = vpop.f32.mrf.mxu3 }
 0xca3   : > { %v4082_v26 = vadd.f32 %v4062_v16, %v3289_v54 }
 0xca5   : > { %v4103_v62 = vadd.f32 %v8615_v30, %v4082_v26 }
 0xca7   : > { %v8800_v45 = vadd.f32 %v5956_v33, %v4103_v62 }
 0xca9   : > { %v4163_v63 = vsel %vm370_vm0, %v8800_v45, 0.0 }
 0xcaa   : > { %v4065_v60 = vpop.f32.mrf.mxu3 }
 0xcab   : > { %v4083_v58 = vadd.f32 %v4065_v60, %v3290_v11 }
 0xcad   : > { %v4104_v19 = vadd.f32 %v8615_v30, %v4083_v58 }
 0xcaf   : > { %v8814_v16 = vadd.f32 %v5957_v42, %v4104_v19 }
 0xcb1   : > { %v4166_v60 = vsel %vm370_vm0, %v8814_v16, 0.0 }
 0xcb9   : > { %v4219_v28 = vpop.xlane.xlu2 %4218 }
 0xcba   : > { %v4265_v48 = vmul.f32 %v4219_v28, %v9395_v2  ;;  %v4144_v40 = vpop.xlane.xlu1 %4143 }
 0xcbb   : > { %v4176_v51 = vmul.f32 %v4144_v40, %v9395_v2  ;;  %v8819_v40 = vld [vmem:[#allocation2 + $0x2] ss:$0 sm:$0xff] }
 0xcbc   : > { %v4281_v59 = vadd.f32 1e-05, %v4265_v48 }
 0xcbd   : > { %v8789_v29 = vsub.f32 %v8691_v17, %v4176_v51 }
 0xcbe   : > { %5910 = vrsqrt.f32 %v4281_v59  ;;  %vm4303_vm12 = vweird.f32 %v4281_v59 }
 0xcbf   : > { %v4208_v15 = vmul.f32 %v8789_v29, %v8789_v29 }
 0xcc1   : > { %v4222_v35 = vpop.xlane.xlu2 %4221  ;;  %v4238_v27 = vsel %vm370_vm0, %v4208_v15, 0.0 }
 0xcc2   : > { %v4266_v57 = vmul.f32 %v4222_v35, %v9395_v2  ;;  %v4147_v50 = vpop.xlane.xlu1 %4146  ;;  %4239 = vadd.xlane.f32.xlu1 %v4238_v27 }
 0xcc3   : > { %v4177_v25 = vmul.f32 %v4147_v50, %v9395_v2 }
 0xcc4   : > { %v5911_v8 = vpop.eup %5910  ;;  %v4282_v12 = vadd.f32 1e-05, %v4266_v57 }
 0xcc5   : > { %v4298_v0 = vmul.f32 %v5911_v8, %v4281_v59  ;;  %v8803_v49 = vsub.f32 %v8706_v9, %v4177_v25  ;;  %vm4304_vm11 = vweird.f32 %v5911_v8 }
 0xcc6   : > { %5912 = vrsqrt.f32 %v4282_v12  ;;  %vm4305_vm13 = vmor %vm4303_vm12, %vm4304_vm11  ;;  %vm4313_vm15 = vweird.f32 %v4282_v12 }
 0xcc7   : > { %v4299_v18 = vmul.f32 %v5911_v8, %v4298_v0  ;;  %v4209_v23 = vmul.f32 %v8803_v49, %v8803_v49 }
 0xcc9   : > { %v4300_v3 = vmul.f32 0.5, %v4299_v18  ;;  %v4225_v20 = vpop.xlane.xlu2 %4224  ;;  %v4241_v36 = vsel %vm370_vm0, %v4209_v23, 0.0 }
 0xcca   : > { %v4267_v47 = vmul.f32 %v4225_v20, %v9395_v2  ;;  %v4150_v6 = vpop.xlane.xlu0 %4149  ;;  %4242 = vadd.xlane.f32.xlu0 %v4241_v36  ;;  %4164 = vadd.xlane.f32.xlu1 %v4163_v63 }
 0xccb   : > { %v4301_v13 = vsub.f32 1.5, %v4300_v3  ;;  %v4178_v38 = vmul.f32 %v4150_v6, %v9395_v2 }
 0xccc   : > { %v5913_v22 = vpop.eup %5912  ;;  %v4283_v30 = vadd.f32 1e-05, %v4267_v47 }
 0xccd   : > { %v4302_v7 = vmul.f32 %v5911_v8, %v4301_v13  ;;  %v4308_v28 = vmul.f32 %v5913_v22, %v4282_v12  ;;  %v8817_v48 = vsub.f32 %v8719_v1, %v4178_v38  ;;  %vm4314_vm14 = vweird.f32 %v5913_v22 }
 0xcce   : > { %5914 = vrsqrt.f32 %v4283_v30  ;;  %vm4315_vm1 = vmor %vm4313_vm15, %vm4314_vm14  ;;  %vm4323_vm3 = vweird.f32 %v4283_v30 }
 0xccf   : > { %v4306_v54 = vsel %vm4305_vm13, %v5911_v8, %v4302_v7  ;;  %v4309_v51 = vmul.f32 %v5913_v22, %v4308_v28  ;;  %v4210_v26 = vmul.f32 %v8817_v48, %v8817_v48 }
 0xcd0   : > { %v4457_v15 = vmul.f32 %v4306_v54, %v8683_v41 }
 0xcd1   : > { %v4310_v32 = vmul.f32 0.5, %v4309_v51  ;;  %v4228_v62 = vpop.xlane.xlu2 %4227  ;;  %v4244_v59 = vsel %vm370_vm0, %v4210_v26, 0.0 }
 0xcd2   : > { %v4474_v35 = vmul.f32 %v8819_v40, %v4457_v15  ;;  %v4268_v27 = vmul.f32 %v4228_v62, %v9395_v2  ;;  %4245 = vadd.xlane.f32.xlu2 %v4244_v59  ;;  %4167 = vadd.xlane.f32.xlu0 %v4166_v60 }
 0xcd3   : > { %v4311_v11 = vsub.f32 1.5, %v4310_v32 }
 0xcd4   : > { %v5915_v57 = vpop.eup %5914  ;;  %v4491_v50 = vadd.f32 %v8823_v14, %v4474_v35  ;;  %v4284_v25 = vadd.f32 1e-05, %v4268_v27 }
 0xcd5   : > { %v4312_v41 = vmul.f32 %v5913_v22, %v4311_v11  ;;  %v4318_v8 = vmul.f32 %v5915_v57, %v4283_v30  ;;  %vm4324_vm2 = vweird.f32 %v5915_v57 }
 0xcd6   : > { %5916 = vrsqrt.f32 %v4284_v25  ;;  %5359 = vmatmul.msk.f32.vlgmr.msra.gmra.mxu1 %vm370_vm0, %v4491_v50  ;;  %5375 = vmatmul.msk.f32.vlgmr.msra.gmra.mxu2 %vm370_vm0, %v4491_v50  ;;  %vm4325_vm4 = vmor %vm4323_vm3, %vm4324_vm2  ;;  %vm4333_vm6 = vweird.f32 %v4284_v25 }
 0xcd7   : > { %v4316_v58 = vsel %vm4315_vm1, %v5913_v22, %v4312_v41  ;;  %v4319_v33 = vmul.f32 %v5915_v57, %v4318_v8 }
 0xcd8   : > { %v4458_v0 = vmul.f32 %v4316_v58, %v8698_v34 }
 0xcd9   : > { %v4320_v18 = vmul.f32 0.5, %v4319_v33  ;;  %v4231_v23 = vpop.xlane.xlu1 %4230  ;;  %v4153_v19 = vpop.xlane.xlu2 %4152 }
 0xcda   : > { %v4269_v3 = vmul.f32 %v4231_v23, %v9395_v2  ;;  %v4179_v20 = vmul.f32 %v4153_v19, %v9395_v2  ;;  %v4475_v12 = vmul.f32 %v8819_v40, %v4458_v0 }
 0xcdb   : > { %v4321_v36 = vsub.f32 1.5, %v4320_v18 }
 0xcdc   : > { %v5917_v63 = vpop.eup %5916  ;;  %v4285_v47 = vadd.f32 1e-05, %v4269_v3  ;;  %v8839_v6 = vsub.f32 %v8738_v43, %v4179_v20  ;;  %v4492_v13 = vadd.f32 %v8823_v14, %v4475_v12 }
 0xcdd   : > { %v4322_v38 = vmul.f32 %v5915_v57, %v4321_v36  ;;  %v4328_v34 = vmul.f32 %v5917_v63, %v4284_v25  ;;  %vm4334_vm5 = vweird.f32 %v5917_v63 }
 0xcde   : > { %5918 = vrsqrt.f32 %v4285_v47  ;;  %5360 = vmatmul.msk.f32.gmra.mxu1 %vm370_vm0, %v4492_v13  ;;  %5376 = vmatmul.msk.f32.gmra.mxu2 %vm370_vm0, %v4492_v13  ;;  %v4211_v22 = vmul.f32 %v8839_v6, %v8839_v6  ;;  %vm4335_vm7 = vmor %vm4333_vm6, %vm4334_vm5  ;;  %vm4343_vm9 = vweird.f32 %v4285_v47 }
 0xcdf   : > { %v4326_v42 = vsel %vm4325_vm4, %v5915_v57, %v4322_v38  ;;  %v4329_v7 = vmul.f32 %v5917_v63, %v4328_v34 }
 0xce0   : > { %v4459_v28 = vmul.f32 %v4326_v42, %v8713_v52  ;;  %v4247_v54 = vsel %vm370_vm0, %v4211_v22, 0.0 }
 0xce1   : > { %v4330_v51 = vmul.f32 0.5, %v4329_v7  ;;  %v4156_v26 = vpop.xlane.xlu1 %4155  ;;  %4248 = vadd.xlane.f32.xlu1 %v4247_v54 }
 0xce2   : > { %v4180_v30 = vmul.f32 %v4156_v26, %v9395_v2  ;;  %v4476_v15 = vmul.f32 %v8819_v40, %v4459_v28 }
 0xce3   : > { %v4331_v32 = vsub.f32 1.5, %v4330_v51 }
 0xce4   : > { %v5919_v62 = vpop.eup %5918  ;;  %v8851_v59 = vsub.f32 %v8750_v55, %v4180_v30  ;;  %v4493_v60 = vadd.f32 %v8823_v14, %v4476_v15 }
 0xce5   : > { %v4332_v35 = vmul.f32 %v5917_v63, %v4331_v32  ;;  %v4338_v52 = vmul.f32 %v5919_v62, %v4285_v47  ;;  %vm4344_vm8 = vweird.f32 %v5919_v62 }
 0xce6   : > { %5361 = vmatmul.msk.f32.gmra.mxu1 %vm370_vm0, %v4493_v60  ;;  %5377 = vmatmul.msk.f32.gmra.mxu2 %vm370_vm0, %v4493_v60  ;;  %v4212_v27 = vmul.f32 %v8851_v59, %v8851_v59  ;;  %vm4345_vm10 = vmor %vm4343_vm9, %vm4344_vm8 }
 0xce7   : > { %v4336_v11 = vsel %vm4335_vm7, %v5917_v63, %v4332_v35  ;;  %v4339_v57 = vmul.f32 %v5919_v62, %v4338_v52 }
 0xce8   : > { %v4460_v50 = vmul.f32 %v4336_v11, %v8728_v56  ;;  %v4250_v41 = vsel %vm370_vm0, %v4212_v27, 0.0 }
 0xce9   : > { %v4340_v8 = vmul.f32 0.5, %v4339_v57  ;;  %4251 = vadd.xlane.f32.xlu2 %v4250_v41 }
 0xcea   : > { %v4477_v58 = vmul.f32 %v8819_v40, %v4460_v50 }
 0xceb   : > { %v4341_v25 = vsub.f32 1.5, %v4340_v8 }
 0xcec   : > { %v4494_v33 = vadd.f32 %v8823_v14, %v4477_v58 }
 0xced   : > { %v4342_v0 = vmul.f32 %v5919_v62, %v4341_v25 }
 0xcee   : > { %5362 = vmatmul.msk.f32.gmra.mxu1 %vm370_vm0, %v4494_v33  ;;  %5378 = vmatmul.msk.f32.gmra.mxu2 %vm370_vm0, %v4494_v33 }
 0xcef   : > { %v4346_v18 = vsel %vm4345_vm10, %v5919_v62, %v4342_v0 }
 0xcf0   : > { %v4461_v56 = vmul.f32 %v4346_v18, %v8741_v4  ;;  %v4753_v18 = vld [vmem:[%s9206_s6 + $0x78] sm:$0xff] }
 0xcf1   : > { %4773 = vmatpush.msrb.mxu0 %v4753_v18 }
 0xcf2   : > { %v4478_v23 = vmul.f32 %v8819_v40, %v4461_v56  ;;  %v4752_v56 = vld [vmem:[%s9206_s6 + $0x70] sm:$0xff] }
 0xcf3   : > { %4774 = vmatpush.msrb.mxu0 %v4752_v56 }
 0xcf4   : > { %v4495_v19 = vadd.f32 %v8823_v14, %v4478_v23  ;;  %v4751_v23 = vld [vmem:[%s9206_s6 + $0x68] sm:$0xff] }
 0xcf5   : > { %4775 = vmatpush.msrb.mxu0 %v4751_v23 }
 0xcf6   : > { %5363 = vmatmul.msk.f32.gmra.mxu1 %vm370_vm0, %v4495_v19  ;;  %5379 = vmatmul.msk.f32.gmra.mxu2 %vm370_vm0, %v4495_v19  ;;  %v4750_v19 = vld [vmem:[%s9206_s6 + $0x60] sm:$0xff] }
 0xcf7   : > { %v4234_v3 = vpop.xlane.xlu0 %4233  ;;  %4776 = vmatpush.msrb.mxu0 %v4750_v19 }
 0xcf8   : > { %v4270_v20 = vmul.f32 %v4234_v3, %v9395_v2  ;;  %v4769_v3 = vld [vmem:[%s9206_s6 + $0xf8] sm:$0xff] }
 0xcf9   : > { %4838 = vmatpush.msrb.mxu3 %v4769_v3 }
 0xcfa   : > { %v4286_v12 = vadd.f32 1e-05, %v4270_v20  ;;  %v4749_v20 = vld [vmem:[%s9206_s6 + $0x58] sm:$0xff] }
 0xcfb   : > { %4777 = vmatpush.msrb.mxu0 %v4749_v20 }
 0xcfc   : > { %5920 = vrsqrt.f32 %v4286_v12  ;;  %vm4353_vm12 = vweird.f32 %v4286_v12 }
 0xcff   : > { %v4237_v36 = vpop.xlane.xlu2 %4236 }
 0xd00   : > { %v4271_v63 = vmul.f32 %v4237_v36, %v9395_v2  ;;  %v4748_v36 = vld [vmem:[%s9206_s6 + $0x50] sm:$0xff] }
 0xd01   : > { %4778 = vmatpush.msrb.mxu0 %v4748_v36 }
 0xd02   : > { %v5921_v47 = vpop.eup %5920  ;;  %v4287_v13 = vadd.f32 1e-05, %v4271_v63  ;;  %v4767_v63 = vld [vmem:[%s9206_s6 + $0xe8] sm:$0xff] }
 0xd03   : > { %v4348_v38 = vmul.f32 %v5921_v47, %v4286_v12  ;;  %v4159_v4 = vpop.xlane.xlu0 %4158  ;;  %vm4354_vm11 = vweird.f32 %v5921_v47  ;;  %v4768_v12 = vld [vmem:[%s9206_s6 + $0xf0] sm:$0xff] }
 0xd04   : > { %5922 = vrsqrt.f32 %v4287_v13  ;;  %v4181_v34 = vmul.f32 %v4159_v4, %v9395_v2  ;;  %vm4355_vm13 = vmor %vm4353_vm12, %vm4354_vm11  ;;  %vm4363_vm15 = vweird.f32 %v4287_v13  ;;  %4839 = vmatpush.msrb.mxu3 %v4768_v12  ;;  %v4765_v4 = vld [vmem:[%s9206_s6 + $0xd8] sm:$0xff] }
 0xd05   : > { %v4349_v22 = vmul.f32 %v5921_v47, %v4348_v38  ;;  %v4746_v38 = vld [vmem:[%s9206_s6 + $0x40] sm:$0xff] }
 0xd06   : > { %v8873_v42 = vsub.f32 %v8772_v53, %v4181_v34  ;;  %4840 = vmatpush.msrb.mxu3 %v4767_v63  ;;  %v4745_v34 = vld [vmem:[%s9206_s6 + $0x38] sm:$0xff] }
 0xd07   : > { %v4350_v7 = vmul.f32 0.5, %v4349_v22  ;;  %v4764_v22 = vld [vmem:[%s9206_s6 + $0xd0] sm:$0xff] }
 0xd08   : > { %v4213_v28 = vmul.f32 %v8873_v42, %v8873_v42 }
 0xd09   : > { %v4351_v54 = vsub.f32 1.5, %v4350_v7  ;;  %v4744_v7 = vld [vmem:[%s9206_s6 + $0x30] sm:$0xff] }
 0xd0a   : > { %v5923_v51 = vpop.eup %5922  ;;  %v4253_v26 = vsel %vm370_vm0, %v4213_v28, 0.0  ;;  %v4763_v28 = vld [vmem:[%s9206_s6 + $0xc8] sm:$0xff] }
 0xd0b   : > { %v4352_v30 = vmul.f32 %v5921_v47, %v4351_v54  ;;  %v4358_v15 = vmul.f32 %v5923_v51, %v4287_v13  ;;  %4254 = vadd.xlane.f32.xlu0 %v4253_v26  ;;  %vm4364_vm14 = vweird.f32 %v5923_v51  ;;  %v4766_v13 = vld [vmem:[%s9206_s6 + $0xe0] sm:$0xff]  ;;  %v4743_v54 = vld [vmem:[%s9206_s6 + $0x28] sm:$0xff] }
 0xd0c   : > { %vm4365_vm1 = vmor %vm4363_vm15, %vm4364_vm14  ;;  %4841 = vmatpush.msrb.mxu3 %v4766_v13  ;;  %v4742_v26 = vld [vmem:[%s9206_s6 + $0x20] sm:$0xff] }
 0xd0d   : > { %v4356_v32 = vsel %vm4355_vm13, %v5921_v47, %v4352_v30  ;;  %v4359_v62 = vmul.f32 %v5923_v51, %v4358_v15  ;;  %v4747_v47 = vld [vmem:[%s9206_s6 + $0x48] sm:$0xff]  ;;  %v4761_v30 = vld [vmem:[%s9206_s6 + $0xb8] sm:$0xff] }
 0xd0e   : > { %v4462_v60 = vmul.f32 %v4356_v32, %v8756_v61  ;;  %4779 = vmatpush.msrb.mxu0 %v4747_v47  ;;  %4842 = vmatpush.msrb.mxu3 %v4765_v4  ;;  %v4741_v15 = vld [vmem:[%s9206_s6 + $0x18] sm:$0xff]  ;;  %v4760_v32 = vld [vmem:[%s9206_s6 + $0xb0] sm:$0xff] }
 0xd0f   : > { %v4360_v35 = vmul.f32 0.5, %v4359_v62  ;;  %v4740_v62 = vld [vmem:[%s9206_s6 + $0x10] sm:$0xff] }
 0xd10   : > { %v4479_v52 = vmul.f32 %v8819_v40, %v4462_v60  ;;  %4780 = vmatpush.msrb.mxu0 %v4746_v38  ;;  %4843 = vmatpush.msrb.mxu3 %v4764_v22  ;;  %v4759_v60 = vld [vmem:[%s9206_s6 + $0xa8] sm:$0xff] }
 0xd11   : > { %v4361_v27 = vsub.f32 1.5, %v4360_v35 }
 0xd12   : > { %v4496_v11 = vadd.f32 %v8823_v14, %v4479_v52  ;;  %4781 = vmatpush.msrb.mxu0 %v4745_v34  ;;  %4844 = vmatpush.msrb.mxu3 %v4763_v28 }
 0xd13   : > { %v4362_v57 = vmul.f32 %v5923_v51, %v4361_v27  ;;  %v4739_v27 = vld [vmem:[%s9206_s6 + $0x8] sm:$0xff] }
 0xd14   : > { %5364 = vmatmul.msk.f32.gmra.mxu1 %vm370_vm0, %v4496_v11  ;;  %5380 = vmatmul.msk.f32.gmra.mxu2 %vm370_vm0, %v4496_v11  ;;  %v4758_v11 = vld [vmem:[%s9206_s6 + $0xa0] sm:$0xff] }
 0xd15   : > { %v4366_v50 = vsel %vm4365_vm1, %v5923_v51, %v4362_v57  ;;  %v4162_v41 = vpop.xlane.xlu2 %4161  ;;  %4782 = vmatpush.msrb.mxu0 %v4744_v7  ;;  %v4762_v51 = vld [vmem:[%s9206_s6 + $0xc0] sm:$0xff] }
 0xd16   : > { %v4463_v8 = vmul.f32 %v4366_v50, %v8765_v31  ;;  %v4182_v61 = vmul.f32 %v4162_v41, %v9395_v2  ;;  %4845 = vmatpush.msrb.mxu3 %v4762_v51  ;;  %v4738_v50 = vld [vmem:[%s9206_s6] sm:$0xff]  ;;  %v4757_v41 = vld [vmem:[%s9206_s6 + $0x98] sm:$0xff] }
 0xd17   : > { %4783 = vmatpush.msrb.mxu0 %v4743_v54 }
 0xd18   : > { %v8886_v58 = vsub.f32 %v8780_v24, %v4182_v61  ;;  %v4480_v25 = vmul.f32 %v8819_v40, %v4463_v8  ;;  %4846 = vmatpush.msrb.mxu3 %v4761_v30  ;;  %v4756_v8 = vld [vmem:[%s9206_s6 + $0x90] sm:$0xff]  ;;  %v4755_v61 = vld [vmem:[%s9206_s6 + $0x88] sm:$0xff] }
 0xd19   : > { %4784 = vmatpush.msrb.mxu0 %v4742_v26 }
 0xd1a   : > { %v4497_v33 = vadd.f32 %v8823_v14, %v4480_v25  ;;  %v4214_v0 = vmul.f32 %v8886_v58, %v8886_v58  ;;  %4847 = vmatpush.msrb.mxu3 %v4760_v32 }
 0xd1b   : > { %4785 = vmatpush.msrb.mxu0 %v4741_v15 }
 0xd1c   : > { %5365 = vmatmul.msk.f32.gmra.mxu1 %vm370_vm0, %v4497_v33  ;;  %5381 = vmatmul.msk.f32.gmra.mxu2 %vm370_vm0, %v4497_v33  ;;  %v4256_v31 = vsel %vm370_vm0, %v4214_v0, 0.0 }
 0xd1d   : > { %4257 = vadd.xlane.f32.xlu1 %v4256_v31  ;;  %4786 = vmatpush.msrb.mxu0 %v4740_v62  ;;  %v4754_v31 = vld [vmem:[%s9206_s6 + $0x80] sm:$0xff] }
 0xd1e   : > { %4848 = vmatpush.msrb.mxu3 %v4759_v60 }
 0xd1f   : > { %4787 = vmatpush.msrb.mxu0 %v4739_v27 }
 0xd20   : > { %4849 = vmatpush.msrb.mxu3 %v4758_v11 }
 0xd21   : > { %4788 = vmatpush.msrb.mxu0 %v4738_v50 }
 0xd22   : > { %4850 = vmatpush.msrb.mxu3 %v4757_v41 }
 0xd24   : > { %4851 = vmatpush.msrb.mxu3 %v4756_v8 }
 0xd26   : > { %4852 = vmatpush.msrb.mxu3 %v4755_v61 }
 0xd28   : > { %4853 = vmatpush.msrb.mxu3 %v4754_v31 }
 0xd35   : > { %v4240_v35 = vpop.xlane.xlu1 %4239 }
 0xd36   : > { %v4272_v52 = vmul.f32 %v4240_v35, %v9395_v2  ;;  %v368_v35 = vld [vmem:[#allocation5 + $0x2] sm:$0x3] }
 0xd37   : > { %v9011_v50 = vperm.slane %v368_v35, 0 }
 0xd38   : > { %v4288_v57 = vadd.f32 1e-05, %v4272_v52 }
 0xd3a   : > { %5924 = vrsqrt.f32 %v4288_v57  ;;  %vm4373_vm3 = vweird.f32 %v4288_v57 }
 0xd3d   : > { %v4243_v25 = vpop.xlane.xlu0 %4242  ;;  %v4165_v33 = vpop.xlane.xlu1 %4164 }
 0xd3e   : > { %v4273_v0 = vmul.f32 %v4243_v25, %v9395_v2  ;;  %v4183_v18 = vmul.f32 %v4165_v33, %v9395_v2 }
 0xd40   : > { %v5925_v56 = vpop.eup %5924  ;;  %v4289_v23 = vadd.f32 1e-05, %v4273_v0  ;;  %v8995_v19 = vsub.f32 %v8800_v45, %v4183_v18 }
 0xd41   : > { %v4368_v3 = vmul.f32 %v5925_v56, %v4288_v57  ;;  %vm4374_vm2 = vweird.f32 %v5925_v56 }
 0xd42   : > { %5926 = vrsqrt.f32 %v4289_v23  ;;  %v4215_v20 = vmul.f32 %v8995_v19, %v8995_v19  ;;  %vm4375_vm4 = vmor %vm4373_vm3, %vm4374_vm2  ;;  %vm4383_vm6 = vweird.f32 %v4289_v23 }
 0xd43   : > { %v4369_v12 = vmul.f32 %v5925_v56, %v4368_v3 }
 0xd44   : > { %v4259_v36 = vsel %vm370_vm0, %v4215_v20, 0.0  ;;  %v9018_v20 = vperm.slane %v368_v35, 1 }
 0xd45   : > { %v4370_v63 = vmul.f32 0.5, %v4369_v12  ;;  %v4246_v47 = vpop.xlane.xlu2 %4245  ;;  %4260 = vadd.xlane.f32.xlu2 %v4259_v36  ;;  %v4168_v13 = vpop.xlane.xlu0 %4167 }
 0xd46   : > { %v4274_v38 = vmul.f32 %v4246_v47, %v9395_v2  ;;  %v4184_v4 = vmul.f32 %v4168_v13, %v9395_v2 }
 0xd47   : > { %v4371_v34 = vsub.f32 1.5, %v4370_v63 }
 0xd48   : > { %v5927_v22 = vpop.eup %5926  ;;  %v4290_v7 = vadd.f32 1e-05, %v4274_v38  ;;  %v9003_v28 = vsub.f32 %v8814_v16, %v4184_v4 }
 0xd49   : > { %v4372_v54 = vmul.f32 %v5925_v56, %v4371_v34  ;;  %v4378_v51 = vmul.f32 %v5927_v22, %v4289_v23  ;;  %vm4384_vm5 = vweird.f32 %v5927_v22 }
 0xd4a   : > { %5928 = vrsqrt.f32 %v4290_v7  ;;  %v4216_v26 = vmul.f32 %v9003_v28, %v9003_v28  ;;  %vm4385_vm7 = vmor %vm4383_vm6, %vm4384_vm5  ;;  %vm4393_vm9 = vweird.f32 %v4290_v7 }
 0xd4b   : > { %v4376_v30 = vsel %vm4375_vm4, %v5925_v56, %v4372_v54  ;;  %v4379_v15 = vmul.f32 %v5927_v22, %v4378_v51 }
 0xd4c   : > { %v4464_v32 = vmul.f32 %v4376_v30, %v8789_v29  ;;  %v4262_v62 = vsel %vm370_vm0, %v4216_v26, 0.0 }
 0xd4d   : > { %v4380_v60 = vmul.f32 0.5, %v4379_v15  ;;  %4263 = vadd.xlane.f32.xlu0 %v4262_v62 }
 0xd4e   : > { %v4481_v52 = vmul.f32 %v8819_v40, %v4464_v32 }
 0xd4f   : > { %v4381_v27 = vsub.f32 1.5, %v4380_v60 }
 0xd50   : > { %v5929_v11 = vpop.eup %5928  ;;  %v4498_v57 = vadd.f32 %v8823_v14, %v4481_v52 }
 0xd51   : > { %v4382_v41 = vmul.f32 %v5927_v22, %v4381_v27  ;;  %v4388_v8 = vmul.f32 %v5929_v11, %v4290_v7  ;;  %vm4394_vm8 = vweird.f32 %v5929_v11 }
 0xd52   : > { %5366 = vmatmul.msk.f32.gmra.mxu1 %vm370_vm0, %v4498_v57  ;;  %5382 = vmatmul.msk.f32.gmra.mxu2 %vm370_vm0, %v4498_v57  ;;  %vm4395_vm10 = vmor %vm4393_vm9, %vm4394_vm8 }
 0xd53   : > { %v4386_v29 = vsel %vm4385_vm7, %v5927_v22, %v4382_v41  ;;  %v4389_v61 = vmul.f32 %v5929_v11, %v4388_v8  ;;  %v4593_v25 = vpop.f32.mrf.mxu1 }
 0xd54   : > { %v4465_v33 = vmul.f32 %v4386_v29, %v8803_v49  ;;  %v4594_v0 = vadd.f32 %v4593_v25, %v9011_v50  ;;  %v4249_v18 = vpop.xlane.xlu1 %4248 }
 0xd55   : > { %v4390_v31 = vmul.f32 0.5, %v4389_v61  ;;  %v4275_v56 = vmul.f32 %v4249_v18, %v9395_v2 }
 0xd56   : > { %v4706_v3 = vmax.f32 %v4594_v0, 0.0  ;;  %v4482_v23 = vmul.f32 %v8819_v40, %v4465_v33 }
 0xd57   : > { %v4391_v12 = vsub.f32 1.5, %v4390_v31  ;;  %v4291_v36 = vadd.f32 1e-05, %v4275_v56 }
 0xd58   : > { %4789 = vmatmul.f32.vlgmr.msrb.gmra.mxu0 %v4706_v3  ;;  %v4499_v63 = vadd.f32 %v8823_v14, %v4482_v23 }
 0xd59   : > { %v4392_v47 = vmul.f32 %v5929_v11, %v4391_v12  ;;  %5930 = vrsqrt.f32 %v4291_v36  ;;  %v4658_v49 = vpop.f32.mrf.mxu2  ;;  %vm4403_vm12 = vweird.f32 %v4291_v36 }
 0xd5a   : > { %v4659_v13 = vadd.f32 %v4658_v49, %v9018_v20  ;;  %5367 = vmatmul.msk.f32.gmra.mxu1 %vm370_vm0, %v4499_v63  ;;  %5383 = vmatmul.msk.f32.gmra.mxu2 %vm370_vm0, %v4499_v63 }
 0xd5b   : > { %v4396_v38 = vsel %vm4395_vm10, %v5929_v11, %v4392_v47  ;;  %v4596_v4 = vpop.f32.mrf.mxu1 }
 0xd5c   : > { %v4466_v34 = vmul.f32 %v4396_v38, %v8817_v48  ;;  %v4707_v22 = vmax.f32 %v4659_v13, 0.0  ;;  %v4597_v54 = vadd.f32 %v4596_v4, %v9011_v50  ;;  %v4252_v51 = vpop.xlane.xlu2 %4251 }
 0xd5d   : > { %v4276_v26 = vmul.f32 %v4252_v51, %v9395_v2 }
 0xd5e   : > { %v4708_v7 = vmax.f32 %v4597_v54, 0.0  ;;  %4854 = vmatmul.f32.vlgmr.msrb.gmra.mxu3 %v4707_v22  ;;  %v4483_v30 = vmul.f32 %v8819_v40, %v4466_v34 }
 0xd5f   : > { %v5931_v15 = vpop.eup %5930  ;;  %v4292_v32 = vadd.f32 1e-05, %v4276_v26 }
 0xd60   : > { %v4398_v62 = vmul.f32 %v5931_v15, %v4291_v36  ;;  %4792 = vmatmul.f32.gmra.mxu0 %v4708_v7  ;;  %v4500_v60 = vadd.f32 %v8823_v14, %v4483_v30  ;;  %vm4404_vm11 = vweird.f32 %v5931_v15 }
 0xd61   : > { %5932 = vrsqrt.f32 %v4292_v32  ;;  %v4661_v35 = vpop.f32.mrf.mxu2  ;;  %vm4405_vm13 = vmor %vm4403_vm12, %vm4404_vm11  ;;  %vm4413_vm15 = vweird.f32 %v4292_v32 }
 0xd62   : > { %v4399_v52 = vmul.f32 %v5931_v15, %v4398_v62  ;;  %v4662_v48 = vadd.f32 %v4661_v35, %v9018_v20  ;;  %5368 = vmatmul.msk.f32.gmra.mxu1 %vm370_vm0, %v4500_v60  ;;  %5384 = vmatmul.msk.f32.gmra.mxu2 %vm370_vm0, %v4500_v60 }
 0xd63   : > { %v4599_v27 = vpop.f32.mrf.mxu1 }
 0xd64   : > { %v4400_v11 = vmul.f32 0.5, %v4399_v52  ;;  %v4709_v57 = vmax.f32 %v4662_v48, 0.0  ;;  %v4600_v41 = vadd.f32 %v4599_v27, %v9011_v50 }
 0xd66   : > { %v4401_v8 = vsub.f32 1.5, %v4400_v11  ;;  %v4710_v29 = vmax.f32 %v4600_v41, 0.0  ;;  %4857 = vmatmul.f32.gmra.mxu3 %v4709_v57 }
 0xd67   : > { %v5933_v61 = vpop.eup %5932 }
 0xd68   : > { %v4402_v25 = vmul.f32 %v5931_v15, %v4401_v8  ;;  %v4408_v33 = vmul.f32 %v5933_v61, %v4292_v32  ;;  %4795 = vmatmul.f32.gmra.mxu0 %v4710_v29  ;;  %vm4414_vm14 = vweird.f32 %v5933_v61 }
 0xd69   : > { %v4664_v0 = vpop.f32.mrf.mxu2  ;;  %vm4415_vm1 = vmor %vm4413_vm15, %vm4414_vm14 }
 0xd6a   : > { %v4406_v18 = vsel %vm4405_vm13, %v5931_v15, %v4402_v25  ;;  %v4409_v31 = vmul.f32 %v5933_v61, %v4408_v33  ;;  %v4665_v56 = vadd.f32 %v4664_v0, %v9018_v20 }
 0xd6b   : > { %v4467_v3 = vmul.f32 %v4406_v18, %v8839_v6  ;;  %v4602_v23 = vpop.f32.mrf.mxu1 }
 0xd6c   : > { %v4410_v12 = vmul.f32 0.5, %v4409_v31  ;;  %v4711_v63 = vmax.f32 %v4665_v56, 0.0  ;;  %v4603_v47 = vadd.f32 %v4602_v23, %v9011_v50 }
 0xd6d   : > { %v4484_v49 = vmul.f32 %v8819_v40, %v4467_v3 }
 0xd6e   : > { %v4411_v13 = vsub.f32 1.5, %v4410_v12  ;;  %v4712_v36 = vmax.f32 %v4603_v47, 0.0  ;;  %4860 = vmatmul.f32.gmra.mxu3 %v4711_v63 }
 0xd6f   : > { %v4501_v38 = vadd.f32 %v8823_v14, %v4484_v49 }
 0xd70   : > { %v4412_v4 = vmul.f32 %v5933_v61, %v4411_v13  ;;  %4798 = vmatmul.f32.gmra.mxu0 %v4712_v36 }
 0xd71   : > { %5369 = vmatmul.msk.f32.gmra.mxu1 %vm370_vm0, %v4501_v38  ;;  %v4667_v6 = vpop.f32.mrf.mxu2  ;;  %5385 = vmatmul.msk.f32.gmra.mxu2 %vm370_vm0, %v4501_v38 }
 0xd72   : > { %v4416_v34 = vsel %vm4415_vm1, %v5933_v61, %v4412_v4  ;;  %v4668_v22 = vadd.f32 %v4667_v6, %v9018_v20 }
 0xd73   : > { %v4468_v54 = vmul.f32 %v4416_v34, %v8851_v59  ;;  %v4605_v51 = vpop.f32.mrf.mxu1 }
 0xd74   : > { %v4713_v26 = vmax.f32 %v4668_v22, 0.0  ;;  %v4606_v7 = vadd.f32 %v4605_v51, %v9011_v50 }
 0xd75   : > { %v4485_v30 = vmul.f32 %v8819_v40, %v4468_v54 }
 0xd76   : > { %v4714_v15 = vmax.f32 %v4606_v7, 0.0  ;;  %4863 = vmatmul.f32.gmra.mxu3 %v4713_v26 }
 0xd77   : > { %v4502_v32 = vadd.f32 %v8823_v14, %v4485_v30 }
 0xd78   : > { %4801 = vmatmul.f32.gmra.mxu0 %v4714_v15 }
 0xd79   : > { %5370 = vmatmul.msk.f32.gmra.mxu1 %vm370_vm0, %v4502_v32  ;;  %v4670_v62 = vpop.f32.mrf.mxu2  ;;  %5386 = vmatmul.msk.f32.gmra.mxu2 %vm370_vm0, %v4502_v32 }
 0xd7a   : > { %v4671_v60 = vadd.f32 %v4670_v62, %v9018_v20 }
 0xd7c   : > { %v4715_v35 = vmax.f32 %v4671_v60, 0.0 }
 0xd7e   : > { %4866 = vmatmul.f32.gmra.mxu3 %v4715_v35  ;;  %v4255_v59 = vpop.xlane.xlu0 %4254 }
 0xd7f   : > { %v4277_v52 = vmul.f32 %v4255_v59, %v9395_v2 }
 0xd81   : > { %v4293_v48 = vadd.f32 1e-05, %v4277_v52 }
 0xd83   : > { %5934 = vrsqrt.f32 %v4293_v48  ;;  %vm4423_vm3 = vweird.f32 %v4293_v48 }
 0xd89   : > { %v5935_v27 = vpop.eup %5934 }
 0xd8a   : > { %v4418_v11 = vmul.f32 %v5935_v27, %v4293_v48  ;;  %vm4424_vm2 = vweird.f32 %v5935_v27 }
 0xd8b   : > { %vm4425_vm4 = vmor %vm4423_vm3, %vm4424_vm2 }
 0xd8c   : > { %v4419_v57 = vmul.f32 %v5935_v27, %v4418_v11 }
 0xd8e   : > { %v4420_v41 = vmul.f32 0.5, %v4419_v57 }
 0xd90   : > { %v4421_v8 = vsub.f32 1.5, %v4420_v41  ;;  %v4258_v29 = vpop.xlane.xlu1 %4257 }
 0xd91   : > { %v4278_v61 = vmul.f32 %v4258_v29, %v9395_v2  ;;  %v4608_v25 = vpop.f32.mrf.mxu1 }
 0xd92   : > { %v4422_v33 = vmul.f32 %v5935_v27, %v4421_v8  ;;  %v4609_v0 = vadd.f32 %v4608_v25, %v9011_v50 }
 0xd93   : > { %v4294_v18 = vadd.f32 1e-05, %v4278_v61 }
 0xd94   : > { %v4426_v31 = vsel %vm4425_vm4, %v5935_v27, %v4422_v33  ;;  %v4716_v56 = vmax.f32 %v4609_v0, 0.0 }
 0xd95   : > { %v4469_v3 = vmul.f32 %v4426_v31, %v8873_v42  ;;  %5936 = vrsqrt.f32 %v4294_v18  ;;  %vm4433_vm6 = vweird.f32 %v4294_v18 }
 0xd96   : > { %4804 = vmatmul.f32.gmra.mxu0 %v4716_v56 }
 0xd97   : > { %v4673_v23 = vpop.f32.mrf.mxu2  ;;  %v4486_v12 = vmul.f32 %v8819_v40, %v4469_v3 }
 0xd98   : > { %v4674_v63 = vadd.f32 %v4673_v23, %v9018_v20 }
 0xd99   : > { %v4611_v47 = vpop.f32.mrf.mxu1  ;;  %v4503_v49 = vadd.f32 %v8823_v14, %v4486_v12 }
 0xd9a   : > { %v4717_v13 = vmax.f32 %v4674_v63, 0.0  ;;  %v4612_v36 = vadd.f32 %v4611_v47, %v9011_v50 }
 0xd9b   : > { %v5937_v38 = vpop.eup %5936  ;;  %5371 = vmatmul.msk.f32.gmra.mxu1 %vm370_vm0, %v4503_v49  ;;  %5387 = vmatmul.msk.f32.gmra.mxu2 %vm370_vm0, %v4503_v49 }
 0xd9c   : > { %v4428_v4 = vmul.f32 %v5937_v38, %v4294_v18  ;;  %v4718_v42 = vmax.f32 %v4612_v36, 0.0  ;;  %4869 = vmatmul.f32.gmra.mxu3 %v4717_v13  ;;  %vm4434_vm5 = vweird.f32 %v5937_v38 }
 0xd9d   : > { %vm4435_vm7 = vmor %vm4433_vm6, %vm4434_vm5 }
 0xd9e   : > { %v4429_v6 = vmul.f32 %v5937_v38, %v4428_v4  ;;  %4807 = vmatmul.f32.gmra.mxu0 %v4718_v42 }
 0xd9f   : > { %v4676_v34 = vpop.f32.mrf.mxu2 }
 0xda0   : > { %v4430_v22 = vmul.f32 0.5, %v4429_v6  ;;  %v4677_v54 = vadd.f32 %v4676_v34, %v9018_v20 }
 0xda2   : > { %v4431_v51 = vsub.f32 1.5, %v4430_v22  ;;  %v4719_v26 = vmax.f32 %v4677_v54, 0.0 }
 0xda4   : > { %v4432_v7 = vmul.f32 %v5937_v38, %v4431_v51  ;;  %4872 = vmatmul.f32.gmra.mxu3 %v4719_v26  ;;  %v9078_v51 = vld [vmem:[#allocation5 + $0x4] ss:$0 sm:$0xff] }
 0xda6   : > { %v4436_v30 = vsel %vm4435_vm7, %v5937_v38, %v4432_v7 }
 0xda7   : > { %v4470_v15 = vmul.f32 %v4436_v30, %v8886_v58 }
 0xda9   : > { %v4487_v32 = vmul.f32 %v8819_v40, %v4470_v15 }
 0xdab   : > { %v4504_v62 = vadd.f32 %v8823_v14, %v4487_v32 }
 0xdad   : > { %5372 = vmatmul.msk.f32.gmra.mxu1 %vm370_vm0, %v4504_v62  ;;  %5388 = vmatmul.msk.f32.gmra.mxu2 %vm370_vm0, %v4504_v62 }
 0xdb8   : > { %v4261_v60 = vpop.xlane.xlu2 %4260 }
 0xdb9   : > { %v4279_v35 = vmul.f32 %v4261_v60, %v9395_v2 }
 0xdbb   : > { %v4295_v59 = vadd.f32 1e-05, %v4279_v35 }
 0xdbd   : > { %5938 = vrsqrt.f32 %v4295_v59  ;;  %vm4443_vm9 = vweird.f32 %v4295_v59 }
 0xdc0   : > { %v4264_v52 = vpop.xlane.xlu0 %4263 }
 0xdc1   : > { %v4280_v48 = vmul.f32 %v4264_v52, %v9395_v2 }
 0xdc3   : > { %v5939_v27 = vpop.eup %5938  ;;  %v4296_v11 = vadd.f32 1e-05, %v4280_v48 }
 0xdc4   : > { %v4438_v57 = vmul.f32 %v5939_v27, %v4295_v59  ;;  %vm4444_vm8 = vweird.f32 %v5939_v27 }
 0xdc5   : > { %5940 = vrsqrt.f32 %v4296_v11  ;;  %vm4445_vm10 = vmor %vm4443_vm9, %vm4444_vm8  ;;  %vm4453_vm12 = vweird.f32 %v4296_v11 }
 0xdc6   : > { %v4439_v58 = vmul.f32 %v5939_v27, %v4438_v57 }
 0xdc8   : > { %v4440_v41 = vmul.f32 0.5, %v4439_v58 }
 0xdca   : > { %v4441_v8 = vsub.f32 1.5, %v4440_v41 }
 0xdcb   : > { %v5941_v29 = vpop.eup %5940 }
 0xdcc   : > { %v4442_v61 = vmul.f32 %v5939_v27, %v4441_v8  ;;  %v4448_v25 = vmul.f32 %v5941_v29, %v4296_v11  ;;  %vm4454_vm11 = vweird.f32 %v5941_v29 }
 0xdcd   : > { %vm4455_vm13 = vmor %vm4453_vm12, %vm4454_vm11 }
 0xdce   : > { %v4446_v33 = vsel %vm4445_vm10, %v5939_v27, %v4442_v61  ;;  %v4449_v0 = vmul.f32 %v5941_v29, %v4448_v25 }
 0xdcf   : > { %v4471_v18 = vmul.f32 %v4446_v33, %v8995_v19  ;;  %v4614_v31 = vpop.f32.mrf.mxu1 }
 0xdd0   : > { %v4450_v56 = vmul.f32 0.5, %v4449_v0  ;;  %v4615_v2 = vadd.f32 %v4614_v31, %v9011_v50 }
 0xdd1   : > { %v4488_v3 = vmul.f32 %v8819_v40, %v4471_v18 }
 0xdd2   : > { %v4451_v23 = vsub.f32 1.5, %v4450_v56  ;;  %v4720_v12 = vmax.f32 %v4615_v2, 0.0 }
 0xdd3   : > { %v4505_v63 = vadd.f32 %v8823_v14, %v4488_v3 }
 0xdd4   : > { %v4452_v47 = vmul.f32 %v5941_v29, %v4451_v23  ;;  %4810 = vmatmul.f32.gmra.mxu0 %v4720_v12 }
 0xdd5   : > { %5373 = vmatmul.msk.f32.gmra.mxu1 %vm370_vm0, %v4505_v63  ;;  %v4679_v49 = vpop.f32.mrf.mxu2  ;;  %5389 = vmatmul.msk.f32.gmra.mxu2 %vm370_vm0, %v4505_v63  ;;  %v4790_v19 = vpop.f32.mrf.mxu0 }
 0xdd6   : > { %v4456_v13 = vsel %vm4455_vm13, %v5941_v29, %v4452_v47  ;;  %v4680_v36 = vadd.f32 %v4679_v49, %v9018_v20 }
 0xdd7   : > { %v4472_v38 = vmul.f32 %v4456_v13, %v9003_v28  ;;  %v4617_v4 = vpop.f32.mrf.mxu1 }
 0xdd8   : > { %v4721_v42 = vmax.f32 %v4680_v36, 0.0  ;;  %v4618_v6 = vadd.f32 %v4617_v4, %v9011_v50 }
 0xdd9   : > { %v4489_v34 = vmul.f32 %v8819_v40, %v4472_v38  ;;  %v4791_v40 = vadd.f32 %v9078_v51, %v4790_v19 }
 0xdda   : > { %v4722_v22 = vmax.f32 %v4618_v6, 0.0  ;;  %4875 = vmatmul.f32.gmra.mxu3 %v4721_v42 }
 0xddb   : > { %v4506_v54 = vadd.f32 %v8823_v14, %v4489_v34 }
 0xddc   : > { %4813 = vmatmul.f32.gmra.mxu0 %v4722_v22 }
 0xddd   : > { %5374 = vmatmul.msk.f32.gmra.mxu1 %vm370_vm0, %v4506_v54  ;;  %v4682_v26 = vpop.f32.mrf.mxu2  ;;  %5390 = vmatmul.msk.f32.gmra.mxu2 %vm370_vm0, %v4506_v54  ;;  %v4793_v7 = vpop.f32.mrf.mxu0 }
 0xdde   : > { %v4683_v28 = vadd.f32 %v4682_v26, %v9018_v20  ;;  %v4794_v48 = vadd.f32 %v9078_v51, %v4793_v7 }
 0xddf   : > { %v4620_v30 = vpop.f32.mrf.mxu1 }
 0xde0   : > { %v4723_v15 = vmax.f32 %v4683_v28, 0.0  ;;  %v4621_v32 = vadd.f32 %v4620_v30, %v9011_v50 }
 0xde1   : > { %v4855_v14 = vpop.f32.mrf.mxu3 }
 0xde2   : > { %v4724_v62 = vmax.f32 %v4621_v32, 0.0  ;;  %v4856_v60 = vadd.f32 %v4855_v14, %v4791_v40  ;;  %4878 = vmatmul.f32.gmra.mxu3 %v4723_v15 }
 0xde4   : > { %v4903_v35 = vadd.f32 %v4856_v60, %v8622_v10  ;;  %4816 = vmatmul.f32.gmra.mxu0 %v4724_v62 }
 0xde5   : > { %v4685_v59 = vpop.f32.mrf.mxu2  ;;  %v4796_v11 = vpop.f32.mrf.mxu0 }
 0xde6   : > { %4919 = vst.msk [vmem:[%s9089_s17] sm:$0xff] %vm370_vm0, %v4903_v35  ;;  %v4686_v52 = vadd.f32 %v4685_v59, %v9018_v20  ;;  %v4797_v29 = vadd.f32 %v9078_v51, %v4796_v11 }
 0xde8   : > { %v4725_v27 = vmax.f32 %v4686_v52, 0.0 }
 0xde9   : > { %v4858_v57 = vpop.f32.mrf.mxu3 }
 0xdea   : > { %v4859_v58 = vadd.f32 %v4858_v57, %v4794_v48  ;;  %4881 = vmatmul.f32.gmra.mxu3 %v4725_v27 }
 0xdec   : > { %v4904_v10 = vadd.f32 %v4859_v58, %v8631_v5 }
 0xded   : > { %v4799_v0 = vpop.f32.mrf.mxu0 }
 0xdee   : > { %4920 = vst.msk [vmem:[%s9089_s17 + $0x8] sm:$0xff] %vm370_vm0, %v4904_v10  ;;  %v4623_v41 = vpop.f32.mrf.mxu1  ;;  %v4800_v23 = vadd.f32 %v9078_v51, %v4799_v0 }
 0xdef   : > { %v4624_v8 = vadd.f32 %v4623_v41, %v9011_v50 }
 0xdf1   : > { %v4726_v61 = vmax.f32 %v4624_v8, 0.0  ;;  %v4861_v25 = vpop.f32.mrf.mxu3 }
 0xdf2   : > { %v4862_v33 = vadd.f32 %v4861_v25, %v4797_v29 }
 0xdf3   : > { %4819 = vmatmul.f32.gmra.mxu0 %v4726_v61 }
 0xdf4   : > { %v4905_v18 = vadd.f32 %v4862_v33, %v8640_v44  ;;  %v4688_v31 = vpop.f32.mrf.mxu2 }
 0xdf5   : > { %v4689_v56 = vadd.f32 %v4688_v31, %v9018_v20  ;;  %v4802_v19 = vpop.f32.mrf.mxu0 }
 0xdf6   : > { %4921 = vst.msk [vmem:[%s9089_s17 + $0x10] sm:$0xff] %vm370_vm0, %v4905_v18  ;;  %v4626_v5 = vpop.f32.mrf.mxu1  ;;  %v4803_v38 = vadd.f32 %v9078_v51, %v4802_v19 }
 0xdf7   : > { %v4727_v2 = vmax.f32 %v4689_v56, 0.0  ;;  %v4627_v3 = vadd.f32 %v4626_v5, %v9011_v50 }
 0xdf9   : > { %v4728_v12 = vmax.f32 %v4627_v3, 0.0  ;;  %v4864_v63 = vpop.f32.mrf.mxu3  ;;  %4884 = vmatmul.f32.gmra.mxu3 %v4727_v2 }
 0xdfa   : > { %v4865_v47 = vadd.f32 %v4864_v63, %v4800_v23 }
 0xdfb   : > { %4822 = vmatmul.f32.gmra.mxu0 %v4728_v12 }
 0xdfc   : > { %v4906_v44 = vadd.f32 %v4865_v47, %v8649_v46  ;;  %v4691_v49 = vpop.f32.mrf.mxu2 }
 0xdfd   : > { %v4692_v13 = vadd.f32 %v4691_v49, %v9018_v20 }
 0xdfe   : > { %4922 = vst.msk [vmem:[%s9089_s17 + $0x18] sm:$0xff] %vm370_vm0, %v4906_v44 }
 0xdff   : > { %v4729_v36 = vmax.f32 %v4692_v13, 0.0 }
 0xe01   : > { %v4867_v4 = vpop.f32.mrf.mxu3  ;;  %4887 = vmatmul.f32.gmra.mxu3 %v4729_v36 }
 0xe02   : > { %v4868_v42 = vadd.f32 %v4867_v4, %v4803_v38 }
 0xe04   : > { %v4907_v6 = vadd.f32 %v4868_v42, %v8655_v39 }
 0xe06   : > { %4923 = vst.msk [vmem:[%s9089_s17 + $0x20] sm:$0xff] %vm370_vm0, %v4907_v6 }
 0xe13   : > { %v4805_v22 = vpop.f32.mrf.mxu0 }
 0xe14   : > { %v4806_v26 = vadd.f32 %v9078_v51, %v4805_v22 }
 0xe18   : > { %v4629_v34 = vpop.f32.mrf.mxu1 }
 0xe19   : > { %v4630_v46 = vadd.f32 %v4629_v34, %v9011_v50 }
 0xe1b   : > { %v4730_v54 = vmax.f32 %v4630_v46, 0.0  ;;  %v4808_v32 = vpop.f32.mrf.mxu0 }
 0xe1c   : > { %v4809_v14 = vadd.f32 %v9078_v51, %v4808_v32 }
 0xe1d   : > { %4825 = vmatmul.f32.gmra.mxu0 %v4730_v54 }
 0xe1e   : > { %v4694_v28 = vpop.f32.mrf.mxu2 }
 0xe1f   : > { %v4695_v7 = vadd.f32 %v4694_v28, %v9018_v20  ;;  %v4870_v30 = vpop.f32.mrf.mxu3 }
 0xe20   : > { %v4871_v40 = vadd.f32 %v4870_v30, %v4806_v26 }
 0xe21   : > { %v4731_v15 = vmax.f32 %v4695_v7, 0.0 }
 0xe22   : > { %v4908_v39 = vadd.f32 %v4871_v40, %v8666_v37 }
 0xe23   : > { %4890 = vmatmul.f32.gmra.mxu3 %v4731_v15 }
 0xe24   : > { %4924 = vst.msk [vmem:[%s9089_s17 + $0x28] sm:$0xff] %vm370_vm0, %v4908_v39 }
 0xe27   : > { %v4873_v62 = vpop.f32.mrf.mxu3 }
 0xe28   : > { %v4874_v60 = vadd.f32 %v4873_v62, %v4809_v14 }
 0xe2a   : > { %v4909_v35 = vadd.f32 %v4874_v60, %v8672_v21  ;;  %v4632_v59 = vpop.f32.mrf.mxu1 }
 0xe2b   : > { %v4633_v52 = vadd.f32 %v4632_v59, %v9011_v50 }
 0xe2c   : > { %4925 = vst.msk [vmem:[%s9089_s17 + $0x30] sm:$0xff] %vm370_vm0, %v4909_v35 }
 0xe2d   : > { %v4732_v48 = vmax.f32 %v4633_v52, 0.0 }
 0xe2f   : > { %4828 = vmatmul.f32.gmra.mxu0 %v4732_v48 }
 0xe30   : > { %v4697_v27 = vpop.f32.mrf.mxu2 }
 0xe31   : > { %v4698_v37 = vadd.f32 %v4697_v27, %v9018_v20 }
 0xe33   : > { %v4733_v11 = vmax.f32 %v4698_v37, 0.0 }
 0xe35   : > { %4893 = vmatmul.f32.gmra.mxu3 %v4733_v11 }
 0xe51   : > { %v4811_v10 = vpop.f32.mrf.mxu0 }
 0xe52   : > { %v4635_v57 = vpop.f32.mrf.mxu1  ;;  %v4812_v33 = vadd.f32 %v9078_v51, %v4811_v10 }
 0xe53   : > { %v4636_v58 = vadd.f32 %v4635_v57, %v9011_v50 }
 0xe55   : > { %v4734_v41 = vmax.f32 %v4636_v58, 0.0 }
 0xe57   : > { %4831 = vmatmul.f32.gmra.mxu0 %v4734_v41 }
 0xe58   : > { %v4700_v21 = vpop.f32.mrf.mxu2 }
 0xe59   : > { %v4701_v8 = vadd.f32 %v4700_v21, %v9018_v20  ;;  %v4814_v56 = vpop.f32.mrf.mxu0 }
 0xe5a   : > { %v4638_v29 = vpop.f32.mrf.mxu1 }
 0xe5b   : > { %v4735_v61 = vmax.f32 %v4701_v8, 0.0  ;;  %v4639_v25 = vadd.f32 %v4638_v29, %v9011_v50  ;;  %v4815_v50 = vadd.f32 %v9078_v51, %v4814_v56 }
 0xe5d   : > { %v4736_v0 = vmax.f32 %v4639_v25, 0.0  ;;  %v4876_v18 = vpop.f32.mrf.mxu3  ;;  %4896 = vmatmul.f32.gmra.mxu3 %v4735_v61 }
 0xe5e   : > { %v4877_v31 = vadd.f32 %v4876_v18, %v4812_v33 }
 0xe5f   : > { %4834 = vmatmul.f32.gmra.mxu0 %v4736_v0 }
 0xe60   : > { %v4910_v5 = vadd.f32 %v4877_v31, %v8691_v17  ;;  %v4703_v2 = vpop.f32.mrf.mxu2 }
 0xe61   : > { %v4704_v3 = vadd.f32 %v4703_v2, %v9018_v20  ;;  %v4817_v44 = vpop.f32.mrf.mxu0 }
 0xe62   : > { %4926 = vst.msk [vmem:[%s9089_s17 + $0x38] sm:$0xff] %vm370_vm0, %v4910_v5  ;;  %v4818_v17 = vadd.f32 %v9078_v51, %v4817_v44 }
 0xe63   : > { %v4737_v23 = vmax.f32 %v4704_v3, 0.0 }
 0xe65   : > { %v4879_v12 = vpop.f32.mrf.mxu3  ;;  %4899 = vmatmul.f32.gmra.mxu3 %v4737_v23 }
 0xe66   : > { %v4880_v63 = vadd.f32 %v4879_v12, %v4815_v50 }
 0xe68   : > { %v4911_v47 = vadd.f32 %v4880_v63, %v8706_v9 }
 0xe6a   : > { %4927 = vst.msk [vmem:[%s9089_s17 + $0x40] sm:$0xff] %vm370_vm0, %v4911_v47 }
 0xe6d   : > { %v4882_v49 = vpop.f32.mrf.mxu3 }
 0xe6e   : > { %v4883_v19 = vadd.f32 %v4882_v49, %v4818_v17 }
 0xe70   : > { %v4912_v20 = vadd.f32 %v4883_v19, %v8719_v1  ;;  %v4820_v13 = vpop.f32.mrf.mxu0 }
 0xe71   : > { %v4821_v36 = vadd.f32 %v9078_v51, %v4820_v13 }
 0xe72   : > { %4928 = vst.msk [vmem:[%s9089_s17 + $0x48] sm:$0xff] %vm370_vm0, %v4912_v20 }
 0xe78   : > { %v4823_v42 = vpop.f32.mrf.mxu0 }
 0xe79   : > { %v4824_v6 = vadd.f32 %v9078_v51, %v4823_v42 }
 0xe7c   : > { %v4885_v38 = vpop.f32.mrf.mxu3 }
 0xe7d   : > { %v4886_v4 = vadd.f32 %v4885_v38, %v4821_v36 }
 0xe7f   : > { %v4913_v9 = vadd.f32 %v4886_v4, %v8738_v43 }
 0xe81   : > { %4929 = vst.msk [vmem:[%s9089_s17 + $0x50] sm:$0xff] %vm370_vm0, %v4913_v9 }
 0xe84   : > { %v4888_v34 = vpop.f32.mrf.mxu3 }
 0xe85   : > { %v4889_v22 = vadd.f32 %v4888_v34, %v4824_v6 }
 0xe87   : > { %v4914_v1 = vadd.f32 %v4889_v22, %v8750_v55 }
 0xe89   : > { %4930 = vst.msk [vmem:[%s9089_s17 + $0x58] sm:$0xff] %vm370_vm0, %v4914_v1 }
 0xe9a   : > { %v4826_v46 = vpop.f32.mrf.mxu0 }
 0xe9b   : > { %v4827_v54 = vadd.f32 %v9078_v51, %v4826_v46 }
 0xea6   : > { %v4891_v26 = vpop.f32.mrf.mxu3 }
 0xea7   : > { %v4892_v28 = vadd.f32 %v4891_v26, %v4827_v54 }
 0xea9   : > { %v4915_v43 = vadd.f32 %v4892_v28, %v8772_v53 }
 0xeab   : > { %4931 = vst.msk [vmem:[%s9089_s17 + $0x60] sm:$0xff] %vm370_vm0, %v4915_v43 }
 0xeac   : > { %v4829_v7 = vpop.f32.mrf.mxu0 }
 0xead   : > { %v4830_v30 = vadd.f32 %v9078_v51, %v4829_v7 }
 0xeb8   : > { %v4894_v40 = vpop.f32.mrf.mxu3 }
 0xeb9   : > { %v4895_v15 = vadd.f32 %v4894_v40, %v4830_v30 }
 0xebb   : > { %v4916_v55 = vadd.f32 %v4895_v15, %v8780_v24 }
 0xebd   : > { %4932 = vst.msk [vmem:[%s9089_s17 + $0x68] sm:$0xff] %vm370_vm0, %v4916_v55 }
 0xed4   : > { %v4832_v39 = vpop.f32.mrf.mxu0 }
 0xed5   : > { %v4833_v32 = vadd.f32 %v9078_v51, %v4832_v39 }
 0xedc   : > { %v4835_v60 = vpop.f32.mrf.mxu0 }
 0xedd   : > { %v4836_v24 = vadd.f32 %v9078_v51, %v4835_v60 }
 0xee0   : > { %v4897_v14 = vpop.f32.mrf.mxu3 }
 0xee1   : > { %v4898_v53 = vadd.f32 %v4897_v14, %v4833_v32 }
 0xee3   : > { %v4917_v62 = vadd.f32 %v4898_v53, %v8800_v45 }
 0xee5   : > { %4933 = vst.msk [vmem:[%s9089_s17 + $0x70] sm:$0xff] %vm370_vm0, %v4917_v62 }
 0xee8   : > { %v4900_v35 = vpop.f32.mrf.mxu3 }
 0xee9   : > { %v4901_v59 = vadd.f32 %v4900_v35, %v4836_v24 }
 0xeeb   : > { %v4918_v52 = vadd.f32 %v4901_v59, %v8814_v16 }
 0xeed   : > { %4934 = vst.msk [vmem:[%s9089_s17 + $0x78] sm:$0xff] %vm370_vm0, %v4918_v52 }
 0xeee   : > { %6105 = shalt.err (!%p6102_p8)
}
 0xeef   : > { %s6170_s9 = smov 128   ;;  %s6171_s14 = smov 8  }
 0xef0   : > { %5416 = dma.vmem_to_hbm [thread:$0]  (%p6250_p5), %s4950_s29, 2048, %s4952_s16, %s4936_s28, %s6170_s9, %s6170_s9, %s6171_s14  }
 0xef1 PF: > { %p5443_p9 = scmp.ge.s32.totalorder %s6152_s27, 2  ;;  %s4966_s15 = sand.u32 1, %s6140_s24  }
 0xef2   : > { %s4967_s17 = scalar_lea.sflag [#allocation4], %s4966_s15 }
 0xef3   : > { %p5432_p10 = pnand %p5443_p9, %p6254_p6 }
 0xef5   : > { %p5433_p11 = pneg %p5432_p10 }
 0xef7   : > { %6135 = dma.done.wait (%p5433_p11), %s4967_s17, 2048  }
 0xef8   : > { %6137 = vsyncadd (%p5433_p11), %s4967_s17, 4294965248  ;;  %s9397_s19 = sld [smem:[#allocation15_spill]]  ;;  %p20_p12 = scmp.ge.s32.totalorder %s6237_s30, 4  }
 0xef9   : > { %s9398_s24 = smov %s6144_s25  ;;  %s9399_s25 = smov %s6148_s26 }
 0xefa   : > { %s9401_s27 = smov %s6237_s30  ;;  %22 = sbr.rel (!%p20_p12) target bundleno = 9 (0x9), region = 100 }
 0xefe   : > { %s9400_s26 = smov %s9397_s19 }
 0xeff   :  { %4973 = vsyncpa [#allocation3], 1 }
 0xf00   :  { %4975 = vsyncpa [#allocation3 + $0x1], 1 }
 0xf01   :  { %4976 = vsyncpa [#allocation6], 1 }
 0xf02   :  { %4977 = vsyncpa [#allocation9], 1 }
 0xf03   :  { %4978 = vsyncpa [#allocation4], 1 }
 0xf04   :  { %4980 = vsyncpa [#allocation4 + $0x1], 1 }

</bundles_post_ra>
